<compile_context>
chip_gen: v7x
topology: tpu7x:2x2x1
jax: 0.10.0
libtpu: 0.0.40
codegen_flags: <defaults>
</compile_context>

<pallas_src>
import math
from functools import partial

import numpy as np
import jax
import jax.numpy as jnp
from jax import lax
from jax.experimental import pallas as pl
from jax.experimental.pallas import tpu as pltpu


# ----------------------------------------------------------------------------
# sin/cos positional embedding + relative position index (same math as reference)
# ----------------------------------------------------------------------------
def get_1d_sincos_pos_embed_from_grid(embed_dim, pos):
    assert embed_dim % 2 == 0
    omega = np.arange(embed_dim // 2, dtype=np.float64)
    omega /= embed_dim / 2.0
    omega = 1.0 / 10000 ** omega
    pos = pos.reshape(-1)
    out = np.einsum('m,d->md', pos, omega)
    return np.concatenate([np.sin(out), np.cos(out)], axis=1)


def get_2d_sincos_pos_embed_from_grid(embed_dim, grid):
    assert embed_dim % 2 == 0
    emb_h = get_1d_sincos_pos_embed_from_grid(embed_dim // 2, grid[0])
    emb_w = get_1d_sincos_pos_embed_from_grid(embed_dim // 2, grid[1])
    return np.concatenate([emb_h, emb_w], axis=1)


def get_2d_sincos_pos_embed(embed_dim, grid_size):
    grid_h = np.arange(grid_size, dtype=np.float32)
    grid_w = np.arange(grid_size, dtype=np.float32)
    grid = np.meshgrid(grid_w, grid_h)
    grid = np.stack(grid, axis=0).reshape([2, 1, grid_size, grid_size])
    return get_2d_sincos_pos_embed_from_grid(embed_dim, grid)


def relative_position_index(ws):
    """Same index math as RelativePositionBias.__init__ (window_size = [ws, ws])."""
    coords_h = np.arange(ws)
    coords_w = np.arange(ws)
    coords = np.stack(np.meshgrid(coords_h, coords_w, indexing='ij'))
    coords_flatten = coords.reshape(2, -1)
    rel = coords_flatten[:, :, None] - coords_flatten[:, None, :]
    rel = rel.transpose(1, 2, 0).copy()
    rel[:, :, 0] += ws - 1
    rel[:, :, 1] += ws - 1
    rel[:, :, 0] *= 2 * ws - 1
    return rel.sum(-1)                                                      # (T, T)


def _pick_tile(n, candidates):
    for c in candidates:
        if n % c == 0:
            return c
    return n                                                                # full dim always legal


def _gelu_tanh(y):
    return 0.5 * y * (1.0 + jnp.tanh(0.7978845608028654 * (y + 0.044715 * y * y * y)))


# ----------------------------------------------------------------------------
# Pallas kernels
# ----------------------------------------------------------------------------
def _patch_embed_kernel(x_ref, w_ref, b_ref, p_ref, o_ref):
    # out = x @ W + b + pos_embed  (pos add fused, output lane-dense, f32 residual stream)
    y = jnp.dot(x_ref[...].astype(jnp.bfloat16), w_ref[...],
                preferred_element_type=jnp.float32)
    o_ref[...] = y + b_ref[...] + p_ref[...]


def _ln_mod_matmul_kernel(x_ref, sh_ref, sc_ref, w_ref, b_ref, o_ref, h_ref, *, eps, act):
    # Fused LayerNorm(no-affine) + modulate(shift,scale) + matmul (+ optional GELU-tanh).
    # LN+modulate is computed only on the first output tile (n == 0) and cached in a
    # bf16 VMEM scratch; subsequent N tiles reuse it (N axis is innermost + "arbitrary").
    @pl.when(pl.program_id(2) == 0)
    def _():
        x = x_ref[...]                                    # (tt, C) f32
        mu = jnp.mean(x, axis=-1, keepdims=True)
        xc = x - mu
        var = jnp.mean(xc * xc, axis=-1, keepdims=True)
        xn = xc * lax.rsqrt(var + eps)
        h = xn * (1.0 + sc_ref[...]) + sh_ref[...]        # f32 epilogue on the VPU
        h_ref[...] = h.astype(jnp.bfloat16)

    y = jnp.dot(h_ref[...], w_ref[...],
                preferred_element_type=jnp.float32) + b_ref[...]
    if act == "gelu_tanh":
        y = _gelu_tanh(y)
    o_ref[...] = y.astype(o_ref.dtype)


def _mm_gate_res_kernel(a_ref, w_ref, b_ref, g_ref, r_ref, o_ref):
    # Fast path: K fits in a single tile -> no reduction axis, no accumulator scratch.
    y = jnp.dot(a_ref[...].astype(jnp.bfloat16), w_ref[...],
                preferred_element_type=jnp.float32)
    o_ref[...] = r_ref[...] + g_ref[...] * (y + b_ref[...])


def _mm_gate_res_acc_kernel(a_ref, w_ref, b_ref, g_ref, r_ref, o_ref, acc_ref):
    # out = res + gate * (a @ W + b), K-tiled with f32 accumulator (large-K path).
    k = pl.program_id(3)

    @pl.when(k == 0)
    def _():
        acc_ref[...] = jnp.zeros_like(acc_ref)

    acc_ref[...] += jnp.dot(a_ref[...].astype(jnp.bfloat16), w_ref[...],
                            preferred_element_type=jnp.float32)

    @pl.when(k == pl.num_programs(3) - 1)
    def _():
        o_ref[...] = r_ref[...] + g_ref[...] * (acc_ref[...] + b_ref[...])


def _skip_linear_kernel(x_ref, s_ref, wa_ref, wb_ref, b_ref, o_ref):
    # skip_linear(concat([x, skip], -1)) == x @ W[:C] + skip @ W[C:] + b  (no HBM concat)
    y = jnp.dot(x_ref[...].astype(jnp.bfloat16), wa_ref[...],
                preferred_element_type=jnp.float32)
    y = y + jnp.dot(s_ref[...].astype(jnp.bfloat16), wb_ref[...],
                    preferred_element_type=jnp.float32)
    o_ref[...] = y + b_ref[...]


def _attn_kernel(qkv_ref, bias_ref, o_ref, acc_ref, *, heads, hd, scale):
    # All heads of one batch element in a single grid step; bias block is grid-resident
    # (bf16). Scale is folded into q; each head's result is streamed into a (T, C) VMEM
    # scratch slice (no concatenate), final HBM store is lane-dense (T, H*D) bf16.
    # TODO(synk): for large T / hidden sizes, add a q-tile grid axis (bias block
    # (H, tq, T)) to fit v5e's 16 MiB / v7x's 32 MiB scoped-VMEM defaults.
    x = qkv_ref[...]                                      # (T, 3C) bf16
    C = heads * hd
    for h in range(heads):                                # static unrolled head loop
        q = x[:, h * hd:(h + 1) * hd] * scale             # fold softmax scale into q
        k = x[:, C + h * hd:C + (h + 1) * hd]
        v = x[:, 2 * C + h * hd:2 * C + (h + 1) * hd]
        # contract last dims directly: no materialized K transpose
        s = lax.dot_general(q, k, (((1,), (1,)), ((), ())),
                            preferred_element_type=jnp.float32)
        s = s + bias_ref[h]                               # bf16 bias upcast on add
        m = jnp.max(s, axis=-1, keepdims=True)
        p = jnp.exp(s - m)
        p = p * pl.reciprocal(jnp.sum(p, axis=-1, keepdims=True), approx=True)
        acc_ref[:, h * hd:(h + 1) * hd] = jnp.dot(
            p.astype(jnp.bfloat16), v, preferred_element_type=jnp.float32)
    o_ref[...] = acc_ref[...].astype(o_ref.dtype)


# ----------------------------------------------------------------------------
# Kernel wrappers (tiling decisions + BlockSpecs)
# ----------------------------------------------------------------------------
_T_CAND = (256, 128, 64, 32, 16, 8)
_N_CAND = (512, 256, 384, 128)          # prefer 256-multiples (v6e/v7x MXU), keep 128s for v5e
_K_CAND = (512, 384, 256, 128)
_SINGLE_K_MAX = 2048                    # bf16 (K, tn) weight tile stays well under VMEM


def patch_embed(xp, w, b, pos):
    B, T, P = xp.shape
    N = w.shape[1]
    tt = _pick_tile(T, _T_CAND)
    tn = _pick_tile(N, _N_CAND)
    return pl.pallas_call(
        _patch_embed_kernel,
        out_shape=jax.ShapeDtypeStruct((B, T, N), jnp.float32),
        grid=(B, T // tt, N // tn),
        in_specs=[
            pl.BlockSpec((None, tt, P), lambda b_, t_, n_: (b_, t_, 0)),
            pl.BlockSpec((P, tn), lambda b_, t_, n_: (0, n_)),
            pl.BlockSpec((1, tn), lambda b_, t_, n_: (0, n_)),
            pl.BlockSpec((None, tt, tn), lambda b_, t_, n_: (0, t_, n_)),
        ],
        out_specs=pl.BlockSpec((None, tt, tn), lambda b_, t_, n_: (b_, t_, n_)),
        compiler_params=pltpu.CompilerParams(
            dimension_semantics=("parallel", "parallel", "parallel")),
    )(xp, w, b.reshape(1, N), pos)


def ln_mod_matmul(x, shift, scale, w, b, act=None, out_dtype=jnp.float32, eps=1e-6):
    """out = act(modulate(LN(x), shift, scale) @ w + b).  K (=C) is kept full (LN needs it)."""
    B, T, C = x.shape
    N = w.shape[1]
    tt = _pick_tile(T, _T_CAND)
    tn = _pick_tile(N, _N_CAND)
    return pl.pallas_call(
        partial(_ln_mod_matmul_kernel, eps=eps, act=act),
        out_shape=jax.ShapeDtypeStruct((B, T, N), out_dtype),
        grid=(B, T // tt, N // tn),
        in_specs=[
            pl.BlockSpec((None, tt, C), lambda b_, t_, n_: (b_, t_, 0)),
            pl.BlockSpec((None, 1, C), lambda b_, t_, n_: (b_, 0, 0)),
            pl.BlockSpec((None, 1, C), lambda b_, t_, n_: (b_, 0, 0)),
            pl.BlockSpec((C, tn), lambda b_, t_, n_: (0, n_)),
            pl.BlockSpec((1, tn), lambda b_, t_, n_: (0, n_)),
        ],
        out_specs=pl.BlockSpec((None, tt, tn), lambda b_, t_, n_: (b_, t_, n_)),
        scratch_shapes=[pltpu.VMEM((tt, C), jnp.bfloat16)],   # cached LN+modulate
        compiler_params=pltpu.CompilerParams(
            # N axis must run sequentially per (b, t) tile so the cached LN is reused.
            dimension_semantics=("parallel", "parallel", "arbitrary")),
    )(x, shift.reshape(B, 1, C), scale.reshape(B, 1, C), w, b.reshape(1, N))


def matmul_gate_res(a, w, b, gate, res):
    """out = res + gate * (a @ w + b); single-pass when K fits one tile, K-tiled otherwise."""
    B, T, K = a.shape
    N = w.shape[1]
    tt = _pick_tile(T, _T_CAND)
    tn = _pick_tile(N, _N_CAND)
    if K <= _SINGLE_K_MAX:
        return pl.pallas_call(
            _mm_gate_res_kernel,
            out_shape=jax.ShapeDtypeStruct((B, T, N), jnp.float32),
            grid=(B, T // tt, N // tn),
            in_specs=[
                pl.BlockSpec((None, tt, K), lambda b_, t_, n_: (b_, t_, 0)),
                pl.BlockSpec((K, tn), lambda b_, t_, n_: (0, n_)),
                pl.BlockSpec((1, tn), lambda b_, t_, n_: (0, n_)),
                pl.BlockSpec((None, 1, tn), lambda b_, t_, n_: (b_, 0, n_)),
                pl.BlockSpec((None, tt, tn), lambda b_, t_, n_: (b_, t_, n_)),
            ],
            out_specs=pl.BlockSpec((None, tt, tn), lambda b_, t_, n_: (b_, t_, n_)),
            compiler_params=pltpu.CompilerParams(
                dimension_semantics=("parallel", "parallel", "parallel")),
        )(a, w, b.reshape(1, N), gate.reshape(B, 1, N), res)

    tk = _pick_tile(K, _K_CAND)
    return pl.pallas_call(
        _mm_gate_res_acc_kernel,
        out_shape=jax.ShapeDtypeStruct((B, T, N), jnp.float32),
        grid=(B, T // tt, N // tn, K // tk),
        in_specs=[
            pl.BlockSpec((None, tt, tk), lambda b_, t_, n_, k_: (b_, t_, k_)),
            pl.BlockSpec((tk, tn), lambda b_, t_, n_, k_: (k_, n_)),
            pl.BlockSpec((1, tn), lambda b_, t_, n_, k_: (0, n_)),
            pl.BlockSpec((None, 1, tn), lambda b_, t_, n_, k_: (b_, 0, n_)),
            pl.BlockSpec((None, tt, tn), lambda b_, t_, n_, k_: (b_, t_, n_)),
        ],
        out_specs=pl.BlockSpec((None, tt, tn), lambda b_, t_, n_, k_: (b_, t_, n_)),
        scratch_shapes=[pltpu.VMEM((tt, tn), jnp.float32)],
        compiler_params=pltpu.CompilerParams(
            dimension_semantics=("parallel", "parallel", "parallel", "arbitrary")),
    )(a, w, b.reshape(1, N), gate.reshape(B, 1, N), res)


def skip_linear(x, skip, wa, wb, b):
    B, T, C = x.shape
    N = wa.shape[1]
    tt = _pick_tile(T, _T_CAND)
    tn = _pick_tile(N, _N_CAND)
    return pl.pallas_call(
        _skip_linear_kernel,
        out_shape=jax.ShapeDtypeStruct((B, T, N), jnp.float32),
        grid=(B, T // tt, N // tn),
        in_specs=[
            pl.BlockSpec((None, tt, C), lambda b_, t_, n_: (b_, t_, 0)),
            pl.BlockSpec((None, tt, C), lambda b_, t_, n_: (b_, t_, 0)),
            pl.BlockSpec((C, tn), lambda b_, t_, n_: (0, n_)),
            pl.BlockSpec((C, tn), lambda b_, t_, n_: (0, n_)),
            pl.BlockSpec((1, tn), lambda b_, t_, n_: (0, n_)),
        ],
        out_specs=pl.BlockSpec((None, tt, tn), lambda b_, t_, n_: (b_, t_, n_)),
        compiler_params=pltpu.CompilerParams(
            dimension_semantics=("parallel", "parallel", "parallel")),
    )(x, skip, wa, wb, b.reshape(1, N))


def attention(qkv, bias, heads, scale):
    """qkv: (B, T, 3C) bf16, bias: (H, T, T) bf16 precomputed; returns (B, T, C) bf16."""
    B, T, C3 = qkv.shape
    C = C3 // 3
    return pl.pallas_call(
        partial(_attn_kernel, heads=heads, hd=C // heads, scale=scale),
        out_shape=jax.ShapeDtypeStruct((B, T, C), jnp.bfloat16),
        grid=(B,),
        in_specs=[
            pl.BlockSpec((None, T, C3), lambda b_: (b_, 0, 0)),
            pl.BlockSpec((heads, T, T), lambda b_: (0, 0, 0)),   # constant index -> resident
        ],
        out_specs=pl.BlockSpec((None, T, C), lambda b_: (b_, 0, 0)),
        scratch_shapes=[pltpu.VMEM((T, C), jnp.float32)],
        compiler_params=pltpu.CompilerParams(
            dimension_semantics=("parallel",),
            vmem_limit_bytes=48 * 1024 * 1024),
    )(qkv, bias)


# ----------------------------------------------------------------------------
# Model (glue in plain JAX for tiny ops, heavy lifting in the kernels above)
# ----------------------------------------------------------------------------
def timestep_embedding(t, dim, max_period=10000):
    half = dim // 2
    freqs = jnp.exp(-math.log(max_period) * jnp.arange(half, dtype=jnp.float32) / half)
    args = t[:, None].astype(jnp.float32) * freqs[None]
    return jnp.concatenate([jnp.cos(args), jnp.sin(args)], axis=-1)


def mdt_block(bp, x, c_silu, heads, skip=None):
    B, T, C = x.shape
    if skip is not None:
        x = skip_linear(x, skip, bp['skip_wa'], bp['skip_wb'], bp['skip_b'])
    # tiny (B, 6C) adaLN projection: leave to XLA (B is small)
    ada = jnp.dot(c_silu, bp['ada_w']) + bp['ada_b']
    sh_msa, sc_msa, g_msa, sh_mlp, sc_mlp, g_mlp = jnp.split(ada, 6, axis=1)
    scale = (C // heads) ** -0.5

    # qkv / fc1 outputs are only ever MXU operands -> emit bf16 (halves their HBM traffic)
    qkv = ln_mod_matmul(x, sh_msa, sc_msa, bp['qkv_w'], bp['qkv_b'],
                        out_dtype=jnp.bfloat16)                          # LN+mod fused
    a = attention(qkv, bp['rel_bias'], heads, scale)                     # (B, T, C) bf16
    x = matmul_gate_res(a, bp['proj_w'], bp['proj_b'], g_msa, x)         # proj + gate + residual

    h = ln_mod_matmul(x, sh_mlp, sc_mlp, bp['fc1_w'], bp['fc1_b'],
                      act='gelu_tanh', out_dtype=jnp.bfloat16)
    x = matmul_gate_res(h, bp['fc2_w'], bp['fc2_b'], g_mlp, x)           # fc2 + gate + residual
    return x


def mdt_forward(params, x, t, y, cfg):
    # TODO(synk): masked-latent path (random_masking / forward_side_interpolater / sideblocks)
    # is not implemented; this matches forward(..., enable_mask=False) with mask_ratio=None.
    p = cfg['patch_size']
    heads = cfg['num_heads']
    C = cfg['in_channels']
    out_ch = C * 2 if cfg['learn_sigma'] else C
    B, _, H, W = x.shape
    Hp, Wp = H // p, W // p
    T = Hp * Wp

    # x_embedder: stride-p conv == patch reshape + matmul; pos_embed add fused in kernel.
    xp = x.reshape(B, C, Hp, p, Wp, p).transpose(0, 2, 4, 1, 3, 5).reshape(B, T, C * p * p)
    x_tok = patch_embed(xp, params['patch_w'], params['patch_b'], params['pos_embed'])

    # conditioning: timestep MLP + label embedding (tiny; plain XLA)
    t_freq = timestep_embedding(t, 256)
    h0 = jnp.dot(t_freq, params['t_w0']) + params['t_b0']
    h0 = h0 * jax.nn.sigmoid(h0)                          # SiLU
    t_emb = jnp.dot(h0, params['t_w2']) + params['t_b2']
    y_emb = params['y_table'][y]
    c = t_emb + y_emb
    c_silu = c * jax.nn.sigmoid(c)                        # SiLU applied before every adaLN linear

    input_skip = x_tok
    skips = []
    for bp in params['en_in']:
        x_tok = mdt_block(bp, x_tok, c_silu, heads)
        skips.append(x_tok)
    for bp in params['en_out']:
        x_tok = mdt_block(bp, x_tok, c_silu, heads, skip=skips.pop())
    x_tok = x_tok + params['decoder_pos_embed']
    for bp in params['de']:
        x_tok = mdt_block(bp, x_tok, c_silu, heads, skip=input_skip)

    # FinalLayer (LN + modulate + linear fused); weight padded to 128 lanes at init for
    # lane-dense stores, real columns sliced back here.
    ada = jnp.dot(c_silu, params['fl_ada_w']) + params['fl_ada_b']
    shift, scale = jnp.split(ada, 2, axis=1)
    out = ln_mod_matmul(x_tok, shift, scale, params['fl_w'], params['fl_b'])
    out = out[:, :, :p * p * out_ch]
    out = out.reshape(B, Hp, Wp, p, p, out_ch)

    # unpatchify -> (N, out_ch, H, W)
    out = jnp.einsum('nhwpqc->nchpwq', out)
    return out.reshape(B, out_ch, Hp * p, Wp * p)


# ----------------------------------------------------------------------------
# Deterministic parameter initialization (synthetic weights, matmul weights in bf16)
# ----------------------------------------------------------------------------
def init_params(key, cfg):
    hid = cfg['hidden']
    p = cfg['patch_size']
    C = cfg['in_channels']
    heads = cfg['num_heads']
    out_ch = C * 2 if cfg['learn_sigma'] else C
    mlp_hidden = int(hid * cfg['mlp_ratio'])
    gs = cfg['input_size'] // p
    T = gs * gs
    half_depth = (cfg['depth'] - cfg['decode_layer']) // 2

    keys = iter(jax.random.split(key, 4096))
    bf16 = jnp.bfloat16

    def w(fi, fo, std=0.02):
        return jax.random.normal(next(keys), (fi, fo), jnp.float32) * std

    def b(fo):
        return jax.random.normal(next(keys), (fo,), jnp.float32) * 0.01

    rel_idx = jnp.asarray(relative_position_index(gs).reshape(-1))

    def block(skip):
        table = jax.random.normal(
            next(keys), ((2 * gs - 1) ** 2 + 3, heads), jnp.float32) * 0.02
        # precompute the per-layer (H, T, T) relative-position bias once, stored bf16
        rel_bias = jnp.take(table, rel_idx, axis=0).reshape(T, T, heads).transpose(2, 0, 1)
        d = dict(
            ada_w=w(hid, 6 * hid), ada_b=b(6 * hid),
            qkv_w=w(hid, 3 * hid).astype(bf16), qkv_b=b(3 * hid),
            proj_w=w(hid, hid).astype(bf16), proj_b=b(hid),
            fc1_w=w(hid, mlp_hidden).astype(bf16), fc1_b=b(mlp_hidden),
            fc2_w=w(mlp_hidden, hid).astype(bf16), fc2_b=b(hid),
            rel_bias=rel_bias.astype(bf16),
        )
        if skip:
            sw = w(2 * hid, hid)
            d['skip_wa'] = sw[:hid].astype(bf16)           # pre-split: no HBM concat at runtime
            d['skip_wb'] = sw[hid:].astype(bf16)
            d['skip_b'] = b(hid)
        return d

    pos = jnp.asarray(get_2d_sincos_pos_embed(hid, gs), jnp.float32)[None]
    # NOTE: decoder_pos_embed reuses pos_embed (separately learned in the reference;
    # acceptable for synthetic weights).

    # FinalLayer linear padded to a multiple of 128 output lanes (zero columns sliced off
    # in the wrapper): lane-dense stores instead of vst.msk on a 32-wide output.
    fl_out = p * p * out_ch
    fl_pad = max(128, ((fl_out + 127) // 128) * 128)
    fl_w = jnp.zeros((hid, fl_pad), jnp.float32).at[:, :fl_out].set(w(hid, fl_out))
    fl_b = jnp.zeros((fl_pad,), jnp.float32).at[:fl_out].set(b(fl_out))

    return dict(
        patch_w=w(C * p * p, hid).astype(bf16), patch_b=b(hid),
        pos_embed=pos,
        decoder_pos_embed=pos,
        t_w0=w(256, hid), t_b0=b(hid),
        t_w2=w(hid, hid), t_b2=b(hid),
        y_table=jax.random.normal(next(keys), (cfg['num_classes'] + 1, hid), jnp.float32) * 0.02,
        en_in=[block(False) for _ in range(half_depth)],
        en_out=[block(True) for _ in range(half_depth)],
        de=[block(True) for _ in range(cfg['decode_layer'])],
        fl_ada_w=w(hid, 2 * hid), fl_ada_b=b(2 * hid),
        fl_w=fl_w.astype(bf16), fl_b=fl_b,
    )


# ----------------------------------------------------------------------------
if __name__ == "__main__":
    cfg = dict(
        input_size=16, patch_size=2, in_channels=4, hidden=128, depth=6,
        num_heads=4, mlp_ratio=4.0, num_classes=10, learn_sigma=True, decode_layer=2,
    )
    params = init_params(jax.random.PRNGKey(0), cfg)

    kx, kt, ky = jax.random.split(jax.random.PRNGKey(0), 3)
    x = jax.random.normal(kx, (2, 4, 16, 16), jnp.float32)
    t = jax.random.uniform(kt, (2,), jnp.float32) * 1000.0
    y = jax.random.randint(ky, (2,), 0, cfg['num_classes'])

    fwd = jax.jit(lambda p_, x_, t_, y_: mdt_forward(p_, x_, t_, y_, cfg))
    out = jax.block_until_ready(fwd(params, x, t, y))

    assert out.shape == (2, 8, 16, 16), out.shape
    assert out.dtype == jnp.float32
    assert bool(jnp.all(jnp.isfinite(out)))
    print("KERNEL_OK")
</pallas_src>

<mosaic_0001>
module attributes {stable_mosaic.version = 11 : i64} {
  func.func @_patch_embed_kernel(%arg0: i32, %arg1: i32, %arg2: i32, %arg3: memref<1x64x16xf32, #tpu.memory_space<vmem>>, %arg4: memref<16x128xbf16, #tpu.memory_space<vmem>>, %arg5: memref<1x128xf32, #tpu.memory_space<vmem>>, %arg6: memref<1x64x128xf32, #tpu.memory_space<vmem>>, %arg7: memref<1x64x128xf32, #tpu.memory_space<vmem>>) attributes {dimension_semantics = [#tpu.dimension_semantics<parallel>, #tpu.dimension_semantics<parallel>, #tpu.dimension_semantics<parallel>], iteration_bounds = array<i64: 2, 1, 1>, scalar_prefetch = 0 : i64, scratch_operands = 0 : i64, tpu.core_type = #tpu.core_type<tc>, window_params = [{transform_indices = @transform_0, window_bounds = array<i64: 1, 64, 16>}, {transform_indices = @transform_1, window_bounds = array<i64: 16, 128>}, {transform_indices = @transform_2, window_bounds = array<i64: 1, 128>}, {transform_indices = @transform_3, window_bounds = array<i64: 1, 64, 128>}, {transform_indices = @transform_4, window_bounds = array<i64: 1, 64, 128>}]} {
    %c0 = arith.constant 0 : index
    %c0_0 = arith.constant 0 : index
    %c0_1 = arith.constant 0 : index
    %0 = vector.load %arg3[%c0, %c0_0, %c0_1] : memref<1x64x16xf32, #tpu.memory_space<vmem>>, vector<1x64x16xf32>
    %1 = vector.shape_cast %0 : vector<1x64x16xf32> to vector<64x16xf32>
    %2 = arith.truncf %1 : vector<64x16xf32> to vector<64x16xbf16>
    %c0_2 = arith.constant 0 : index
    %c0_3 = arith.constant 0 : index
    %3 = vector.load %arg4[%c0_2, %c0_3] : memref<16x128xbf16, #tpu.memory_space<vmem>>, vector<16x128xbf16>
    %cst = arith.constant dense<0.000000e+00> : vector<64x128xf32>
    %4 = tpu.matmul %2, %3, %cst {dimension_numbers = #tpu.dot_dimension_numbers<[1], [0], [0], [1], [0, 0, 1, 1], [], []>} : vector<64x16xbf16>, vector<16x128xbf16>, vector<64x128xf32> -> vector<64x128xf32>
    %c0_4 = arith.constant 0 : index
    %c0_5 = arith.constant 0 : index
    %5 = vector.load %arg5[%c0_4, %c0_5] : memref<1x128xf32, #tpu.memory_space<vmem>>, vector<1x128xf32>
    %6 = vector.broadcast %5 : vector<1x128xf32> to vector<64x128xf32>
    %7 = arith.addf %4, %6 : vector<64x128xf32>
    %c0_6 = arith.constant 0 : index
    %c0_7 = arith.constant 0 : index
    %c0_8 = arith.constant 0 : index
    %8 = vector.load %arg6[%c0_6, %c0_7, %c0_8] : memref<1x64x128xf32, #tpu.memory_space<vmem>>, vector<1x64x128xf32>
    %9 = vector.shape_cast %8 : vector<1x64x128xf32> to vector<64x128xf32>
    %10 = arith.addf %7, %9 : vector<64x128xf32>
    %c0_9 = arith.constant 0 : index
    %c0_10 = arith.constant 0 : index
    %c0_11 = arith.constant 0 : index
    %11 = vector.load %arg7[%c0_9, %c0_10, %c0_11] : memref<1x64x128xf32, #tpu.memory_space<vmem>>, vector<1x64x128xf32>
    %12 = vector.shape_cast %11 : vector<1x64x128xf32> to vector<64x128xf32>
    %13 = vector.shape_cast %10 : vector<64x128xf32> to vector<1x64x128xf32>
    tpu.vector_store %arg7[%c0_9, %c0_10, %c0_11], %13 {strides = array<i32>} : memref<1x64x128xf32, #tpu.memory_space<vmem>>, vector<1x64x128xf32>,
    return
  }
  func.func @transform_0(%arg0: i32, %arg1: i32, %arg2: i32) -> (i32, i32, i32) {
    %c0_i32 = arith.constant 0 : i32
    %c0_i32_0 = arith.constant 0 : i32
    return %arg0, %arg1, %c0_i32 : i32, i32, i32
  }
  func.func @transform_1(%arg0: i32, %arg1: i32, %arg2: i32) -> (i32, i32) {
    %c0_i32 = arith.constant 0 : i32
    %c0_i32_0 = arith.constant 0 : i32
    return %c0_i32, %arg2 : i32, i32
  }
  func.func @transform_2(%arg0: i32, %arg1: i32, %arg2: i32) -> (i32, i32) {
    %c0_i32 = arith.constant 0 : i32
    %c0_i32_0 = arith.constant 0 : i32
    return %c0_i32, %arg2 : i32, i32
  }
  func.func @transform_3(%arg0: i32, %arg1: i32, %arg2: i32) -> (i32, i32, i32) {
    %c0_i32 = arith.constant 0 : i32
    %c0_i32_0 = arith.constant 0 : i32
    return %c0_i32, %arg1, %arg2 : i32, i32, i32
  }
  func.func @transform_4(%arg0: i32, %arg1: i32, %arg2: i32) -> (i32, i32, i32) {
    %c0_i32 = arith.constant 0 : i32
    return %arg0, %arg1, %arg2 : i32, i32, i32
  }
}

module attributes {stable_mosaic.version = 11 : i64} {
  func.func @_ln_mod_matmul_kernel(%arg0: i32, %arg1: i32, %arg2: i32, %arg3: memref<1x64x128xf32, #tpu.memory_space<vmem>>, %arg4: memref<1x1x128xf32, #tpu.memory_space<vmem>>, %arg5: memref<1x1x128xf32, #tpu.memory_space<vmem>>, %arg6: memref<128x384xbf16, #tpu.memory_space<vmem>>, %arg7: memref<1x384xf32, #tpu.memory_space<vmem>>, %arg8: memref<1x64x384xbf16, #tpu.memory_space<vmem>>, %arg9: memref<64x128xbf16, #tpu.memory_space<vmem>>) attributes {dimension_semantics = [#tpu.dimension_semantics<parallel>, #tpu.dimension_semantics<parallel>, #tpu.dimension_semantics<arbitrary>], iteration_bounds = array<i64: 2, 1, 1>, scalar_prefetch = 0 : i64, scratch_operands = 1 : i64, tpu.core_type = #tpu.core_type<tc>, window_params = [{transform_indices = @transform_0, window_bounds = array<i64: 1, 64, 128>}, {transform_indices = @transform_1, window_bounds = array<i64: 1, 1, 128>}, {transform_indices = @transform_2, window_bounds = array<i64: 1, 1, 128>}, {transform_indices = @transform_3, window_bounds = array<i64: 128, 384>}, {transform_indices = @transform_4, window_bounds = array<i64: 1, 384>}, {transform_indices = @transform_5, window_bounds = array<i64: 1, 64, 384>}]} {
    %c0_i32 = arith.constant 0 : i32
    %0 = arith.cmpi eq, %arg2, %c0_i32 : i32
    %1 = arith.extui %0 : i1 to i32
    %c0_i32_0 = arith.constant 0 : i32
    %2 = arith.cmpi ne, %1, %c0_i32_0 : i32
    scf.if %2 {
      %c0_9 = arith.constant 0 : index
      %c0_10 = arith.constant 0 : index
      %c0_11 = arith.constant 0 : index
      %13 = vector.load %arg3[%c0_9, %c0_10, %c0_11] : memref<1x64x128xf32, #tpu.memory_space<vmem>>, vector<1x64x128xf32>
      %14 = vector.shape_cast %13 : vector<1x64x128xf32> to vector<64x128xf32>
      %cst_12 = arith.constant dense<0.000000e+00> : vector<64xf32>
      %15 = vector.multi_reduction <add>, %14, %cst_12 [1] : vector<64x128xf32> to vector<64xf32>
      %16 = vector.shape_cast %15 : vector<64xf32> to vector<64x1xf32>
      %cst_13 = arith.constant 1.280000e+02 : f32
      %17 = vector.broadcast %cst_13 : f32 to vector<64x1xf32>
      %18 = arith.divf %16, %17 : vector<64x1xf32>
      %19 = vector.broadcast %18 : vector<64x1xf32> to vector<64x128xf32>
      %20 = arith.subf %14, %19 : vector<64x128xf32>
      %21 = arith.mulf %20, %20 : vector<64x128xf32>
      %cst_14 = arith.constant dense<0.000000e+00> : vector<64xf32>
      %22 = vector.multi_reduction <add>, %21, %cst_14 [1] : vector<64x128xf32> to vector<64xf32>
      %23 = vector.shape_cast %22 : vector<64xf32> to vector<64x1xf32>
      %cst_15 = arith.constant 1.280000e+02 : f32
      %24 = vector.broadcast %cst_15 : f32 to vector<64x1xf32>
      %25 = arith.divf %23, %24 : vector<64x1xf32>
      %cst_16 = arith.constant 9.99999997E-7 : f32
      %26 = vector.broadcast %cst_16 : f32 to vector<64x1xf32>
      %27 = arith.addf %25, %26 : vector<64x1xf32>
      %28 = math.rsqrt %27 : vector<64x1xf32>
      %29 = vector.broadcast %28 : vector<64x1xf32> to vector<64x128xf32>
      %30 = arith.mulf %20, %29 : vector<64x128xf32>
      %c0_17 = arith.constant 0 : index
      %c0_18 = arith.constant 0 : index
      %c0_19 = arith.constant 0 : index
      %31 = vector.load %arg5[%c0_17, %c0_18, %c0_19] : memref<1x1x128xf32, #tpu.memory_space<vmem>>, vector<1x1x128xf32>
      %32 = vector.shape_cast %31 : vector<1x1x128xf32> to vector<1x128xf32>
      %cst_20 = arith.constant 1.000000e+00 : f32
      %33 = vector.broadcast %cst_20 : f32 to vector<1x128xf32>
      %34 = arith.addf %33, %32 : vector<1x128xf32>
      %35 = vector.broadcast %34 : vector<1x128xf32> to vector<64x128xf32>
      %36 = arith.mulf %30, %35 : vector<64x128xf32>
      %c0_21 = arith.constant 0 : index
      %c0_22 = arith.constant 0 : index
      %c0_23 = arith.constant 0 : index
      %37 = vector.load %arg4[%c0_21, %c0_22, %c0_23] : memref<1x1x128xf32, #tpu.memory_space<vmem>>, vector<1x1x128xf32>
      %38 = vector.shape_cast %37 : vector<1x1x128xf32> to vector<1x128xf32>
      %39 = vector.broadcast %38 : vector<1x128xf32> to vector<64x128xf32>
      %40 = arith.addf %36, %39 : vector<64x128xf32>
      %41 = arith.truncf %40 : vector<64x128xf32> to vector<64x128xbf16>
      %c0_24 = arith.constant 0 : index
      %c0_25 = arith.constant 0 : index
      %42 = vector.load %arg9[%c0_24, %c0_25] : memref<64x128xbf16, #tpu.memory_space<vmem>>, vector<64x128xbf16>
      tpu.vector_store %arg9[%c0_24, %c0_25], %41 {strides = array<i32>} : memref<64x128xbf16, #tpu.memory_space<vmem>>, vector<64x128xbf16>,
    } else {
    }
    %c0 = arith.constant 0 : index
    %c0_1 = arith.constant 0 : index
    %3 = vector.load %arg9[%c0, %c0_1] : memref<64x128xbf16, #tpu.memory_space<vmem>>, vector<64x128xbf16>
    %c0_2 = arith.constant 0 : index
    %c0_3 = arith.constant 0 : index
    %4 = vector.load %arg6[%c0_2, %c0_3] : memref<128x384xbf16, #tpu.memory_space<vmem>>, vector<128x384xbf16>
    %cst = arith.constant dense<0.000000e+00> : vector<64x384xf32>
    %5 = tpu.matmul %3, %4, %cst {dimension_numbers = #tpu.dot_dimension_numbers<[1], [0], [0], [1], [0, 0, 1, 1], [], []>} : vector<64x128xbf16>, vector<128x384xbf16>, vector<64x384xf32> -> vector<64x384xf32>
    %c0_4 = arith.constant 0 : index
    %c0_5 = arith.constant 0 : index
    %6 = vector.load %arg7[%c0_4, %c0_5] : memref<1x384xf32, #tpu.memory_space<vmem>>, vector<1x384xf32>
    %7 = vector.broadcast %6 : vector<1x384xf32> to vector<64x384xf32>
    %8 = arith.addf %5, %7 : vector<64x384xf32>
    %9 = arith.truncf %8 : vector<64x384xf32> to vector<64x384xbf16>
    %c0_6 = arith.constant 0 : index
    %c0_7 = arith.constant 0 : index
    %c0_8 = arith.constant 0 : index
    %10 = vector.load %arg8[%c0_6, %c0_7, %c0_8] : memref<1x64x384xbf16, #tpu.memory_space<vmem>>, vector<1x64x384xbf16>
    %11 = vector.shape_cast %10 : vector<1x64x384xbf16> to vector<64x384xbf16>
    %12 = vector.shape_cast %9 : vector<64x384xbf16> to vector<1x64x384xbf16>
    tpu.vector_store %arg8[%c0_6, %c0_7, %c0_8], %12 {strides = array<i32>} : memref<1x64x384xbf16, #tpu.memory_space<vmem>>, vector<1x64x384xbf16>,
    return
  }
  func.func @transform_0(%arg0: i32, %arg1: i32, %arg2: i32) -> (i32, i32, i32) {
    %c0_i32 = arith.constant 0 : i32
    %c0_i32_0 = arith.constant 0 : i32
    return %arg0, %arg1, %c0_i32 : i32, i32, i32
  }
  func.func @transform_1(%arg0: i32, %arg1: i32, %arg2: i32) -> (i32, i32, i32) {
    %c0_i32 = arith.constant 0 : i32
    %c0_i32_0 = arith.constant 0 : i32
    %c0_i32_1 = arith.constant 0 : i32
    return %arg0, %c0_i32, %c0_i32_0 : i32, i32, i32
  }
  func.func @transform_2(%arg0: i32, %arg1: i32, %arg2: i32) -> (i32, i32, i32) {
    %c0_i32 = arith.constant 0 : i32
    %c0_i32_0 = arith.constant 0 : i32
    %c0_i32_1 = arith.constant 0 : i32
    return %arg0, %c0_i32, %c0_i32_0 : i32, i32, i32
  }
  func.func @transform_3(%arg0: i32, %arg1: i32, %arg2: i32) -> (i32, i32) {
    %c0_i32 = arith.constant 0 : i32
    %c0_i32_0 = arith.constant 0 : i32
    return %c0_i32, %arg2 : i32, i32
  }
  func.func @transform_4(%arg0: i32, %arg1: i32, %arg2: i32) -> (i32, i32) {
    %c0_i32 = arith.constant 0 : i32
    %c0_i32_0 = arith.constant 0 : i32
    return %c0_i32, %arg2 : i32, i32
  }
  func.func @transform_5(%arg0: i32, %arg1: i32, %arg2: i32) -> (i32, i32, i32) {
    %c0_i32 = arith.constant 0 : i32
    return %arg0, %arg1, %arg2 : i32, i32, i32
  }
}

module attributes {stable_mosaic.version = 11 : i64} {
  func.func @_attn_kernel(%arg0: i32, %arg1: memref<1x64x384xbf16, #tpu.memory_space<vmem>>, %arg2: memref<4x64x64xbf16, #tpu.memory_space<vmem>>, %arg3: memref<1x64x128xbf16, #tpu.memory_space<vmem>>, %arg4: memref<64x128xf32, #tpu.memory_space<vmem>>) attributes {dimension_semantics = [#tpu.dimension_semantics<parallel>], iteration_bounds = array<i64: 2>, scalar_prefetch = 0 : i64, scratch_operands = 1 : i64, tpu.core_type = #tpu.core_type<tc>, window_params = [{transform_indices = @transform_0, window_bounds = array<i64: 1, 64, 384>}, {pipeline_mode = #tpu.pipeline_mode<synchronous>, transform_indices = @transform_1, window_bounds = array<i64: 4, 64, 64>}, {transform_indices = @transform_2, window_bounds = array<i64: 1, 64, 128>}]} {
    %c0 = arith.constant 0 : index
    %c0_0 = arith.constant 0 : index
    %c0_1 = arith.constant 0 : index
    %0 = vector.load %arg1[%c0, %c0_0, %c0_1] : memref<1x64x384xbf16, #tpu.memory_space<vmem>>, vector<1x64x384xbf16>
    %1 = vector.shape_cast %0 : vector<1x64x384xbf16> to vector<64x384xbf16>
    %2 = vector.extract_strided_slice %1 {offsets = [0, 0], sizes = [64, 32], strides = [1, 1]} : vector<64x384xbf16> to vector<64x32xbf16>
    %cst = arith.constant 1.767580e-01 : bf16
    %3 = vector.broadcast %cst : bf16 to vector<64x32xbf16>
    %4 = arith.mulf %2, %3 : vector<64x32xbf16>
    %5 = vector.extract_strided_slice %1 {offsets = [0, 128], sizes = [64, 32], strides = [1, 1]} : vector<64x384xbf16> to vector<64x32xbf16>
    %6 = vector.extract_strided_slice %1 {offsets = [0, 256], sizes = [64, 32], strides = [1, 1]} : vector<64x384xbf16> to vector<64x32xbf16>
    %cst_2 = arith.constant dense<0.000000e+00> : vector<64x64xf32>
    %7 = tpu.matmul %4, %5, %cst_2 {dimension_numbers = #tpu.dot_dimension_numbers<[1], [1], [0], [0], [0, 0, 1, 0], [], []>} : vector<64x32xbf16>, vector<64x32xbf16>, vector<64x64xf32> -> vector<64x64xf32>
    %c0_3 = arith.constant 0 : index
    %c0_4 = arith.constant 0 : index
    %c0_5 = arith.constant 0 : index
    %8 = vector.load %arg2[%c0_3, %c0_4, %c0_5] : memref<4x64x64xbf16, #tpu.memory_space<vmem>>, vector<1x64x64xbf16>
    %9 = vector.shape_cast %8 : vector<1x64x64xbf16> to vector<64x64xbf16>
    %10 = arith.extf %9 : vector<64x64xbf16> to vector<64x64xf32>
    %11 = arith.addf %7, %10 : vector<64x64xf32>
    %cst_6 = arith.constant dense<0xFF800000> : vector<64xf32>
    %12 = vector.multi_reduction <maximumf>, %11, %cst_6 [1] : vector<64x64xf32> to vector<64xf32>
    %13 = vector.shape_cast %12 : vector<64xf32> to vector<64x1xf32>
    %14 = vector.broadcast %13 : vector<64x1xf32> to vector<64x64xf32>
    %15 = arith.subf %11, %14 : vector<64x64xf32>
    %16 = math.exp %15 : vector<64x64xf32>
    %cst_7 = arith.constant dense<0.000000e+00> : vector<64xf32>
    %17 = vector.multi_reduction <add>, %16, %cst_7 [1] : vector<64x64xf32> to vector<64xf32>
    %18 = vector.shape_cast %17 : vector<64xf32> to vector<64x1xf32>
    %19 = tpu.reciprocal %18 {approx = true} : vector<64x1xf32> -> vector<64x1xf32>
    %20 = vector.broadcast %19 : vector<64x1xf32> to vector<64x64xf32>
    %21 = arith.mulf %16, %20 : vector<64x64xf32>
    %22 = arith.truncf %21 : vector<64x64xf32> to vector<64x64xbf16>
    %cst_8 = arith.constant dense<0.000000e+00> : vector<64x32xf32>
    %23 = tpu.matmul %22, %6, %cst_8 {dimension_numbers = #tpu.dot_dimension_numbers<[1], [0], [0], [1], [0, 0, 1, 1], [], []>} : vector<64x64xbf16>, vector<64x32xbf16>, vector<64x32xf32> -> vector<64x32xf32>
    %c0_9 = arith.constant 0 : index
    %c0_10 = arith.constant 0 : index
    %24 = vector.load %arg4[%c0_9, %c0_10] : memref<64x128xf32, #tpu.memory_space<vmem>>, vector<64x32xf32>
    tpu.vector_store %arg4[%c0_9, %c0_10], %23 {strides = array<i32>} : memref<64x128xf32, #tpu.memory_space<vmem>>, vector<64x32xf32>,
    %25 = vector.extract_strided_slice %1 {offsets = [0, 32], sizes = [64, 32], strides = [1, 1]} : vector<64x384xbf16> to vector<64x32xbf16>
    %cst_11 = arith.constant 1.767580e-01 : bf16
    %26 = vector.broadcast %cst_11 : bf16 to vector<64x32xbf16>
    %27 = arith.mulf %25, %26 : vector<64x32xbf16>
    %28 = vector.extract_strided_slice %1 {offsets = [0, 160], sizes = [64, 32], strides = [1, 1]} : vector<64x384xbf16> to vector<64x32xbf16>
    %29 = vector.extract_strided_slice %1 {offsets = [0, 288], sizes = [64, 32], strides = [1, 1]} : vector<64x384xbf16> to vector<64x32xbf16>
    %cst_12 = arith.constant dense<0.000000e+00> : vector<64x64xf32>
    %30 = tpu.matmul %27, %28, %cst_12 {dimension_numbers = #tpu.dot_dimension_numbers<[1], [1], [0], [0], [0, 0, 1, 0], [], []>} : vector<64x32xbf16>, vector<64x32xbf16>, vector<64x64xf32> -> vector<64x64xf32>
    %c1 = arith.constant 1 : index
    %c0_13 = arith.constant 0 : index
    %c0_14 = arith.constant 0 : index
    %31 = vector.load %arg2[%c1, %c0_13, %c0_14] : memref<4x64x64xbf16, #tpu.memory_space<vmem>>, vector<1x64x64xbf16>
    %32 = vector.shape_cast %31 : vector<1x64x64xbf16> to vector<64x64xbf16>
    %33 = arith.extf %32 : vector<64x64xbf16> to vector<64x64xf32>
    %34 = arith.addf %30, %33 : vector<64x64xf32>
    %cst_15 = arith.constant dense<0xFF800000> : vector<64xf32>
    %35 = vector.multi_reduction <maximumf>, %34, %cst_15 [1] : vector<64x64xf32> to vector<64xf32>
    %36 = vector.shape_cast %35 : vector<64xf32> to vector<64x1xf32>
    %37 = vector.broadcast %36 : vector<64x1xf32> to vector<64x64xf32>
    %38 = arith.subf %34, %37 : vector<64x64xf32>
    %39 = math.exp %38 : vector<64x64xf32>
    %cst_16 = arith.constant dense<0.000000e+00> : vector<64xf32>
    %40 = vector.multi_reduction <add>, %39, %cst_16 [1] : vector<64x64xf32> to vector<64xf32>
    %41 = vector.shape_cast %40 : vector<64xf32> to vector<64x1xf32>
    %42 = tpu.reciprocal %41 {approx = true} : vector<64x1xf32> -> vector<64x1xf32>
    %43 = vector.broadcast %42 : vector<64x1xf32> to vector<64x64xf32>
    %44 = arith.mulf %39, %43 : vector<64x64xf32>
    %45 = arith.truncf %44 : vector<64x64xf32> to vector<64x64xbf16>
    %cst_17 = arith.constant dense<0.000000e+00> : vector<64x32xf32>
    %46 = tpu.matmul %45, %29, %cst_17 {dimension_numbers = #tpu.dot_dimension_numbers<[1], [0], [0], [1], [0, 0, 1, 1], [], []>} : vector<64x64xbf16>, vector<64x32xbf16>, vector<64x32xf32> -> vector<64x32xf32>
    %c0_18 = arith.constant 0 : index
    %c32 = arith.constant 32 : index
    %47 = vector.load %arg4[%c0_18, %c32] : memref<64x128xf32, #tpu.memory_space<vmem>>, vector<64x32xf32>
    tpu.vector_store %arg4[%c0_18, %c32], %46 {strides = array<i32>} : memref<64x128xf32, #tpu.memory_space<vmem>>, vector<64x32xf32>,
    %48 = vector.extract_strided_slice %1 {offsets = [0, 64], sizes = [64, 32], strides = [1, 1]} : vector<64x384xbf16> to vector<64x32xbf16>
    %cst_19 = arith.constant 1.767580e-01 : bf16
    %49 = vector.broadcast %cst_19 : bf16 to vector<64x32xbf16>
    %50 = arith.mulf %48, %49 : vector<64x32xbf16>
    %51 = vector.extract_strided_slice %1 {offsets = [0, 192], sizes = [64, 32], strides = [1, 1]} : vector<64x384xbf16> to vector<64x32xbf16>
    %52 = vector.extract_strided_slice %1 {offsets = [0, 320], sizes = [64, 32], strides = [1, 1]} : vector<64x384xbf16> to vector<64x32xbf16>
    %cst_20 = arith.constant dense<0.000000e+00> : vector<64x64xf32>
    %53 = tpu.matmul %50, %51, %cst_20 {dimension_numbers = #tpu.dot_dimension_numbers<[1], [1], [0], [0], [0, 0, 1, 0], [], []>} : vector<64x32xbf16>, vector<64x32xbf16>, vector<64x64xf32> -> vector<64x64xf32>
    %c2 = arith.constant 2 : index
    %c0_21 = arith.constant 0 : index
    %c0_22 = arith.constant 0 : index
    %54 = vector.load %arg2[%c2, %c0_21, %c0_22] : memref<4x64x64xbf16, #tpu.memory_space<vmem>>, vector<1x64x64xbf16>
    %55 = vector.shape_cast %54 : vector<1x64x64xbf16> to vector<64x64xbf16>
    %56 = arith.extf %55 : vector<64x64xbf16> to vector<64x64xf32>
    %57 = arith.addf %53, %56 : vector<64x64xf32>
    %cst_23 = arith.constant dense<0xFF800000> : vector<64xf32>
    %58 = vector.multi_reduction <maximumf>, %57, %cst_23 [1] : vector<64x64xf32> to vector<64xf32>
    %59 = vector.shape_cast %58 : vector<64xf32> to vector<64x1xf32>
    %60 = vector.broadcast %59 : vector<64x1xf32> to vector<64x64xf32>
    %61 = arith.subf %57, %60 : vector<64x64xf32>
    %62 = math.exp %61 : vector<64x64xf32>
    %cst_24 = arith.constant dense<0.000000e+00> : vector<64xf32>
    %63 = vector.multi_reduction <add>, %62, %cst_24 [1] : vector<64x64xf32> to vector<64xf32>
    %64 = vector.shape_cast %63 : vector<64xf32> to vector<64x1xf32>
    %65 = tpu.reciprocal %64 {approx = true} : vector<64x1xf32> -> vector<64x1xf32>
    %66 = vector.broadcast %65 : vector<64x1xf32> to vector<64x64xf32>
    %67 = arith.mulf %62, %66 : vector<64x64xf32>
    %68 = arith.truncf %67 : vector<64x64xf32> to vector<64x64xbf16>
    %cst_25 = arith.constant dense<0.000000e+00> : vector<64x32xf32>
    %69 = tpu.matmul %68, %52, %cst_25 {dimension_numbers = #tpu.dot_dimension_numbers<[1], [0], [0], [1], [0, 0, 1, 1], [], []>} : vector<64x64xbf16>, vector<64x32xbf16>, vector<64x32xf32> -> vector<64x32xf32>
    %c0_26 = arith.constant 0 : index
    %c64 = arith.constant 64 : index
    %70 = vector.load %arg4[%c0_26, %c64] : memref<64x128xf32, #tpu.memory_space<vmem>>, vector<64x32xf32>
    tpu.vector_store %arg4[%c0_26, %c64], %69 {strides = array<i32>} : memref<64x128xf32, #tpu.memory_space<vmem>>, vector<64x32xf32>,
    %71 = vector.extract_strided_slice %1 {offsets = [0, 96], sizes = [64, 32], strides = [1, 1]} : vector<64x384xbf16> to vector<64x32xbf16>
    %cst_27 = arith.constant 1.767580e-01 : bf16
    %72 = vector.broadcast %cst_27 : bf16 to vector<64x32xbf16>
    %73 = arith.mulf %71, %72 : vector<64x32xbf16>
    %74 = vector.extract_strided_slice %1 {offsets = [0, 224], sizes = [64, 32], strides = [1, 1]} : vector<64x384xbf16> to vector<64x32xbf16>
    %75 = vector.extract_strided_slice %1 {offsets = [0, 352], sizes = [64, 32], strides = [1, 1]} : vector<64x384xbf16> to vector<64x32xbf16>
    %cst_28 = arith.constant dense<0.000000e+00> : vector<64x64xf32>
    %76 = tpu.matmul %73, %74, %cst_28 {dimension_numbers = #tpu.dot_dimension_numbers<[1], [1], [0], [0], [0, 0, 1, 0], [], []>} : vector<64x32xbf16>, vector<64x32xbf16>, vector<64x64xf32> -> vector<64x64xf32>
    %c3 = arith.constant 3 : index
    %c0_29 = arith.constant 0 : index
    %c0_30 = arith.constant 0 : index
    %77 = vector.load %arg2[%c3, %c0_29, %c0_30] : memref<4x64x64xbf16, #tpu.memory_space<vmem>>, vector<1x64x64xbf16>
    %78 = vector.shape_cast %77 : vector<1x64x64xbf16> to vector<64x64xbf16>
    %79 = arith.extf %78 : vector<64x64xbf16> to vector<64x64xf32>
    %80 = arith.addf %76, %79 : vector<64x64xf32>
    %cst_31 = arith.constant dense<0xFF800000> : vector<64xf32>
    %81 = vector.multi_reduction <maximumf>, %80, %cst_31 [1] : vector<64x64xf32> to vector<64xf32>
    %82 = vector.shape_cast %81 : vector<64xf32> to vector<64x1xf32>
    %83 = vector.broadcast %82 : vector<64x1xf32> to vector<64x64xf32>
    %84 = arith.subf %80, %83 : vector<64x64xf32>
    %85 = math.exp %84 : vector<64x64xf32>
    %cst_32 = arith.constant dense<0.000000e+00> : vector<64xf32>
    %86 = vector.multi_reduction <add>, %85, %cst_32 [1] : vector<64x64xf32> to vector<64xf32>
    %87 = vector.shape_cast %86 : vector<64xf32> to vector<64x1xf32>
    %88 = tpu.reciprocal %87 {approx = true} : vector<64x1xf32> -> vector<64x1xf32>
    %89 = vector.broadcast %88 : vector<64x1xf32> to vector<64x64xf32>
    %90 = arith.mulf %85, %89 : vector<64x64xf32>
    %91 = arith.truncf %90 : vector<64x64xf32> to vector<64x64xbf16>
    %cst_33 = arith.constant dense<0.000000e+00> : vector<64x32xf32>
    %92 = tpu.matmul %91, %75, %cst_33 {dimension_numbers = #tpu.dot_dimension_numbers<[1], [0], [0], [1], [0, 0, 1, 1], [], []>} : vector<64x64xbf16>, vector<64x32xbf16>, vector<64x32xf32> -> vector<64x32xf32>
    %c0_34 = arith.constant 0 : index
    %c96 = arith.constant 96 : index
    %93 = vector.load %arg4[%c0_34, %c96] : memref<64x128xf32, #tpu.memory_space<vmem>>, vector<64x32xf32>
    tpu.vector_store %arg4[%c0_34, %c96], %92 {strides = array<i32>} : memref<64x128xf32, #tpu.memory_space<vmem>>, vector<64x32xf32>,
    %c0_35 = arith.constant 0 : index
    %c0_36 = arith.constant 0 : index
    %94 = vector.load %arg4[%c0_35, %c0_36] : memref<64x128xf32, #tpu.memory_space<vmem>>, vector<64x128xf32>
    %95 = arith.truncf %94 : vector<64x128xf32> to vector<64x128xbf16>
    %c0_37 = arith.constant 0 : index
    %c0_38 = arith.constant 0 : index
    %c0_39 = arith.constant 0 : index
    %96 = vector.load %arg3[%c0_37, %c0_38, %c0_39] : memref<1x64x128xbf16, #tpu.memory_space<vmem>>, vector<1x64x128xbf16>
    %97 = vector.shape_cast %96 : vector<1x64x128xbf16> to vector<64x128xbf16>
    %98 = vector.shape_cast %95 : vector<64x128xbf16> to vector<1x64x128xbf16>
    tpu.vector_store %arg3[%c0_37, %c0_38, %c0_39], %98 {strides = array<i32>} : memref<1x64x128xbf16, #tpu.memory_space<vmem>>, vector<1x64x128xbf16>,
    return
  }
  func.func @transform_0(%arg0: i32) -> (i32, i32, i32) {
    %c0_i32 = arith.constant 0 : i32
    %c0_i32_0 = arith.constant 0 : i32
    %c0_i32_1 = arith.constant 0 : i32
    return %arg0, %c0_i32, %c0_i32_0 : i32, i32, i32
  }
  func.func @transform_1(%arg0: i32) -> (i32, i32, i32) {
    %c0_i32 = arith.constant 0 : i32
    %c0_i32_0 = arith.constant 0 : i32
    %c0_i32_1 = arith.constant 0 : i32
    %c0_i32_2 = arith.constant 0 : i32
    return %c0_i32, %c0_i32_0, %c0_i32_1 : i32, i32, i32
  }
  func.func @transform_2(%arg0: i32) -> (i32, i32, i32) {
    %c0_i32 = arith.constant 0 : i32
    %c0_i32_0 = arith.constant 0 : i32
    %c0_i32_1 = arith.constant 0 : i32
    return %arg0, %c0_i32, %c0_i32_0 : i32, i32, i32
  }
}

module attributes {stable_mosaic.version = 11 : i64} {
  func.func @_mm_gate_res_kernel(%arg0: i32, %arg1: i32, %arg2: i32, %arg3: memref<1x64x128xbf16, #tpu.memory_space<vmem>>, %arg4: memref<128x128xbf16, #tpu.memory_space<vmem>>, %arg5: memref<1x128xf32, #tpu.memory_space<vmem>>, %arg6: memref<1x1x128xf32, #tpu.memory_space<vmem>>, %arg7: memref<1x64x128xf32, #tpu.memory_space<vmem>>, %arg8: memref<1x64x128xf32, #tpu.memory_space<vmem>>) attributes {dimension_semantics = [#tpu.dimension_semantics<parallel>, #tpu.dimension_semantics<parallel>, #tpu.dimension_semantics<parallel>], iteration_bounds = array<i64: 2, 1, 1>, scalar_prefetch = 0 : i64, scratch_operands = 0 : i64, tpu.core_type = #tpu.core_type<tc>, window_params = [{transform_indices = @transform_0, window_bounds = array<i64: 1, 64, 128>}, {transform_indices = @transform_1, window_bounds = array<i64: 128, 128>}, {transform_indices = @transform_2, window_bounds = array<i64: 1, 128>}, {transform_indices = @transform_3, window_bounds = array<i64: 1, 1, 128>}, {transform_indices = @transform_4, window_bounds = array<i64: 1, 64, 128>}, {transform_indices = @transform_5, window_bounds = array<i64: 1, 64, 128>}]} {
    %c0 = arith.constant 0 : index
    %c0_0 = arith.constant 0 : index
    %c0_1 = arith.constant 0 : index
    %0 = vector.load %arg3[%c0, %c0_0, %c0_1] : memref<1x64x128xbf16, #tpu.memory_space<vmem>>, vector<1x64x128xbf16>
    %1 = vector.shape_cast %0 : vector<1x64x128xbf16> to vector<64x128xbf16>
    %c0_2 = arith.constant 0 : index
    %c0_3 = arith.constant 0 : index
    %2 = vector.load %arg4[%c0_2, %c0_3] : memref<128x128xbf16, #tpu.memory_space<vmem>>, vector<128x128xbf16>
    %cst = arith.constant dense<0.000000e+00> : vector<64x128xf32>
    %3 = tpu.matmul %1, %2, %cst {dimension_numbers = #tpu.dot_dimension_numbers<[1], [0], [0], [1], [0, 0, 1, 1], [], []>} : vector<64x128xbf16>, vector<128x128xbf16>, vector<64x128xf32> -> vector<64x128xf32>
    %c0_4 = arith.constant 0 : index
    %c0_5 = arith.constant 0 : index
    %c0_6 = arith.constant 0 : index
    %4 = vector.load %arg7[%c0_4, %c0_5, %c0_6] : memref<1x64x128xf32, #tpu.memory_space<vmem>>, vector<1x64x128xf32>
    %5 = vector.shape_cast %4 : vector<1x64x128xf32> to vector<64x128xf32>
    %c0_7 = arith.constant 0 : index
    %c0_8 = arith.constant 0 : index
    %c0_9 = arith.constant 0 : index
    %6 = vector.load %arg6[%c0_7, %c0_8, %c0_9] : memref<1x1x128xf32, #tpu.memory_space<vmem>>, vector<1x1x128xf32>
    %7 = vector.shape_cast %6 : vector<1x1x128xf32> to vector<1x128xf32>
    %c0_10 = arith.constant 0 : index
    %c0_11 = arith.constant 0 : index
    %8 = vector.load %arg5[%c0_10, %c0_11] : memref<1x128xf32, #tpu.memory_space<vmem>>, vector<1x128xf32>
    %9 = vector.broadcast %8 : vector<1x128xf32> to vector<64x128xf32>
    %10 = arith.addf %3, %9 : vector<64x128xf32>
    %11 = vector.broadcast %7 : vector<1x128xf32> to vector<64x128xf32>
    %12 = arith.mulf %11, %10 : vector<64x128xf32>
    %13 = arith.addf %5, %12 : vector<64x128xf32>
    %c0_12 = arith.constant 0 : index
    %c0_13 = arith.constant 0 : index
    %c0_14 = arith.constant 0 : index
    %14 = vector.load %arg8[%c0_12, %c0_13, %c0_14] : memref<1x64x128xf32, #tpu.memory_space<vmem>>, vector<1x64x128xf32>
    %15 = vector.shape_cast %14 : vector<1x64x128xf32> to vector<64x128xf32>
    %16 = vector.shape_cast %13 : vector<64x128xf32> to vector<1x64x128xf32>
    tpu.vector_store %arg8[%c0_12, %c0_13, %c0_14], %16 {strides = array<i32>} : memref<1x64x128xf32, #tpu.memory_space<vmem>>, vector<1x64x128xf32>,
    return
  }
  func.func @transform_0(%arg0: i32, %arg1: i32, %arg2: i32) -> (i32, i32, i32) {
    %c0_i32 = arith.constant 0 : i32
    %c0_i32_0 = arith.constant 0 : i32
    return %arg0, %arg1, %c0_i32 : i32, i32, i32
  }
  func.func @transform_1(%arg0: i32, %arg1: i32, %arg2: i32) -> (i32, i32) {
    %c0_i32 = arith.constant 0 : i32
    %c0_i32_0 = arith.constant 0 : i32
    return %c0_i32, %arg2 : i32, i32
  }
  func.func @transform_2(%arg0: i32, %arg1: i32, %arg2: i32) -> (i32, i32) {
    %c0_i32 = arith.constant 0 : i32
    %c0_i32_0 = arith.constant 0 : i32
    return %c0_i32, %arg2 : i32, i32
  }
  func.func @transform_3(%arg0: i32, %arg1: i32, %arg2: i32) -> (i32, i32, i32) {
    %c0_i32 = arith.constant 0 : i32
    %c0_i32_0 = arith.constant 0 : i32
    return %arg0, %c0_i32, %arg2 : i32, i32, i32
  }
  func.func @transform_4(%arg0: i32, %arg1: i32, %arg2: i32) -> (i32, i32, i32) {
    %c0_i32 = arith.constant 0 : i32
    return %arg0, %arg1, %arg2 : i32, i32, i32
  }
  func.func @transform_5(%arg0: i32, %arg1: i32, %arg2: i32) -> (i32, i32, i32) {
    %c0_i32 = arith.constant 0 : i32
    return %arg0, %arg1, %arg2 : i32, i32, i32
  }
}

module attributes {stable_mosaic.version = 11 : i64} {
  func.func @_ln_mod_matmul_kernel(%arg0: i32, %arg1: i32, %arg2: i32, %arg3: memref<1x64x128xf32, #tpu.memory_space<vmem>>, %arg4: memref<1x1x128xf32, #tpu.memory_space<vmem>>, %arg5: memref<1x1x128xf32, #tpu.memory_space<vmem>>, %arg6: memref<128x512xbf16, #tpu.memory_space<vmem>>, %arg7: memref<1x512xf32, #tpu.memory_space<vmem>>, %arg8: memref<1x64x512xbf16, #tpu.memory_space<vmem>>, %arg9: memref<64x128xbf16, #tpu.memory_space<vmem>>) attributes {dimension_semantics = [#tpu.dimension_semantics<parallel>, #tpu.dimension_semantics<parallel>, #tpu.dimension_semantics<arbitrary>], iteration_bounds = array<i64: 2, 1, 1>, scalar_prefetch = 0 : i64, scratch_operands = 1 : i64, tpu.core_type = #tpu.core_type<tc>, window_params = [{transform_indices = @transform_0, window_bounds = array<i64: 1, 64, 128>}, {transform_indices = @transform_1, window_bounds = array<i64: 1, 1, 128>}, {transform_indices = @transform_2, window_bounds = array<i64: 1, 1, 128>}, {transform_indices = @transform_3, window_bounds = array<i64: 128, 512>}, {transform_indices = @transform_4, window_bounds = array<i64: 1, 512>}, {transform_indices = @transform_5, window_bounds = array<i64: 1, 64, 512>}]} {
    %c0_i32 = arith.constant 0 : i32
    %0 = arith.cmpi eq, %arg2, %c0_i32 : i32
    %1 = arith.extui %0 : i1 to i32
    %c0_i32_0 = arith.constant 0 : i32
    %2 = arith.cmpi ne, %1, %c0_i32_0 : i32
    scf.if %2 {
      %c0_13 = arith.constant 0 : index
      %c0_14 = arith.constant 0 : index
      %c0_15 = arith.constant 0 : index
      %26 = vector.load %arg3[%c0_13, %c0_14, %c0_15] : memref<1x64x128xf32, #tpu.memory_space<vmem>>, vector<1x64x128xf32>
      %27 = vector.shape_cast %26 : vector<1x64x128xf32> to vector<64x128xf32>
      %cst_16 = arith.constant dense<0.000000e+00> : vector<64xf32>
      %28 = vector.multi_reduction <add>, %27, %cst_16 [1] : vector<64x128xf32> to vector<64xf32>
      %29 = vector.shape_cast %28 : vector<64xf32> to vector<64x1xf32>
      %cst_17 = arith.constant 1.280000e+02 : f32
      %30 = vector.broadcast %cst_17 : f32 to vector<64x1xf32>
      %31 = arith.divf %29, %30 : vector<64x1xf32>
      %32 = vector.broadcast %31 : vector<64x1xf32> to vector<64x128xf32>
      %33 = arith.subf %27, %32 : vector<64x128xf32>
      %34 = arith.mulf %33, %33 : vector<64x128xf32>
      %cst_18 = arith.constant dense<0.000000e+00> : vector<64xf32>
      %35 = vector.multi_reduction <add>, %34, %cst_18 [1] : vector<64x128xf32> to vector<64xf32>
      %36 = vector.shape_cast %35 : vector<64xf32> to vector<64x1xf32>
      %cst_19 = arith.constant 1.280000e+02 : f32
      %37 = vector.broadcast %cst_19 : f32 to vector<64x1xf32>
      %38 = arith.divf %36, %37 : vector<64x1xf32>
      %cst_20 = arith.constant 9.99999997E-7 : f32
      %39 = vector.broadcast %cst_20 : f32 to vector<64x1xf32>
      %40 = arith.addf %38, %39 : vector<64x1xf32>
      %41 = math.rsqrt %40 : vector<64x1xf32>
      %42 = vector.broadcast %41 : vector<64x1xf32> to vector<64x128xf32>
      %43 = arith.mulf %33, %42 : vector<64x128xf32>
      %c0_21 = arith.constant 0 : index
      %c0_22 = arith.constant 0 : index
      %c0_23 = arith.constant 0 : index
      %44 = vector.load %arg5[%c0_21, %c0_22, %c0_23] : memref<1x1x128xf32, #tpu.memory_space<vmem>>, vector<1x1x128xf32>
      %45 = vector.shape_cast %44 : vector<1x1x128xf32> to vector<1x128xf32>
      %cst_24 = arith.constant 1.000000e+00 : f32
      %46 = vector.broadcast %cst_24 : f32 to vector<1x128xf32>
      %47 = arith.addf %46, %45 : vector<1x128xf32>
      %48 = vector.broadcast %47 : vector<1x128xf32> to vector<64x128xf32>
      %49 = arith.mulf %43, %48 : vector<64x128xf32>
      %c0_25 = arith.constant 0 : index
      %c0_26 = arith.constant 0 : index
      %c0_27 = arith.constant 0 : index
      %50 = vector.load %arg4[%c0_25, %c0_26, %c0_27] : memref<1x1x128xf32, #tpu.memory_space<vmem>>, vector<1x1x128xf32>
      %51 = vector.shape_cast %50 : vector<1x1x128xf32> to vector<1x128xf32>
      %52 = vector.broadcast %51 : vector<1x128xf32> to vector<64x128xf32>
      %53 = arith.addf %49, %52 : vector<64x128xf32>
      %54 = arith.truncf %53 : vector<64x128xf32> to vector<64x128xbf16>
      %c0_28 = arith.constant 0 : index
      %c0_29 = arith.constant 0 : index
      %55 = vector.load %arg9[%c0_28, %c0_29] : memref<64x128xbf16, #tpu.memory_space<vmem>>, vector<64x128xbf16>
      tpu.vector_store %arg9[%c0_28, %c0_29], %54 {strides = array<i32>} : memref<64x128xbf16, #tpu.memory_space<vmem>>, vector<64x128xbf16>,
    } else {
    }
    %c0 = arith.constant 0 : index
    %c0_1 = arith.constant 0 : index
    %3 = vector.load %arg9[%c0, %c0_1] : memref<64x128xbf16, #tpu.memory_space<vmem>>, vector<64x128xbf16>
    %c0_2 = arith.constant 0 : index
    %c0_3 = arith.constant 0 : index
    %4 = vector.load %arg6[%c0_2, %c0_3] : memref<128x512xbf16, #tpu.memory_space<vmem>>, vector<128x512xbf16>
    %cst = arith.constant dense<0.000000e+00> : vector<64x512xf32>
    %5 = tpu.matmul %3, %4, %cst {dimension_numbers = #tpu.dot_dimension_numbers<[1], [0], [0], [1], [0, 0, 1, 1], [], []>} : vector<64x128xbf16>, vector<128x512xbf16>, vector<64x512xf32> -> vector<64x512xf32>
    %c0_4 = arith.constant 0 : index
    %c0_5 = arith.constant 0 : index
    %6 = vector.load %arg7[%c0_4, %c0_5] : memref<1x512xf32, #tpu.memory_space<vmem>>, vector<1x512xf32>
    %7 = vector.broadcast %6 : vector<1x512xf32> to vector<64x512xf32>
    %8 = arith.addf %5, %7 : vector<64x512xf32>
    %cst_6 = arith.constant 5.000000e-01 : f32
    %9 = vector.broadcast %cst_6 : f32 to vector<64x512xf32>
    %10 = arith.mulf %9, %8 : vector<64x512xf32>
    %cst_7 = arith.constant 4.471500e-02 : f32
    %11 = vector.broadcast %cst_7 : f32 to vector<64x512xf32>
    %12 = arith.mulf %11, %8 : vector<64x512xf32>
    %13 = arith.mulf %12, %8 : vector<64x512xf32>
    %14 = arith.mulf %13, %8 : vector<64x512xf32>
    %15 = arith.addf %8, %14 : vector<64x512xf32>
    %cst_8 = arith.constant 0.797884583 : f32
    %16 = vector.broadcast %cst_8 : f32 to vector<64x512xf32>
    %17 = arith.mulf %16, %15 : vector<64x512xf32>
    %18 = math.tanh %17 : vector<64x512xf32>
    %cst_9 = arith.constant 1.000000e+00 : f32
    %19 = vector.broadcast %cst_9 : f32 to vector<64x512xf32>
    %20 = arith.addf %19, %18 : vector<64x512xf32>
    %21 = arith.mulf %10, %20 : vector<64x512xf32>
    %22 = arith.truncf %21 : vector<64x512xf32> to vector<64x512xbf16>
    %c0_10 = arith.constant 0 : index
    %c0_11 = arith.constant 0 : index
    %c0_12 = arith.constant 0 : index
    %23 = vector.load %arg8[%c0_10, %c0_11, %c0_12] : memref<1x64x512xbf16, #tpu.memory_space<vmem>>, vector<1x64x512xbf16>
    %24 = vector.shape_cast %23 : vector<1x64x512xbf16> to vector<64x512xbf16>
    %25 = vector.shape_cast %22 : vector<64x512xbf16> to vector<1x64x512xbf16>
    tpu.vector_store %arg8[%c0_10, %c0_11, %c0_12], %25 {strides = array<i32>} : memref<1x64x512xbf16, #tpu.memory_space<vmem>>, vector<1x64x512xbf16>,
    return
  }
  func.func @transform_0(%arg0: i32, %arg1: i32, %arg2: i32) -> (i32, i32, i32) {
    %c0_i32 = arith.constant 0 : i32
    %c0_i32_0 = arith.constant 0 : i32
    return %arg0, %arg1, %c0_i32 : i32, i32, i32
  }
  func.func @transform_1(%arg0: i32, %arg1: i32, %arg2: i32) -> (i32, i32, i32) {
    %c0_i32 = arith.constant 0 : i32
    %c0_i32_0 = arith.constant 0 : i32
    %c0_i32_1 = arith.constant 0 : i32
    return %arg0, %c0_i32, %c0_i32_0 : i32, i32, i32
  }
  func.func @transform_2(%arg0: i32, %arg1: i32, %arg2: i32) -> (i32, i32, i32) {
    %c0_i32 = arith.constant 0 : i32
    %c0_i32_0 = arith.constant 0 : i32
    %c0_i32_1 = arith.constant 0 : i32
    return %arg0, %c0_i32, %c0_i32_0 : i32, i32, i32
  }
  func.func @transform_3(%arg0: i32, %arg1: i32, %arg2: i32) -> (i32, i32) {
    %c0_i32 = arith.constant 0 : i32
    %c0_i32_0 = arith.constant 0 : i32
    return %c0_i32, %arg2 : i32, i32
  }
  func.func @transform_4(%arg0: i32, %arg1: i32, %arg2: i32) -> (i32, i32) {
    %c0_i32 = arith.constant 0 : i32
    %c0_i32_0 = arith.constant 0 : i32
    return %c0_i32, %arg2 : i32, i32
  }
  func.func @transform_5(%arg0: i32, %arg1: i32, %arg2: i32) -> (i32, i32, i32) {
    %c0_i32 = arith.constant 0 : i32
    return %arg0, %arg1, %arg2 : i32, i32, i32
  }
}

module attributes {stable_mosaic.version = 11 : i64} {
  func.func @_mm_gate_res_kernel(%arg0: i32, %arg1: i32, %arg2: i32, %arg3: memref<1x64x512xbf16, #tpu.memory_space<vmem>>, %arg4: memref<512x128xbf16, #tpu.memory_space<vmem>>, %arg5: memref<1x128xf32, #tpu.memory_space<vmem>>, %arg6: memref<1x1x128xf32, #tpu.memory_space<vmem>>, %arg7: memref<1x64x128xf32, #tpu.memory_space<vmem>>, %arg8: memref<1x64x128xf32, #tpu.memory_space<vmem>>) attributes {dimension_semantics = [#tpu.dimension_semantics<parallel>, #tpu.dimension_semantics<parallel>, #tpu.dimension_semantics<parallel>], iteration_bounds = array<i64: 2, 1, 1>, scalar_prefetch = 0 : i64, scratch_operands = 0 : i64, tpu.core_type = #tpu.core_type<tc>, window_params = [{transform_indices = @transform_0, window_bounds = array<i64: 1, 64, 512>}, {transform_indices = @transform_1, window_bounds = array<i64: 512, 128>}, {transform_indices = @transform_2, window_bounds = array<i64: 1, 128>}, {transform_indices = @transform_3, window_bounds = array<i64: 1, 1, 128>}, {transform_indices = @transform_4, window_bounds = array<i64: 1, 64, 128>}, {transform_indices = @transform_5, window_bounds = array<i64: 1, 64, 128>}]} {
    %c0 = arith.constant 0 : index
    %c0_0 = arith.constant 0 : index
    %c0_1 = arith.constant 0 : index
    %0 = vector.load %arg3[%c0, %c0_0, %c0_1] : memref<1x64x512xbf16, #tpu.memory_space<vmem>>, vector<1x64x512xbf16>
    %1 = vector.shape_cast %0 : vector<1x64x512xbf16> to vector<64x512xbf16>
    %c0_2 = arith.constant 0 : index
    %c0_3 = arith.constant 0 : index
    %2 = vector.load %arg4[%c0_2, %c0_3] : memref<512x128xbf16, #tpu.memory_space<vmem>>, vector<512x128xbf16>
    %cst = arith.constant dense<0.000000e+00> : vector<64x128xf32>
    %3 = tpu.matmul %1, %2, %cst {dimension_numbers = #tpu.dot_dimension_numbers<[1], [0], [0], [1], [0, 0, 1, 1], [], []>} : vector<64x512xbf16>, vector<512x128xbf16>, vector<64x128xf32> -> vector<64x128xf32>
    %c0_4 = arith.constant 0 : index
    %c0_5 = arith.constant 0 : index
    %c0_6 = arith.constant 0 : index
    %4 = vector.load %arg7[%c0_4, %c0_5, %c0_6] : memref<1x64x128xf32, #tpu.memory_space<vmem>>, vector<1x64x128xf32>
    %5 = vector.shape_cast %4 : vector<1x64x128xf32> to vector<64x128xf32>
    %c0_7 = arith.constant 0 : index
    %c0_8 = arith.constant 0 : index
    %c0_9 = arith.constant 0 : index
    %6 = vector.load %arg6[%c0_7, %c0_8, %c0_9] : memref<1x1x128xf32, #tpu.memory_space<vmem>>, vector<1x1x128xf32>
    %7 = vector.shape_cast %6 : vector<1x1x128xf32> to vector<1x128xf32>
    %c0_10 = arith.constant 0 : index
    %c0_11 = arith.constant 0 : index
    %8 = vector.load %arg5[%c0_10, %c0_11] : memref<1x128xf32, #tpu.memory_space<vmem>>, vector<1x128xf32>
    %9 = vector.broadcast %8 : vector<1x128xf32> to vector<64x128xf32>
    %10 = arith.addf %3, %9 : vector<64x128xf32>
    %11 = vector.broadcast %7 : vector<1x128xf32> to vector<64x128xf32>
    %12 = arith.mulf %11, %10 : vector<64x128xf32>
    %13 = arith.addf %5, %12 : vector<64x128xf32>
    %c0_12 = arith.constant 0 : index
    %c0_13 = arith.constant 0 : index
    %c0_14 = arith.constant 0 : index
    %14 = vector.load %arg8[%c0_12, %c0_13, %c0_14] : memref<1x64x128xf32, #tpu.memory_space<vmem>>, vector<1x64x128xf32>
    %15 = vector.shape_cast %14 : vector<1x64x128xf32> to vector<64x128xf32>
    %16 = vector.shape_cast %13 : vector<64x128xf32> to vector<1x64x128xf32>
    tpu.vector_store %arg8[%c0_12, %c0_13, %c0_14], %16 {strides = array<i32>} : memref<1x64x128xf32, #tpu.memory_space<vmem>>, vector<1x64x128xf32>,
    return
  }
  func.func @transform_0(%arg0: i32, %arg1: i32, %arg2: i32) -> (i32, i32, i32) {
    %c0_i32 = arith.constant 0 : i32
    %c0_i32_0 = arith.constant 0 : i32
    return %arg0, %arg1, %c0_i32 : i32, i32, i32
  }
  func.func @transform_1(%arg0: i32, %arg1: i32, %arg2: i32) -> (i32, i32) {
    %c0_i32 = arith.constant 0 : i32
    %c0_i32_0 = arith.constant 0 : i32
    return %c0_i32, %arg2 : i32, i32
  }
  func.func @transform_2(%arg0: i32, %arg1: i32, %arg2: i32) -> (i32, i32) {
    %c0_i32 = arith.constant 0 : i32
    %c0_i32_0 = arith.constant 0 : i32
    return %c0_i32, %arg2 : i32, i32
  }
  func.func @transform_3(%arg0: i32, %arg1: i32, %arg2: i32) -> (i32, i32, i32) {
    %c0_i32 = arith.constant 0 : i32
    %c0_i32_0 = arith.constant 0 : i32
    return %arg0, %c0_i32, %arg2 : i32, i32, i32
  }
  func.func @transform_4(%arg0: i32, %arg1: i32, %arg2: i32) -> (i32, i32, i32) {
    %c0_i32 = arith.constant 0 : i32
    return %arg0, %arg1, %arg2 : i32, i32, i32
  }
  func.func @transform_5(%arg0: i32, %arg1: i32, %arg2: i32) -> (i32, i32, i32) {
    %c0_i32 = arith.constant 0 : i32
    return %arg0, %arg1, %arg2 : i32, i32, i32
  }
}

module attributes {stable_mosaic.version = 11 : i64} {
  func.func @_skip_linear_kernel(%arg0: i32, %arg1: i32, %arg2: i32, %arg3: memref<1x64x128xf32, #tpu.memory_space<vmem>>, %arg4: memref<1x64x128xf32, #tpu.memory_space<vmem>>, %arg5: memref<128x128xbf16, #tpu.memory_space<vmem>>, %arg6: memref<128x128xbf16, #tpu.memory_space<vmem>>, %arg7: memref<1x128xf32, #tpu.memory_space<vmem>>, %arg8: memref<1x64x128xf32, #tpu.memory_space<vmem>>) attributes {dimension_semantics = [#tpu.dimension_semantics<parallel>, #tpu.dimension_semantics<parallel>, #tpu.dimension_semantics<parallel>], iteration_bounds = array<i64: 2, 1, 1>, scalar_prefetch = 0 : i64, scratch_operands = 0 : i64, tpu.core_type = #tpu.core_type<tc>, window_params = [{transform_indices = @transform_0, window_bounds = array<i64: 1, 64, 128>}, {transform_indices = @transform_1, window_bounds = array<i64: 1, 64, 128>}, {transform_indices = @transform_2, window_bounds = array<i64: 128, 128>}, {transform_indices = @transform_3, window_bounds = array<i64: 128, 128>}, {transform_indices = @transform_4, window_bounds = array<i64: 1, 128>}, {transform_indices = @transform_5, window_bounds = array<i64: 1, 64, 128>}]} {
    %c0 = arith.constant 0 : index
    %c0_0 = arith.constant 0 : index
    %c0_1 = arith.constant 0 : index
    %0 = vector.load %arg3[%c0, %c0_0, %c0_1] : memref<1x64x128xf32, #tpu.memory_space<vmem>>, vector<1x64x128xf32>
    %1 = vector.shape_cast %0 : vector<1x64x128xf32> to vector<64x128xf32>
    %2 = arith.truncf %1 : vector<64x128xf32> to vector<64x128xbf16>
    %c0_2 = arith.constant 0 : index
    %c0_3 = arith.constant 0 : index
    %3 = vector.load %arg5[%c0_2, %c0_3] : memref<128x128xbf16, #tpu.memory_space<vmem>>, vector<128x128xbf16>
    %cst = arith.constant dense<0.000000e+00> : vector<64x128xf32>
    %4 = tpu.matmul %2, %3, %cst {dimension_numbers = #tpu.dot_dimension_numbers<[1], [0], [0], [1], [0, 0, 1, 1], [], []>} : vector<64x128xbf16>, vector<128x128xbf16>, vector<64x128xf32> -> vector<64x128xf32>
    %c0_4 = arith.constant 0 : index
    %c0_5 = arith.constant 0 : index
    %c0_6 = arith.constant 0 : index
    %5 = vector.load %arg4[%c0_4, %c0_5, %c0_6] : memref<1x64x128xf32, #tpu.memory_space<vmem>>, vector<1x64x128xf32>
    %6 = vector.shape_cast %5 : vector<1x64x128xf32> to vector<64x128xf32>
    %7 = arith.truncf %6 : vector<64x128xf32> to vector<64x128xbf16>
    %c0_7 = arith.constant 0 : index
    %c0_8 = arith.constant 0 : index
    %8 = vector.load %arg6[%c0_7, %c0_8] : memref<128x128xbf16, #tpu.memory_space<vmem>>, vector<128x128xbf16>
    %cst_9 = arith.constant dense<0.000000e+00> : vector<64x128xf32>
    %9 = tpu.matmul %7, %8, %cst_9 {dimension_numbers = #tpu.dot_dimension_numbers<[1], [0], [0], [1], [0, 0, 1, 1], [], []>} : vector<64x128xbf16>, vector<128x128xbf16>, vector<64x128xf32> -> vector<64x128xf32>
    %10 = arith.addf %4, %9 : vector<64x128xf32>
    %c0_10 = arith.constant 0 : index
    %c0_11 = arith.constant 0 : index
    %11 = vector.load %arg7[%c0_10, %c0_11] : memref<1x128xf32, #tpu.memory_space<vmem>>, vector<1x128xf32>
    %12 = vector.broadcast %11 : vector<1x128xf32> to vector<64x128xf32>
    %13 = arith.addf %10, %12 : vector<64x128xf32>
    %c0_12 = arith.constant 0 : index
    %c0_13 = arith.constant 0 : index
    %c0_14 = arith.constant 0 : index
    %14 = vector.load %arg8[%c0_12, %c0_13, %c0_14] : memref<1x64x128xf32, #tpu.memory_space<vmem>>, vector<1x64x128xf32>
    %15 = vector.shape_cast %14 : vector<1x64x128xf32> to vector<64x128xf32>
    %16 = vector.shape_cast %13 : vector<64x128xf32> to vector<1x64x128xf32>
    tpu.vector_store %arg8[%c0_12, %c0_13, %c0_14], %16 {strides = array<i32>} : memref<1x64x128xf32, #tpu.memory_space<vmem>>, vector<1x64x128xf32>,
    return
  }
  func.func @transform_0(%arg0: i32, %arg1: i32, %arg2: i32) -> (i32, i32, i32) {
    %c0_i32 = arith.constant 0 : i32
    %c0_i32_0 = arith.constant 0 : i32
    return %arg0, %arg1, %c0_i32 : i32, i32, i32
  }
  func.func @transform_1(%arg0: i32, %arg1: i32, %arg2: i32) -> (i32, i32, i32) {
    %c0_i32 = arith.constant 0 : i32
    %c0_i32_0 = arith.constant 0 : i32
    return %arg0, %arg1, %c0_i32 : i32, i32, i32
  }
  func.func @transform_2(%arg0: i32, %arg1: i32, %arg2: i32) -> (i32, i32) {
    %c0_i32 = arith.constant 0 : i32
    %c0_i32_0 = arith.constant 0 : i32
    return %c0_i32, %arg2 : i32, i32
  }
  func.func @transform_3(%arg0: i32, %arg1: i32, %arg2: i32) -> (i32, i32) {
    %c0_i32 = arith.constant 0 : i32
    %c0_i32_0 = arith.constant 0 : i32
    return %c0_i32, %arg2 : i32, i32
  }
  func.func @transform_4(%arg0: i32, %arg1: i32, %arg2: i32) -> (i32, i32) {
    %c0_i32 = arith.constant 0 : i32
    %c0_i32_0 = arith.constant 0 : i32
    return %c0_i32, %arg2 : i32, i32
  }
  func.func @transform_5(%arg0: i32, %arg1: i32, %arg2: i32) -> (i32, i32, i32) {
    %c0_i32 = arith.constant 0 : i32
    return %arg0, %arg1, %arg2 : i32, i32, i32
  }
}

module attributes {stable_mosaic.version = 11 : i64} {
  func.func @_ln_mod_matmul_kernel(%arg0: i32, %arg1: i32, %arg2: i32, %arg3: memref<1x64x128xf32, #tpu.memory_space<vmem>>, %arg4: memref<1x1x128xf32, #tpu.memory_space<vmem>>, %arg5: memref<1x1x128xf32, #tpu.memory_space<vmem>>, %arg6: memref<128x128xbf16, #tpu.memory_space<vmem>>, %arg7: memref<1x128xf32, #tpu.memory_space<vmem>>, %arg8: memref<1x64x128xf32, #tpu.memory_space<vmem>>, %arg9: memref<64x128xbf16, #tpu.memory_space<vmem>>) attributes {dimension_semantics = [#tpu.dimension_semantics<parallel>, #tpu.dimension_semantics<parallel>, #tpu.dimension_semantics<arbitrary>], iteration_bounds = array<i64: 2, 1, 1>, scalar_prefetch = 0 : i64, scratch_operands = 1 : i64, tpu.core_type = #tpu.core_type<tc>, window_params = [{transform_indices = @transform_0, window_bounds = array<i64: 1, 64, 128>}, {transform_indices = @transform_1, window_bounds = array<i64: 1, 1, 128>}, {transform_indices = @transform_2, window_bounds = array<i64: 1, 1, 128>}, {transform_indices = @transform_3, window_bounds = array<i64: 128, 128>}, {transform_indices = @transform_4, window_bounds = array<i64: 1, 128>}, {transform_indices = @transform_5, window_bounds = array<i64: 1, 64, 128>}]} {
    %c0_i32 = arith.constant 0 : i32
    %0 = arith.cmpi eq, %arg2, %c0_i32 : i32
    %1 = arith.extui %0 : i1 to i32
    %c0_i32_0 = arith.constant 0 : i32
    %2 = arith.cmpi ne, %1, %c0_i32_0 : i32
    scf.if %2 {
      %c0_9 = arith.constant 0 : index
      %c0_10 = arith.constant 0 : index
      %c0_11 = arith.constant 0 : index
      %12 = vector.load %arg3[%c0_9, %c0_10, %c0_11] : memref<1x64x128xf32, #tpu.memory_space<vmem>>, vector<1x64x128xf32>
      %13 = vector.shape_cast %12 : vector<1x64x128xf32> to vector<64x128xf32>
      %cst_12 = arith.constant dense<0.000000e+00> : vector<64xf32>
      %14 = vector.multi_reduction <add>, %13, %cst_12 [1] : vector<64x128xf32> to vector<64xf32>
      %15 = vector.shape_cast %14 : vector<64xf32> to vector<64x1xf32>
      %cst_13 = arith.constant 1.280000e+02 : f32
      %16 = vector.broadcast %cst_13 : f32 to vector<64x1xf32>
      %17 = arith.divf %15, %16 : vector<64x1xf32>
      %18 = vector.broadcast %17 : vector<64x1xf32> to vector<64x128xf32>
      %19 = arith.subf %13, %18 : vector<64x128xf32>
      %20 = arith.mulf %19, %19 : vector<64x128xf32>
      %cst_14 = arith.constant dense<0.000000e+00> : vector<64xf32>
      %21 = vector.multi_reduction <add>, %20, %cst_14 [1] : vector<64x128xf32> to vector<64xf32>
      %22 = vector.shape_cast %21 : vector<64xf32> to vector<64x1xf32>
      %cst_15 = arith.constant 1.280000e+02 : f32
      %23 = vector.broadcast %cst_15 : f32 to vector<64x1xf32>
      %24 = arith.divf %22, %23 : vector<64x1xf32>
      %cst_16 = arith.constant 9.99999997E-7 : f32
      %25 = vector.broadcast %cst_16 : f32 to vector<64x1xf32>
      %26 = arith.addf %24, %25 : vector<64x1xf32>
      %27 = math.rsqrt %26 : vector<64x1xf32>
      %28 = vector.broadcast %27 : vector<64x1xf32> to vector<64x128xf32>
      %29 = arith.mulf %19, %28 : vector<64x128xf32>
      %c0_17 = arith.constant 0 : index
      %c0_18 = arith.constant 0 : index
      %c0_19 = arith.constant 0 : index
      %30 = vector.load %arg5[%c0_17, %c0_18, %c0_19] : memref<1x1x128xf32, #tpu.memory_space<vmem>>, vector<1x1x128xf32>
      %31 = vector.shape_cast %30 : vector<1x1x128xf32> to vector<1x128xf32>
      %cst_20 = arith.constant 1.000000e+00 : f32
      %32 = vector.broadcast %cst_20 : f32 to vector<1x128xf32>
      %33 = arith.addf %32, %31 : vector<1x128xf32>
      %34 = vector.broadcast %33 : vector<1x128xf32> to vector<64x128xf32>
      %35 = arith.mulf %29, %34 : vector<64x128xf32>
      %c0_21 = arith.constant 0 : index
      %c0_22 = arith.constant 0 : index
      %c0_23 = arith.constant 0 : index
      %36 = vector.load %arg4[%c0_21, %c0_22, %c0_23] : memref<1x1x128xf32, #tpu.memory_space<vmem>>, vector<1x1x128xf32>
      %37 = vector.shape_cast %36 : vector<1x1x128xf32> to vector<1x128xf32>
      %38 = vector.broadcast %37 : vector<1x128xf32> to vector<64x128xf32>
      %39 = arith.addf %35, %38 : vector<64x128xf32>
      %40 = arith.truncf %39 : vector<64x128xf32> to vector<64x128xbf16>
      %c0_24 = arith.constant 0 : index
      %c0_25 = arith.constant 0 : index
      %41 = vector.load %arg9[%c0_24, %c0_25] : memref<64x128xbf16, #tpu.memory_space<vmem>>, vector<64x128xbf16>
      tpu.vector_store %arg9[%c0_24, %c0_25], %40 {strides = array<i32>} : memref<64x128xbf16, #tpu.memory_space<vmem>>, vector<64x128xbf16>,
    } else {
    }
    %c0 = arith.constant 0 : index
    %c0_1 = arith.constant 0 : index
    %3 = vector.load %arg9[%c0, %c0_1] : memref<64x128xbf16, #tpu.memory_space<vmem>>, vector<64x128xbf16>
    %c0_2 = arith.constant 0 : index
    %c0_3 = arith.constant 0 : index
    %4 = vector.load %arg6[%c0_2, %c0_3] : memref<128x128xbf16, #tpu.memory_space<vmem>>, vector<128x128xbf16>
    %cst = arith.constant dense<0.000000e+00> : vector<64x128xf32>
    %5 = tpu.matmul %3, %4, %cst {dimension_numbers = #tpu.dot_dimension_numbers<[1], [0], [0], [1], [0, 0, 1, 1], [], []>} : vector<64x128xbf16>, vector<128x128xbf16>, vector<64x128xf32> -> vector<64x128xf32>
    %c0_4 = arith.constant 0 : index
    %c0_5 = arith.constant 0 : index
    %6 = vector.load %arg7[%c0_4, %c0_5] : memref<1x128xf32, #tpu.memory_space<vmem>>, vector<1x128xf32>
    %7 = vector.broadcast %6 : vector<1x128xf32> to vector<64x128xf32>
    %8 = arith.addf %5, %7 : vector<64x128xf32>
    %c0_6 = arith.constant 0 : index
    %c0_7 = arith.constant 0 : index
    %c0_8 = arith.constant 0 : index
    %9 = vector.load %arg8[%c0_6, %c0_7, %c0_8] : memref<1x64x128xf32, #tpu.memory_space<vmem>>, vector<1x64x128xf32>
    %10 = vector.shape_cast %9 : vector<1x64x128xf32> to vector<64x128xf32>
    %11 = vector.shape_cast %8 : vector<64x128xf32> to vector<1x64x128xf32>
    tpu.vector_store %arg8[%c0_6, %c0_7, %c0_8], %11 {strides = array<i32>} : memref<1x64x128xf32, #tpu.memory_space<vmem>>, vector<1x64x128xf32>,
    return
  }
  func.func @transform_0(%arg0: i32, %arg1: i32, %arg2: i32) -> (i32, i32, i32) {
    %c0_i32 = arith.constant 0 : i32
    %c0_i32_0 = arith.constant 0 : i32
    return %arg0, %arg1, %c0_i32 : i32, i32, i32
  }
  func.func @transform_1(%arg0: i32, %arg1: i32, %arg2: i32) -> (i32, i32, i32) {
    %c0_i32 = arith.constant 0 : i32
    %c0_i32_0 = arith.constant 0 : i32
    %c0_i32_1 = arith.constant 0 : i32
    return %arg0, %c0_i32, %c0_i32_0 : i32, i32, i32
  }
  func.func @transform_2(%arg0: i32, %arg1: i32, %arg2: i32) -> (i32, i32, i32) {
    %c0_i32 = arith.constant 0 : i32
    %c0_i32_0 = arith.constant 0 : i32
    %c0_i32_1 = arith.constant 0 : i32
    return %arg0, %c0_i32, %c0_i32_0 : i32, i32, i32
  }
  func.func @transform_3(%arg0: i32, %arg1: i32, %arg2: i32) -> (i32, i32) {
    %c0_i32 = arith.constant 0 : i32
    %c0_i32_0 = arith.constant 0 : i32
    return %c0_i32, %arg2 : i32, i32
  }
  func.func @transform_4(%arg0: i32, %arg1: i32, %arg2: i32) -> (i32, i32) {
    %c0_i32 = arith.constant 0 : i32
    %c0_i32_0 = arith.constant 0 : i32
    return %c0_i32, %arg2 : i32, i32
  }
  func.func @transform_5(%arg0: i32, %arg1: i32, %arg2: i32) -> (i32, i32, i32) {
    %c0_i32 = arith.constant 0 : i32
    return %arg0, %arg1, %arg2 : i32, i32, i32
  }
}

</mosaic_0001>

<bundles_post_ra>
// kernel: _lambda_.36
= control target key start
LH: loop header
LB: loop body
LE: loop exit
PB: predicated region body
PF: predicated region fallthrough
CT: control target
= control target key end

     0   :  { %s704_s15 = smov 0   ;;  %s706_s16 = smov 0   ;;  %s780_s0 = inlined_call_operand.vmem [shape: f32[2,64,16], index: 0, kind: input, shape index: {}]   ;;  %s781_s1 = inlined_call_operand.vmem [shape: bf16[16,128], index: 1, kind: input, shape index: {}]   ;;  %s782_s2 = inlined_call_operand.vmem [shape: f32[1,128], index: 2, kind: input, shape index: {}]   ;;  %s783_s3 = inlined_call_operand.vmem [shape: f32[1,64,128], index: 3, kind: input, shape index: {}]   ;;  %s784_s4 = inlined_call_operand.vmem [shape: f32[2,64,128], index: 4, kind: output, shape index: {}]  }
   0x1   :  { %s708_s17 = smov 0  }
   0x2 LB: > { %s33_s18 = sadd.s32 1, %s673_s16  ;;  %p598_p0 = scmp.ge.s32.totalorder %s677_s17, 1  ;;  %s677_s17 = sphi %s708_s17, %s14_s17   ;;  %s673_s16 = sphi %s706_s16, %s786_s16   ;;  %s669_s15 = sphi %s704_s15, %s785_s15  }
   0x3   : > { %p35_p1 = scmp.ge.s32.totalorder %s33_s18, 2  ;;  %p225_p2 = scmp.lt.s32.totalorder %s677_s17, 3 }
   0x5   : > { %s788_s18 = smov (%p35_p1, %s33_s18), 0  ;;  %p226_p3 = pnand %p598_p0, %p225_p2 }
   0x6   : > { %v654_v0 = vld [vmem:[%s781_s1] sm:$0xff] (!%p226_p3)   ;;  %p278_p4 = scmp.lt.s32.totalorder (!%p226_p3), %s669_s15, 1  ;;  %vm344_vm0 = vcmask (!%p226_p3), 130048   ;;  %v424_v15 = vld [vmem:[%s783_s3 + $0x10] sm:$0xff] (!%p226_p3)  ;;  %v425_v26 = vld [vmem:[%s783_s3 + $0x18] sm:$0xff] (!%p226_p3) }
   0x7   : > { %229 = sbr.rel (%p226_p3) target bundleno = 242 (0xf2), region = 36  ;;  %618 = vmatprep.subr.bf16.mxu0 (!%p226_p3), %v654_v0  ;;  %628 = vmatprep.subr.bf16.mxu1 (!%p226_p3), %v654_v0  ;;  %v603_v13 = vld [vmem:[%s782_s2] ss:$0 sm:$0xff] (!%p226_p3)  ;;  %v428_v18 = vld [vmem:[%s783_s3 + $0x30] sm:$0xff] (!%p226_p3)  ;;  %v429_v31 = vld [vmem:[%s783_s3 + $0x38] sm:$0xff] (!%p226_p3) }
   0x8   : > { %619 = vmatpush3.bf16.msra.mxu0 (!%p226_p3), %v654_v0  ;;  %629 = vmatpush3.bf16.msra.mxu1 (!%p226_p3), %v654_v0  ;;  %v422_v20 = vld [vmem:[%s783_s3] sm:$0xff] (!%p226_p3)  ;;  %v423_v33 = vld [vmem:[%s783_s3 + $0x8] sm:$0xff] (!%p226_p3) }
   0x9   : > { %v426_v24 = vld [vmem:[%s783_s3 + $0x20] sm:$0xff] (!%p226_p3)  ;;  %v427_v39 = vld [vmem:[%s783_s3 + $0x28] sm:$0xff] (!%p226_p3) }
   0xe   : > { %s790_s15 = smov (!%p278_p4, %s669_s15), 1 }
   0xf   : > { %s611_s21 = sshll.u32 %s790_s15, 6 }
  0x10   : > { %s285_s24 = scalar_lea.vmem %s780_s0, %s611_s21  ;;  %s746_s9 = scalar_lea.vmem %s784_s4, %s611_s21 }
  0x11   : > { %v317_v1 = vld [vmem:[%s285_s24] sm:$0xff]  ;;  %v318_v2 = vld [vmem:[%s285_s24 + $0x8] sm:$0xff]  ;;  %v319_v6 = vld [vmem:[%s285_s24 + $0x10] sm:$0xff] }
  0x12   : > { %v321_v3 = vld [vmem:[%s285_s24 + $0x20] sm:$0xff]  ;;  %v325_v4 = vpack.c.bf16 %v318_v2, %v317_v1  ;;  %v322_v5 = vld [vmem:[%s285_s24 + $0x28] sm:$0xff]  ;;  %v320_v7 = vld [vmem:[%s285_s24 + $0x18] sm:$0xff] }
  0x13   : > { %v327_v8 = vpack.c.bf16 %v322_v5, %v321_v3  ;;  %v326_v9 = vpack.c.bf16 %v320_v7, %v319_v6  ;;  %v323_v10 = vld [vmem:[%s285_s24 + $0x30] sm:$0xff]  ;;  %v324_v11 = vld [vmem:[%s285_s24 + $0x38] sm:$0xff] }
  0x14   : > { %620 = vmatprep.mubr.msk.bf16.mxu0 %vm344_vm0, %v325_v4  ;;  %v328_v12 = vpack.c.bf16 %v324_v11, %v323_v10 }
  0x15   : > { %624 = vmatprep.mubr.msk.bf16.mxu1 %vm344_vm0, %v327_v8  ;;  %621 = vmatmul.mubr.msk.bf16.vlgmr.msra.gmra.mrb[0].mxu0 %vm344_vm0, %v326_v9 }
  0x16   : > { %625 = vmatmul.mubr.msk.bf16.vlgmr.msra.gmra.mrb[0].mxu1 %vm344_vm0, %v328_v12 }
  0xe8   : > { %v622_v14 = vpop.f32.mrb[0].mxu0 }
  0xe9   : > { %v400_v16 = vadd.f32 %v622_v14, %v603_v13  ;;  %v626_v17 = vpop.f32.mrb[0].mxu1  ;;  %v391_v19 = vpop.f32.mrb[1].mxu0 }
  0xea   : > { %v416_v21 = vadd.f32 %v626_v17, %v603_v13  ;;  %v392_v22 = vadd.f32 %v603_v13, %v391_v19  ;;  %v407_v23 = vpop.f32.mrb[1].mxu1  ;;  %v623_v25 = vpop.f32.mrb[2].mxu0 }
  0xeb   : > { %v432_v27 = vadd.f32 %v424_v15, %v400_v16  ;;  %v408_v28 = vadd.f32 %v603_v13, %v407_v23  ;;  %v403_v29 = vadd.f32 %v623_v25, %v603_v13  ;;  %v627_v30 = vpop.f32.mrb[2].mxu1  ;;  %v394_v32 = vpop.f32.mrb[3].mxu0 }
  0xec   : > { %v436_v34 = vadd.f32 %v428_v18, %v416_v21  ;;  %v430_v35 = vadd.f32 %v422_v20, %v392_v22  ;;  %v419_v36 = vadd.f32 %v627_v30, %v603_v13  ;;  %v395_v37 = vadd.f32 %v603_v13, %v394_v32  ;;  %v410_v38 = vpop.f32.mrb[3].mxu1 }
  0xed   : > { %440 = vst [vmem:[%s746_s9 + $0x10] sm:$0xff] %v432_v27  ;;  %v434_v40 = vadd.f32 %v426_v24, %v408_v28  ;;  %v433_v41 = vadd.f32 %v425_v26, %v403_v29  ;;  %v411_v42 = vadd.f32 %v603_v13, %v410_v38 }
  0xee   : > { %444 = vst [vmem:[%s746_s9 + $0x30] sm:$0xff] %v436_v34  ;;  %438 = vst [vmem:[%s746_s9] sm:$0xff] %v430_v35  ;;  %v437_v43 = vadd.f32 %v429_v31, %v419_v36  ;;  %v431_v44 = vadd.f32 %v423_v33, %v395_v37 }
  0xef   : > { %442 = vst [vmem:[%s746_s9 + $0x20] sm:$0xff] %v434_v40  ;;  %441 = vst [vmem:[%s746_s9 + $0x18] sm:$0xff] %v433_v41  ;;  %v435_v45 = vadd.f32 %v427_v39, %v411_v42 }
  0xf0   : > { %445 = vst [vmem:[%s746_s9 + $0x38] sm:$0xff] %v437_v43  ;;  %439 = vst [vmem:[%s746_s9 + $0x8] sm:$0xff] %v431_v44 }
  0xf1   : > { %443 = vst [vmem:[%s746_s9 + $0x28] sm:$0xff] %v435_v45 }
  0xf2 PF: > { %s14_s17 = sadd.s32 1, %s677_s17   ;;  %s785_s15 = smov %s673_s16 }
  0xf3   : > { %p11_p5 = scmp.ge.s32.totalorder %s14_s17, 4   ;;  %s786_s16 = smov %s788_s18 }
  0xf5   :  { %13 = sbr.rel (!%p11_p5) target bundleno = 2 (0x2), region = 75 }

// kernel: _lambda_.37
= control target key start
LH: loop header
LB: loop body
LE: loop exit
PB: predicated region body
PF: predicated region fallthrough
CT: control target
= control target key end

     0   :  { %s1298_s18 = smov 0   ;;  %s1300_s19 = smov 0   ;;  %s1509_s0 = inlined_call_operand.vmem [shape: f32[2,64,128], index: 0, kind: input, shape index: {}]   ;;  %s1510_s1 = inlined_call_operand.vmem [shape: f32[2,1,128], index: 1, kind: input, shape index: {}]   ;;  %s1511_s2 = inlined_call_operand.vmem [shape: f32[2,1,128], index: 2, kind: input, shape index: {}]   ;;  %s1512_s3 = inlined_call_operand.vmem [shape: bf16[128,384], index: 3, kind: input, shape index: {}]   ;;  %s1513_s4 = inlined_call_operand.vmem [shape: f32[1,384], index: 4, kind: input, shape index: {}]   ;;  %s1514_s5 = inlined_call_operand.vmem [shape: bf16[2,64,384], index: 5, kind: output, shape index: {}]  }
   0x1   :  { %s1302_s20 = smov 0  }
   0x2 LB: > { %s34_s21 = sadd.s32 1, %s1261_s19  ;;  %p1069_p0 = scmp.ge.s32.totalorder %s1265_s20, 1  ;;  %s1265_s20 = sphi %s1302_s20, %s15_s20   ;;  %s1261_s19 = sphi %s1300_s19, %s1516_s19   ;;  %s1257_s18 = sphi %s1298_s18, %s1515_s18  }
   0x3   : > { %p36_p1 = scmp.ge.s32.totalorder %s34_s21, 2  ;;  %p254_p2 = scmp.lt.s32.totalorder %s1265_s20, 3 }
   0x5   : > { %s1518_s21 = smov (%p36_p1, %s34_s21), 0  ;;  %p255_p3 = pnand %p1069_p0, %p254_p2 }
   0x6   : > { %p311_p4 = scmp.lt.s32.totalorder (!%p255_p3), %s1257_s18, 1  ;;  %v1195_v8 = vld [vmem:[%s1512_s3 + $0x4] ss:$12 sps:$4 sm:$0xff] (!%p255_p3)   ;;  %v1197_v9 = vld [vmem:[%s1512_s3] ss:$12 sps:$4 sm:$0xff] (!%p255_p3)   ;;  %v1267_v63 = vmov (!%p255_p3), 0  }
   0x7   : > { %258 = sbr.rel (%p255_p3) target bundleno = 579 (0x243), region = 40  ;;  %v1198_v10 = vld [vmem:[%s1512_s3 + $0x1c] ss:$12 sps:$4 sm:$0xff] (!%p255_p3)   ;;  %675 = vmatprep.subr.bf16.mxu0 (!%p255_p3), %v1195_v8  ;;  %v1201_v44 = vld [vmem:[%s1512_s3 + $0x18] ss:$12 sps:$4 sm:$0xff] (!%p255_p3)   ;;  %707 = vmatprep.mubr.bf16.mxu0 (!%p255_p3), %v1267_v63 }
   0x8   : > { %v1200_v11 = vld [vmem:[%s1512_s3 + $0x8] ss:$12 sps:$4 sm:$0xff] (!%p255_p3)   ;;  %676 = vmatpush1.bf16.msra.mxu0 (!%p255_p3), %v1197_v9  ;;  %v1204_v46 = vld [vmem:[%s1512_s3 + $0x20] ss:$12 sps:$4 sm:$0xff] (!%p255_p3)   ;;  %v1205_v47 = vld [vmem:[%s1512_s3 + $0x30] ss:$12 sps:$4 sm:$0xff] (!%p255_p3)  }
   0x9   : > { %1145 = vmatprep.subr.bf16.mxu1 (!%p255_p3), %v1200_v11  ;;  %677 = vmatprep.subr.bf16.mxu0 (!%p255_p3), %v1198_v10  ;;  %v1202_v45 = vld [vmem:[%s1512_s3 + $0x34] ss:$12 sps:$4 sm:$0xff] (!%p255_p3)   ;;  %v1206_v48 = vld [vmem:[%s1512_s3 + $0x4c] ss:$12 sps:$4 sm:$0xff] (!%p255_p3)   ;;  %v1210_v51 = vld [vmem:[%s1512_s3 + $0x64] ss:$12 sps:$4 sm:$0xff] (!%p255_p3)  }
   0xa   : > { %1146 = vmatpush3.bf16.msra.mxu1 (!%p255_p3), %v1200_v11  ;;  %v1208_v49 = vld [vmem:[%s1512_s3 + $0x38] ss:$12 sps:$4 sm:$0xff] (!%p255_p3)   ;;  %v1209_v50 = vld [vmem:[%s1512_s3 + $0x48] ss:$12 sps:$4 sm:$0xff] (!%p255_p3)   ;;  %v1212_v52 = vld [vmem:[%s1512_s3 + $0x50] ss:$12 sps:$4 sm:$0xff] (!%p255_p3)  }
   0xb   : > { %1147 = vmatprep.subr.bf16.mxu1 (!%p255_p3), %v1204_v46  ;;  %v1213_v53 = vld [vmem:[%s1512_s3 + $0x60] ss:$12 sps:$4 sm:$0xff] (!%p255_p3)   ;;  %v1214_v54 = vld [vmem:[%s1512_s3 + $0x7c] ss:$12 sps:$4 sm:$0xff] (!%p255_p3)   ;;  %v1217_v56 = vld [vmem:[%s1512_s3 + $0x78] ss:$12 sps:$4 sm:$0xff] (!%p255_p3)  }
   0xc   : > { %678 = vmatpush1.bf16.msra.mxu0 (!%p255_p3), %v1201_v44  ;;  %v1216_v55 = vld [vmem:[%s1512_s3 + $0x68] ss:$12 sps:$4 sm:$0xff] (!%p255_p3)   ;;  %v1220_v58 = vld [vmem:[%s1512_s3 + $0x80] ss:$12 sps:$4 sm:$0xff] (!%p255_p3)   ;;  %v1221_v59 = vld [vmem:[%s1512_s3 + $0x90] ss:$12 sps:$4 sm:$0xff] (!%p255_p3)  }
   0xd   : > { %679 = vmatprep.subr.bf16.mxu0 (!%p255_p3), %v1202_v45  ;;  %v1218_v57 = vld [vmem:[%s1512_s3 + $0x94] ss:$12 sps:$4 sm:$0xff] (!%p255_p3)   ;;  %v1222_v60 = vld [vmem:[%s1512_s3 + $0xac] ss:$12 sps:$4 sm:$0xff] (!%p255_p3)  }
   0xe   : > { %s1520_s18 = smov (!%p311_p4, %s1257_s18), 1  ;;  %1148 = vmatpush3.bf16.msra.mxu1 %v1204_v46  ;;  %v1224_v61 = vld [vmem:[%s1512_s3 + $0x98] ss:$12 sps:$4 sm:$0xff]   ;;  %v1225_v62 = vld [vmem:[%s1512_s3 + $0xa8] ss:$12 sps:$4 sm:$0xff]  }
   0xf   : > { %s1116_s22 = sshll.u32 %s1520_s18, 6  ;;  %1149 = vmatprep.subr.bf16.mxu1 %v1208_v49  ;;  %s325_s9 = scalar_lea.vmem %s1511_s2, %s1520_s18 }
  0x10   : > { %s318_s25 = scalar_lea.vmem %s1509_s0, %s1116_s22  ;;  %680 = vmatpush1.bf16.msra.mxu0 %v1205_v47  ;;  %s322_s12 = scalar_lea.vmem %s1510_s1, %s1520_s18 }
  0x11   : > { %v358_v0 = vld [vmem:[%s318_s25] sm:$0xff]  ;;  %v360_v1 = vld [vmem:[%s318_s25 + $0x10] sm:$0xff]  ;;  %v359_v2 = vld [vmem:[%s318_s25 + $0x8] sm:$0xff]  ;;  %681 = vmatprep.subr.bf16.mxu0 %v1206_v48  ;;  %s1169_s15 = smul.u32 96, %s1520_s18 }
  0x12   : > { %366 = vadd.xlane.f32.xlu0 %v358_v0  ;;  %370 = vadd.xlane.f32.xlu1 %v360_v1  ;;  %v361_v3 = vld [vmem:[%s318_s25 + $0x18] sm:$0xff]  ;;  %v362_v4 = vld [vmem:[%s318_s25 + $0x20] sm:$0xff]  ;;  %v363_v5 = vld [vmem:[%s318_s25 + $0x28] sm:$0xff] }
  0x13   : > { %v364_v6 = vld [vmem:[%s318_s25 + $0x30] sm:$0xff]  ;;  %v365_v7 = vld [vmem:[%s318_s25 + $0x38] sm:$0xff]  ;;  %1150 = vmatpush3.bf16.msra.mxu1 %v1208_v49  ;;  %v1073_v45 = vld [vmem:[%s322_s12] ss:$0 sm:$0xff]  ;;  %s1468_s22 = scalar_lea.vmem %s1514_s5, %s1169_s15 }
  0x14   : > { %682 = vmatpush1.bf16.msra.mxu0 %v1209_v50  ;;  %1151 = vmatprep.subr.bf16.mxu1 %v1212_v52 }
  0x15   : > { %683 = vmatprep.subr.bf16.mxu0 %v1210_v51 }
  0x16   : > { %368 = vadd.xlane.f32.xlu0 %v359_v2  ;;  %372 = vadd.xlane.f32.xlu1 %v361_v3 }
  0x17   : > { %1152 = vmatpush3.bf16.msra.mxu1 %v1212_v52 }
  0x18   : > { %684 = vmatpush1.bf16.msra.mxu0 %v1213_v53  ;;  %1153 = vmatprep.subr.bf16.mxu1 %v1216_v55 }
  0x19   : > { %685 = vmatprep.subr.bf16.mxu0 %v1214_v54 }
  0x1a   : > { %374 = vadd.xlane.f32.xlu0 %v362_v4  ;;  %376 = vadd.xlane.f32.xlu1 %v363_v5 }
  0x1b   : > { %1154 = vmatpush3.bf16.msra.mxu1 %v1216_v55 }
  0x1c   : > { %686 = vmatpush1.bf16.msra.mxu0 %v1217_v56  ;;  %1155 = vmatprep.subr.bf16.mxu1 %v1220_v58 }
  0x1d   : > { %687 = vmatprep.subr.bf16.mxu0 %v1218_v57 }
  0x1e   : > { %378 = vadd.xlane.f32.xlu0 %v364_v6  ;;  %380 = vadd.xlane.f32.xlu1 %v365_v7 }
  0x1f   : > { %1156 = vmatpush3.bf16.msra.mxu1 %v1220_v58 }
  0x20   : > { %688 = vmatpush1.bf16.msra.mxu0 %v1221_v59  ;;  %1157 = vmatprep.subr.bf16.mxu1 %v1224_v61 }
  0x21   : > { %689 = vmatprep.subr.bf16.mxu0 %v1222_v60 }
  0x23   : > { %1158 = vmatpush3.bf16.msra.mxu1 %v1224_v61 }
  0x24   : > { %690 = vmatpush1.bf16.msra.mxu0 %v1225_v62 }
  0x9f   : > { %v367_v12 = vpop.xlane.xlu0 %366  ;;  %v371_v13 = vpop.xlane.xlu1 %370 }
  0xa0   : > { %v383_v14 = vmul.f32 0.0078125, %v367_v12  ;;  %v385_v15 = vmul.f32 0.0078125, %v371_v13 }
  0xa2   : > { %v1334_v16 = vsub.f32 %v358_v0, %v383_v14  ;;  %v1336_v17 = vsub.f32 %v360_v1, %v385_v15  ;;  %v1226_v0 = vld [vmem:[%s1512_s3 + $0xb0] ss:$12 sps:$4 sm:$0xff]   ;;  %v455_v14 = vld [vmem:[%s325_s9] sm:$0x1] }
  0xa3   : > { %v369_v18 = vpop.xlane.xlu0 %368  ;;  %v373_v19 = vpop.xlane.xlu1 %372  ;;  %1159 = vmatprep.subr.bf16.mxu1 %v1226_v0 }
  0xa4   : > { %v384_v20 = vmul.f32 0.0078125, %v369_v18  ;;  %v399_v21 = vmul.f32 %v1334_v16, %v1334_v16  ;;  %v386_v22 = vmul.f32 0.0078125, %v373_v19  ;;  %v401_v25 = vmul.f32 %v1336_v17, %v1336_v17  ;;  %1160 = vmatpush3.bf16.msra.mxu1 %v1226_v0 }
  0xa6   : > { %v1340_v23 = vsub.f32 %v359_v2, %v384_v20  ;;  %407 = vadd.xlane.f32.xlu0 %v399_v21  ;;  %v1342_v24 = vsub.f32 %v361_v3, %v386_v22  ;;  %v456_v21 = vadd.f32 1.0, %v455_v14 }
  0xa7   : > { %v375_v26 = vpop.xlane.xlu0 %374  ;;  %v377_v27 = vpop.xlane.xlu1 %376 }
  0xa8   : > { %v387_v28 = vmul.f32 0.0078125, %v375_v26  ;;  %v400_v29 = vmul.f32 %v1340_v23, %v1340_v23  ;;  %v388_v30 = vmul.f32 0.0078125, %v377_v27  ;;  %v402_v33 = vmul.f32 %v1342_v24, %v1342_v24 }
  0xaa   : > { %v1348_v31 = vsub.f32 %v362_v4, %v387_v28  ;;  %411 = vadd.xlane.f32.xlu0 %v401_v25  ;;  %409 = vadd.xlane.f32.xlu1 %v400_v29  ;;  %v1350_v32 = vsub.f32 %v363_v5, %v388_v30  ;;  %v458_v4 = vlaneseq }
  0xab   : > { %v379_v34 = vpop.xlane.xlu0 %378  ;;  %v381_v35 = vpop.xlane.xlu1 %380 }
  0xac   : > { %v389_v36 = vmul.f32 0.0078125, %v379_v34  ;;  %v403_v37 = vmul.f32 %v1348_v31, %v1348_v31  ;;  %v390_v38 = vmul.f32 0.0078125, %v381_v35  ;;  %v404_v41 = vmul.f32 %v1350_v32, %v1350_v32 }
  0xad   : > { %v1431_v11 = vshrl.u32 %v458_v4, 7 }
  0xae   : > { %v1356_v39 = vsub.f32 %v364_v6, %v389_v36  ;;  %413 = vadd.xlane.f32.xlu1 %v402_v33  ;;  %415 = vadd.xlane.f32.xlu0 %v403_v37  ;;  %v1358_v40 = vsub.f32 %v365_v7, %v390_v38 }
  0xaf   : > { %v460_v22 = vsub.s32 0, %v1431_v11 }
  0xb0   : > { %v405_v42 = vmul.f32 %v1356_v39, %v1356_v39  ;;  %v406_v43 = vmul.f32 %v1358_v40, %v1358_v40 }
  0xb1   : > { %v461_v34 = vrot.slane %v456_v21, %v460_v22 }
  0xb2   : > { %417 = vadd.xlane.f32.xlu1 %v404_v41  ;;  %419 = vadd.xlane.f32.xlu0 %v405_v42 }
  0xb6   : > { %421 = vadd.xlane.f32.xlu1 %v406_v43 }
 0x133   : > { %v408_v1 = vpop.xlane.xlu0 %407 }
 0x134   : > { %v423_v2 = vmul.f32 0.0078125, %v408_v1 }
 0x136   : > { %v431_v3 = vadd.f32 1e-06, %v423_v2 }
 0x137   : > { %v410_v5 = vpop.xlane.xlu1 %409  ;;  %v412_v6 = vpop.xlane.xlu0 %411 }
 0x138   : > { %1227 = vrsqrt.f32 %v431_v3  ;;  %v424_v7 = vmul.f32 0.0078125, %v410_v5  ;;  %v425_v8 = vmul.f32 0.0078125, %v412_v6 }
 0x13a   : > { %v432_v9 = vadd.f32 1e-06, %v424_v7  ;;  %v433_v10 = vadd.f32 1e-06, %v425_v8  ;;  %v542_v8 = vsub.s32 2, %v1431_v11 }
 0x13b   : > { %v414_v12 = vpop.xlane.xlu1 %413  ;;  %v416_v13 = vpop.xlane.xlu0 %415 }
 0x13c   : > { %1229 = vrsqrt.f32 %v432_v9  ;;  %v426_v15 = vmul.f32 0.0078125, %v414_v12  ;;  %v427_v18 = vmul.f32 0.0078125, %v416_v13 }
 0x13d   : > { %1231 = vrsqrt.f32 %v433_v10 }
 0x13e   : > { %v434_v19 = vadd.f32 1e-06, %v426_v15  ;;  %v435_v20 = vadd.f32 1e-06, %v427_v18 }
 0x13f   : > { %v418_v25 = vpop.xlane.xlu1 %417  ;;  %v420_v26 = vpop.xlane.xlu0 %419 }
 0x140   : > { %1233 = vrsqrt.f32 %v434_v19  ;;  %v428_v27 = vmul.f32 0.0078125, %v418_v25  ;;  %v429_v28 = vmul.f32 0.0078125, %v420_v26 }
 0x141   : > { %1235 = vrsqrt.f32 %v435_v20 }
 0x142   : > { %v1228_v29 = vpop.eup %1227  ;;  %v436_v30 = vadd.f32 1e-06, %v428_v27  ;;  %v437_v33 = vadd.f32 1e-06, %v429_v28 }
 0x143   : > { %v422_v35 = vpop.xlane.xlu1 %421  ;;  %v447_v36 = vmul.f32 %v1228_v29, %v1334_v16 }
 0x144   : > { %1237 = vrsqrt.f32 %v436_v30  ;;  %v430_v37 = vmul.f32 0.0078125, %v422_v35 }
 0x145   : > { %1239 = vrsqrt.f32 %v437_v33  ;;  %v463_v44 = vmul.f32 %v461_v34, %v447_v36 }
 0x146   : > { %v1230_v38 = vpop.eup %1229  ;;  %v438_v41 = vadd.f32 1e-06, %v430_v37 }
 0x147   : > { %v1232_v42 = vpop.eup %1231  ;;  %v448_v43 = vmul.f32 %v1230_v38, %v1340_v23  ;;  %v478_v50 = vadd.f32 %v1073_v45, %v463_v44 }
 0x148   : > { %1241 = vrsqrt.f32 %v438_v41  ;;  %v449_v46 = vmul.f32 %v1232_v42, %v1336_v17 }
 0x149   : > { %v464_v47 = vmul.f32 %v461_v34, %v448_v43 }
 0x14a   : > { %v1234_v48 = vpop.eup %1233  ;;  %v465_v16 = vmul.f32 %v461_v34, %v449_v46 }
 0x14b   : > { %v1236_v49 = vpop.eup %1235  ;;  %v479_v51 = vadd.f32 %v1073_v45, %v464_v47  ;;  %v450_v52 = vmul.f32 %v1234_v48, %v1342_v24 }
 0x14c   : > { %v451_v53 = vmul.f32 %v1236_v49, %v1348_v31  ;;  %v480_v57 = vadd.f32 %v1073_v45, %v465_v16 }
 0x14d   : > { %v486_v54 = vpack.c.bf16 %v479_v51, %v478_v50  ;;  %v466_v55 = vmul.f32 %v461_v34, %v450_v52 }
 0x14e   : > { %v1238_v56 = vpop.eup %1237  ;;  %v467_v59 = vmul.f32 %v461_v34, %v451_v53 }
 0x14f   : > { %v1240_v23 = vpop.eup %1239  ;;  %708 = vmatmul.mubr.bf16.vlgmr.msra.gmra.mrb[0].mxu0 %v486_v54  ;;  %1161 = vmatprep.mubr.bf16.mxu1 %v486_v54  ;;  %v481_v58 = vadd.f32 %v1073_v45, %v466_v55  ;;  %v452_v17 = vmul.f32 %v1238_v56, %v1350_v32 }
 0x150   : > { %717 = vmatprep.mubr.bf16.mxu0 %v1267_v63  ;;  %v453_v60 = vmul.f32 %v1240_v23, %v1356_v39  ;;  %v482_v31 = vadd.f32 %v1073_v45, %v467_v59  ;;  %v530_v39 = vld [vmem:[%s1513_s4] sm:$0x7] }
 0x151   : > { %v487_v61 = vpack.c.bf16 %v481_v58, %v480_v57  ;;  %v468_v62 = vmul.f32 %v461_v34, %v452_v17  ;;  %v1457_v7 = vrot.slane %v530_v39, %v460_v22  ;;  %v543_v13 = vrot.slane %v530_v39, %v542_v8 }
 0x152   : > { %v1242_v24 = vpop.eup %1241  ;;  %v469_v2 = vmul.f32 %v461_v34, %v453_v60 }
 0x153   : > { %1162 = vmatmul.mubr.bf16.vlgmr.msra.gmra.mrb[0].mxu1 %v487_v61  ;;  %v483_v0 = vadd.f32 %v1073_v45, %v468_v62  ;;  %v454_v1 = vmul.f32 %v1242_v24, %v1358_v40  ;;  %v538_v40 = vsub.s32 1, %v1431_v11 }
 0x154   : > { %v484_v32 = vadd.f32 %v1073_v45, %v469_v2 }
 0x155   : > { %v488_v3 = vpack.c.bf16 %v483_v0, %v482_v31  ;;  %v470_v4 = vmul.f32 %v461_v34, %v454_v1  ;;  %v1460_v9 = vrot.slane %v530_v39, %v538_v40 }
 0x157   : > { %718 = vmatmul.mubr.bf16.gmra.mrb[4].mxu0 %v487_v61  ;;  %1165 = vmatprep.mubr.bf16.mxu1 %v488_v3  ;;  %v485_v5 = vadd.f32 %v1073_v45, %v470_v4 }
 0x158   : > { %727 = vmatprep.mubr.bf16.mxu0 %v1267_v63 }
 0x159   : > { %v489_v6 = vpack.c.bf16 %v485_v5, %v484_v32 }
 0x15b   : > { %1166 = vmatmul.mubr.bf16.gmra.mrb[4].mxu1 %v489_v6 }
 0x15f   : > { %728 = vmatmul.mubr.bf16.gmra.mrb[8].mxu0 %v488_v3 }
 0x160   : > { %737 = vmatprep.mubr.bf16.mxu0 %v1267_v63 }
 0x167   : > { %738 = vmatmul.mubr.bf16.gmra.mrb[12].mxu0 %v489_v6 }
 0x222   : > { %v709_v10 = vpop.f32.mrb[0].mxu0 }
 0x223   : > { %v710_v12 = vadd.f32 %v709_v10, %v1457_v7  ;;  %v711_v63 = vpop.f32.mrb[1].mxu0 }
 0x224   : > { %v712_v14 = vadd.f32 %v711_v63, %v1460_v9  ;;  %v713_v15 = vpop.f32.mrb[2].mxu0 }
 0x225   : > { %v714_v11 = vadd.f32 %v713_v15, %v1457_v7  ;;  %v715_v18 = vpop.f32.mrb[3].mxu0 }
 0x226   : > { %v1117_v19 = vpack.c.bf16 %v712_v14, %v710_v12  ;;  %v716_v20 = vadd.f32 %v715_v18, %v1460_v9  ;;  %v1163_v21 = vpop.f32.mrb[0].mxu1 }
 0x227   : > { %v791_v22 = vadd.f32 %v1163_v21, %v543_v13  ;;  %v782_v25 = vpop.f32.mrb[1].mxu1 }
 0x228   : > { %893 = vst [vmem:[%s1468_s22] sm:$0xff] %v1117_v19  ;;  %v1119_v26 = vpack.c.bf16 %v716_v20, %v714_v11  ;;  %v783_v27 = vadd.f32 %v782_v25, %v543_v13  ;;  %v1164_v28 = vpop.f32.mrb[2].mxu1 }
 0x229   : > { %v1122_v29 = vpack.c.bf16 %v791_v22, %v791_v22  ;;  %v794_v30 = vadd.f32 %v1164_v28, %v543_v13  ;;  %v785_v33 = vpop.f32.mrb[3].mxu1 }
 0x22a   : > { %895 = vst [vmem:[%s1468_s22 + $0xc] sm:$0xff] %v1119_v26  ;;  %v1118_v34 = vpack.c.bf16 %v783_v27, %v783_v27  ;;  %v786_v35 = vadd.f32 %v785_v33, %v543_v13  ;;  %v719_v36 = vpop.f32.mrb[4].mxu0 }
 0x22b   : > { %898 = vst [vmem:[%s1468_s22 + $0x20] sm:$0xf] %v1122_v29  ;;  %v1124_v37 = vpack.c.bf16 %v794_v30, %v794_v30  ;;  %v720_v38 = vadd.f32 %v719_v36, %v1457_v7  ;;  %v721_v41 = vpop.f32.mrb[5].mxu0 }
 0x22c   : > { %894 = vst [vmem:[%s1468_s22 + $0x8] sm:$0xf] %v1118_v34  ;;  %v1120_v42 = vpack.c.bf16 %v786_v35, %v786_v35  ;;  %v722_v43 = vadd.f32 %v721_v41, %v1460_v9  ;;  %v723_v44 = vpop.f32.mrb[6].mxu0 }
 0x22d   : > { %900 = vst [vmem:[%s1468_s22 + $0x2c] sm:$0xf] %v1124_v37  ;;  %v724_v45 = vadd.f32 %v723_v44, %v1457_v7  ;;  %v725_v46 = vpop.f32.mrb[7].mxu0 }
 0x22e   : > { %896 = vst [vmem:[%s1468_s22 + $0x14] sm:$0xf] %v1120_v42  ;;  %v1121_v47 = vpack.c.bf16 %v722_v43, %v720_v38  ;;  %v726_v48 = vadd.f32 %v725_v46, %v1460_v9  ;;  %v1167_v16 = vpop.f32.mrb[4].mxu1 }
 0x22f   : > { %v807_v49 = vadd.f32 %v1167_v16, %v543_v13  ;;  %v798_v50 = vpop.f32.mrb[5].mxu1 }
 0x230   : > { %897 = vst [vmem:[%s1468_s22 + $0x18] sm:$0xff] %v1121_v47  ;;  %v1123_v51 = vpack.c.bf16 %v726_v48, %v724_v45  ;;  %v799_v52 = vadd.f32 %v798_v50, %v543_v13  ;;  %v1168_v53 = vpop.f32.mrb[6].mxu1 }
 0x231   : > { %v1130_v54 = vpack.c.bf16 %v807_v49, %v807_v49  ;;  %v810_v55 = vadd.f32 %v1168_v53, %v543_v13  ;;  %v801_v56 = vpop.f32.mrb[7].mxu1 }
 0x232   : > { %899 = vst [vmem:[%s1468_s22 + $0x24] sm:$0xff] %v1123_v51  ;;  %v1126_v57 = vpack.c.bf16 %v799_v52, %v799_v52  ;;  %v802_v23 = vadd.f32 %v801_v56, %v543_v13  ;;  %v729_v58 = vpop.f32.mrb[8].mxu0 }
 0x233   : > { %906 = vst [vmem:[%s1468_s22 + $0x50] sm:$0xf] %v1130_v54  ;;  %v1132_v17 = vpack.c.bf16 %v810_v55, %v810_v55  ;;  %v730_v59 = vadd.f32 %v729_v58, %v1457_v7  ;;  %v731_v60 = vpop.f32.mrb[9].mxu0 }
 0x234   : > { %902 = vst [vmem:[%s1468_s22 + $0x38] sm:$0xf] %v1126_v57  ;;  %v1128_v61 = vpack.c.bf16 %v802_v23, %v802_v23  ;;  %v732_v62 = vadd.f32 %v731_v60, %v1460_v9  ;;  %v733_v24 = vpop.f32.mrb[10].mxu0 }
 0x235   : > { %908 = vst [vmem:[%s1468_s22 + $0x5c] sm:$0xf] %v1132_v17  ;;  %v734_v31 = vadd.f32 %v733_v24, %v1457_v7  ;;  %v735_v0 = vpop.f32.mrb[11].mxu0 }
 0x236   : > { %904 = vst [vmem:[%s1468_s22 + $0x44] sm:$0xf] %v1128_v61  ;;  %v1125_v1 = vpack.c.bf16 %v732_v62, %v730_v59  ;;  %v736_v2 = vadd.f32 %v735_v0, %v1460_v9 }
 0x238   : > { %901 = vst [vmem:[%s1468_s22 + $0x30] sm:$0xff] %v1125_v1  ;;  %v1127_v3 = vpack.c.bf16 %v736_v2, %v734_v31 }
 0x23a   : > { %903 = vst [vmem:[%s1468_s22 + $0x3c] sm:$0xff] %v1127_v3  ;;  %v739_v4 = vpop.f32.mrb[12].mxu0 }
 0x23b   : > { %v740_v32 = vadd.f32 %v739_v4, %v1457_v7  ;;  %v741_v5 = vpop.f32.mrb[13].mxu0 }
 0x23c   : > { %v742_v6 = vadd.f32 %v741_v5, %v1460_v9  ;;  %v743_v39 = vpop.f32.mrb[14].mxu0 }
 0x23d   : > { %v744_v40 = vadd.f32 %v743_v39, %v1457_v7  ;;  %v745_v8 = vpop.f32.mrb[15].mxu0 }
 0x23e   : > { %v1129_v10 = vpack.c.bf16 %v742_v6, %v740_v32  ;;  %v746_v12 = vadd.f32 %v745_v8, %v1460_v9 }
 0x240   : > { %905 = vst [vmem:[%s1468_s22 + $0x48] sm:$0xff] %v1129_v10  ;;  %v1131_v63 = vpack.c.bf16 %v746_v12, %v744_v40 }
 0x242   : > { %907 = vst [vmem:[%s1468_s22 + $0x54] sm:$0xff] %v1131_v63 }
 0x243 PF: > { %s15_s20 = sadd.s32 1, %s1265_s20   ;;  %s1515_s18 = smov %s1261_s19 }
 0x244   : > { %p12_p5 = scmp.ge.s32.totalorder %s15_s20, 4   ;;  %s1516_s19 = smov %s1518_s21 }
 0x246   :  { %14 = sbr.rel (!%p12_p5) target bundleno = 2 (0x2), region = 86 }

// kernel: _lambda_.39
= control target key start
LH: loop header
LB: loop body
LE: loop exit
PB: predicated region body
PF: predicated region fallthrough
CT: control target
= control target key end

     0   :  { %s924_s18 = smov 0   ;;  %s926_s19 = smov 0   ;;  %s1011_s0 = inlined_call_operand.vmem [shape: bf16[2,64,128], index: 0, kind: input, shape index: {}]   ;;  %s1012_s1 = inlined_call_operand.vmem [shape: bf16[128,128], index: 1, kind: input, shape index: {}]   ;;  %s1013_s2 = inlined_call_operand.vmem [shape: f32[1,128], index: 2, kind: input, shape index: {}]   ;;  %s1014_s3 = inlined_call_operand.vmem [shape: f32[2,1,128], index: 3, kind: input, shape index: {}]   ;;  %s1015_s4 = inlined_call_operand.vmem [shape: f32[2,64,128], index: 4, kind: input, shape index: {}]   ;;  %s1016_s5 = inlined_call_operand.vmem [shape: f32[2,64,128], index: 5, kind: output, shape index: {}]  }
   0x1   :  { %s928_s20 = smov 0  }
   0x2 LB: > { %s34_s21 = sadd.s32 1, %s888_s19  ;;  %p756_p0 = scmp.ge.s32.totalorder %s892_s20, 1  ;;  %s892_s20 = sphi %s928_s20, %s15_s20   ;;  %s888_s19 = sphi %s926_s19, %s1018_s19   ;;  %s884_s18 = sphi %s924_s18, %s1017_s18  }
   0x3   : > { %p36_p1 = scmp.ge.s32.totalorder %s34_s21, 2  ;;  %p269_p2 = scmp.lt.s32.totalorder %s892_s20, 3 }
   0x5   : > { %s1020_s21 = smov (%p36_p1, %s34_s21), 0  ;;  %p270_p3 = pnand %p756_p0, %p269_p2 }
   0x6   : > { %v858_v0 = vld [vmem:[%s1012_s1] sm:$0xff] (!%p270_p3)   ;;  %p334_p4 = scmp.lt.s32.totalorder (!%p270_p3), %s884_s18, 1  ;;  %v859_v1 = vld [vmem:[%s1012_s1 + $0x8] sm:$0xff] (!%p270_p3)   ;;  %v860_v2 = vld [vmem:[%s1012_s1 + $0x10] sm:$0xff] (!%p270_p3)  }
   0x7   : > { %273 = sbr.rel (%p270_p3) target bundleno = 261 (0x105), region = 40  ;;  %794 = vmatprep.subr.bf16.mxu0 (!%p270_p3), %v858_v0  ;;  %818 = vmatprep.subr.bf16.mxu1 (!%p270_p3), %v858_v0  ;;  %v861_v3 = vld [vmem:[%s1012_s1 + $0x18] sm:$0xff] (!%p270_p3)   ;;  %v862_v6 = vld [vmem:[%s1012_s1 + $0x20] sm:$0xff] (!%p270_p3)   ;;  %v863_v7 = vld [vmem:[%s1012_s1 + $0x28] sm:$0xff] (!%p270_p3)  }
   0x8   : > { %795 = vmatpush3.bf16.msra.mxu0 (!%p270_p3), %v858_v0  ;;  %826 = vmatpush3.bf16.msra.mxu1 (!%p270_p3), %v858_v0  ;;  %v864_v8 = vld [vmem:[%s1012_s1 + $0x30] sm:$0xff] (!%p270_p3)   ;;  %v865_v9 = vld [vmem:[%s1012_s1 + $0x38] sm:$0xff] (!%p270_p3)   ;;  %v763_v12 = vld [vmem:[%s1013_s2] ss:$0 sm:$0xff] (!%p270_p3) }
   0x9   : > { %796 = vmatprep.subr.bf16.mxu0 (!%p270_p3), %v859_v1  ;;  %819 = vmatprep.subr.bf16.mxu1 (!%p270_p3), %v859_v1 }
   0xc   : > { %797 = vmatpush3.bf16.msra.mxu0 (!%p270_p3), %v859_v1  ;;  %827 = vmatpush3.bf16.msra.mxu1 (!%p270_p3), %v859_v1 }
   0xd   : > { %798 = vmatprep.subr.bf16.mxu0 (!%p270_p3), %v860_v2  ;;  %820 = vmatprep.subr.bf16.mxu1 (!%p270_p3), %v860_v2 }
   0xe   : > { %s1022_s18 = smov (!%p334_p4, %s884_s18), 1 }
   0xf   : > { %s779_s28 = sshll.u32 %s1022_s18, 5  ;;  %s780_s17 = sshll.u32 %s1022_s18, 6 }
  0x10   : > { %s957_s6 = scalar_lea.vmem %s1011_s0, %s779_s28  ;;  %799 = vmatpush3.bf16.msra.mxu0 %v860_v2  ;;  %828 = vmatpush3.bf16.msra.mxu1 %v860_v2  ;;  %s355_s24 = scalar_lea.vmem %s1014_s3, %s1022_s18 }
  0x11   : > { %v866_v4 = vld [vmem:[%s957_s6] sm:$0xff]   ;;  %v867_v5 = vld [vmem:[%s957_s6 + $0x10] sm:$0xff]   ;;  %800 = vmatprep.subr.bf16.mxu0 %v861_v3  ;;  %821 = vmatprep.subr.bf16.mxu1 %v861_v3  ;;  %v868_v10 = vld [vmem:[%s957_s6 + $0x8] sm:$0xff]   ;;  %s989_s29 = scalar_lea.vmem %s1015_s4, %s780_s17 }
  0x12   : > { %810 = vmatprep.mubr.bf16.mxu0 %v866_v4  ;;  %814 = vmatprep.mubr.bf16.mxu1 %v867_v5  ;;  %v869_v11 = vld [vmem:[%s957_s6 + $0x18] sm:$0xff]   ;;  %v776_v13 = vld [vmem:[%s355_s24] ss:$0 sm:$0xff]  ;;  %v409_v20 = vld [vmem:[%s989_s29 + $0x10] sm:$0xff]  ;;  %s380_s6 = scalar_lea.vmem %s1016_s5, %s780_s17 }
  0x13   : > { %v413_v21 = vld [vmem:[%s989_s29 + $0x30] sm:$0xff]  ;;  %v407_v28 = vld [vmem:[%s989_s29] sm:$0xff]  ;;  %v410_v36 = vld [vmem:[%s989_s29 + $0x18] sm:$0xff] }
  0x14   : > { %801 = vmatpush3.bf16.msra.mxu0 %v861_v3  ;;  %829 = vmatpush3.bf16.msra.mxu1 %v861_v3  ;;  %v411_v29 = vld [vmem:[%s989_s29 + $0x20] sm:$0xff]  ;;  %v414_v37 = vld [vmem:[%s989_s29 + $0x38] sm:$0xff]  ;;  %v408_v44 = vld [vmem:[%s989_s29 + $0x8] sm:$0xff] }
  0x15   : > { %802 = vmatprep.subr.bf16.mxu0 %v862_v6  ;;  %822 = vmatprep.subr.bf16.mxu1 %v862_v6  ;;  %v412_v45 = vld [vmem:[%s989_s29 + $0x28] sm:$0xff] }
  0x18   : > { %803 = vmatpush3.bf16.msra.mxu0 %v862_v6  ;;  %830 = vmatpush3.bf16.msra.mxu1 %v862_v6 }
  0x19   : > { %804 = vmatprep.subr.bf16.mxu0 %v863_v7  ;;  %823 = vmatprep.subr.bf16.mxu1 %v863_v7 }
  0x1c   : > { %805 = vmatpush3.bf16.msra.mxu0 %v863_v7  ;;  %831 = vmatpush3.bf16.msra.mxu1 %v863_v7 }
  0x1d   : > { %806 = vmatprep.subr.bf16.mxu0 %v864_v8  ;;  %824 = vmatprep.subr.bf16.mxu1 %v864_v8 }
  0x20   : > { %807 = vmatpush3.bf16.msra.mxu0 %v864_v8  ;;  %832 = vmatpush3.bf16.msra.mxu1 %v864_v8 }
  0x21   : > { %808 = vmatprep.subr.bf16.mxu0 %v865_v9  ;;  %825 = vmatprep.subr.bf16.mxu1 %v865_v9 }
  0x24   : > { %809 = vmatpush3.bf16.msra.mxu0 %v865_v9  ;;  %833 = vmatpush3.bf16.msra.mxu1 %v865_v9 }
  0x27   : > { %811 = vmatmul.mubr.bf16.vlgmr.msra.gmra.mrb[0].mxu0 %v868_v10  ;;  %815 = vmatmul.mubr.bf16.vlgmr.msra.gmra.mrb[0].mxu1 %v869_v11 }
  0xfa   : > { %v812_v14 = vpop.f32.mrb[0].mxu0  ;;  %v816_v15 = vpop.f32.mrb[0].mxu1 }
  0xfb   : > { %v538_v16 = vadd.f32 %v812_v14, %v763_v12  ;;  %v554_v17 = vadd.f32 %v816_v15, %v763_v12  ;;  %v529_v18 = vpop.f32.mrb[1].mxu0  ;;  %v545_v19 = vpop.f32.mrb[1].mxu1 }
  0xfc   : > { %v530_v22 = vadd.f32 %v763_v12, %v529_v18  ;;  %v546_v23 = vadd.f32 %v763_v12, %v545_v19  ;;  %v813_v24 = vpop.f32.mrb[2].mxu0  ;;  %v817_v25 = vpop.f32.mrb[2].mxu1 }
  0xfd   : > { %v568_v26 = vmul.f32 %v776_v13, %v538_v16  ;;  %v572_v27 = vmul.f32 %v776_v13, %v554_v17  ;;  %v541_v30 = vadd.f32 %v813_v24, %v763_v12  ;;  %v557_v31 = vadd.f32 %v817_v25, %v763_v12  ;;  %v532_v32 = vpop.f32.mrb[3].mxu0  ;;  %v548_v33 = vpop.f32.mrb[3].mxu1 }
  0xfe   : > { %v566_v34 = vmul.f32 %v776_v13, %v530_v22  ;;  %v570_v35 = vmul.f32 %v776_v13, %v546_v23  ;;  %v533_v38 = vadd.f32 %v763_v12, %v532_v32  ;;  %v549_v39 = vadd.f32 %v763_v12, %v548_v33 }
  0xff   : > { %v576_v40 = vadd.f32 %v568_v26, %v409_v20  ;;  %v580_v41 = vadd.f32 %v572_v27, %v413_v21  ;;  %v569_v42 = vmul.f32 %v776_v13, %v541_v30  ;;  %v573_v43 = vmul.f32 %v776_v13, %v557_v31 }
 0x100   : > { %v574_v46 = vadd.f32 %v566_v34, %v407_v28  ;;  %v578_v47 = vadd.f32 %v570_v35, %v411_v29  ;;  %v567_v48 = vmul.f32 %v776_v13, %v533_v38  ;;  %v571_v49 = vmul.f32 %v776_v13, %v549_v39 }
 0x101   : > { %584 = vst [vmem:[%s380_s6 + $0x10] sm:$0xff] %v576_v40  ;;  %588 = vst [vmem:[%s380_s6 + $0x30] sm:$0xff] %v580_v41  ;;  %v577_v50 = vadd.f32 %v569_v42, %v410_v36  ;;  %v581_v51 = vadd.f32 %v573_v43, %v414_v37 }
 0x102   : > { %582 = vst [vmem:[%s380_s6] sm:$0xff] %v574_v46  ;;  %586 = vst [vmem:[%s380_s6 + $0x20] sm:$0xff] %v578_v47  ;;  %v575_v52 = vadd.f32 %v567_v48, %v408_v44  ;;  %v579_v53 = vadd.f32 %v571_v49, %v412_v45 }
 0x103   : > { %585 = vst [vmem:[%s380_s6 + $0x18] sm:$0xff] %v577_v50  ;;  %589 = vst [vmem:[%s380_s6 + $0x38] sm:$0xff] %v581_v51 }
 0x104   : > { %583 = vst [vmem:[%s380_s6 + $0x8] sm:$0xff] %v575_v52  ;;  %587 = vst [vmem:[%s380_s6 + $0x28] sm:$0xff] %v579_v53 }
 0x105 PF: > { %s15_s20 = sadd.s32 1, %s892_s20   ;;  %s1017_s18 = smov %s888_s19 }
 0x106   : > { %p12_p5 = scmp.ge.s32.totalorder %s15_s20, 4   ;;  %s1018_s19 = smov %s1020_s21 }
 0x108   :  { %14 = sbr.rel (!%p12_p5) target bundleno = 2 (0x2), region = 82 }

// kernel: _lambda_.38
= control target key start
LH: loop header
LB: loop body
LE: loop exit
PB: predicated region body
PF: predicated region fallthrough
CT: control target
= control target key end

     0   :  { %s2236_s9 = smov 0   ;;  %s2779_s0 = inlined_call_operand.vmem [shape: bf16[2,64,384], index: 0, kind: input, shape index: {}]   ;;  %s2780_s1 = inlined_call_operand.vmem [shape: bf16[4,64,64], index: 1, kind: input, shape index: {}]   ;;  %s2781_s2 = inlined_call_operand.vmem [shape: bf16[2,64,128], index: 2, kind: output, shape index: {}]  }
   0x1 LB: > { %s1653_s10 = sadd.s32 4294967295, %s2216_s9   ;;  %p1657_p0 = scmp.ge.s32.totalorder %s2216_s9, 1  ;;  %s2216_s9 = sphi %s2236_s9, %s12_s9  }
   0x2   : > { %p112_p1 = scmp.lt.s32.totalorder %s2216_s9, 3 }
   0x4   : > { %p113_p2 = pnand %p1657_p0, %p112_p1 }
   0x5   : > { %p134_p3 = scmp.lt.s32.totalorder (!%p113_p2), %s1653_s10, 1  ;;  %vm226_vm0 = vcmask (!%p113_p2), 261120   ;;  %v1832_v28 = vld [vmem:[%s2780_s1 + $0x8] sm:$0xff] (!%p113_p2)   ;;  %v1749_v29 = vld [vmem:[%s2780_s1] sm:$0xff] (!%p113_p2)   ;;  %vm316_vm1 = vcmask (!%p113_p2), 523264   ;;  %v1834_v42 = vld [vmem:[%s2780_s1 + $0x18] sm:$0xff] (!%p113_p2)  }
   0x6   : > { %116 = sbr.rel (%p113_p2) target bundleno = 2832 (0xb10), region = 28  ;;  %v1754_v30 = vunpack.c.l.bf16 (!%p113_p2), %v1832_v28  ;;  %v1750_v31 = vunpack.c.l.bf16 (!%p113_p2), %v1749_v29  ;;  %v1755_v32 = vunpack.c.h.bf16 (!%p113_p2), %v1832_v28  ;;  %v1751_v34 = vunpack.c.h.bf16 (!%p113_p2), %v1749_v29  ;;  %v1833_v43 = vld [vmem:[%s2780_s1 + $0x10] sm:$0xff] (!%p113_p2)   ;;  %s2218_s23 = smov (!%p113_p2), 96  }
   0x7   : > { %v1762_v46 = vunpack.c.l.bf16 (!%p113_p2), %v1834_v42  ;;  %v1758_v47 = vunpack.c.l.bf16 (!%p113_p2), %v1833_v43  ;;  %v1763_v51 = vunpack.c.h.bf16 (!%p113_p2), %v1834_v42  ;;  %v1759_v52 = vunpack.c.h.bf16 (!%p113_p2), %v1833_v43  ;;  %s2219_s4 = smov (!%p113_p2), 64   ;;  %s2220_s16 = smov (!%p113_p2), 32  }
   0x8   : > { %vm853_vm2 = vcmask (!%p113_p2), 523520   ;;  %vm1197_vm3 = vcmask (!%p113_p2), 785920   ;;  %vm1541_vm4 = vcmask (!%p113_p2), 1048320  }
   0xd   : > { %s2783_s10 = smov (!%p134_p3, %s1653_s10), 1 }
   0xe   : > { %s2058_s11 = smul.u32 96, %s2783_s10 }
  0x10   : > { %s2250_s14 = scalar_lea.vmem %s2779_s0, %s2058_s11 }
  0x11   : > { %v146_v0 = vld [vmem:[%s2250_s14] sm:$0xff]  ;;  %v148_v1 = vld [vmem:[%s2250_s14 + $0xc] sm:$0xff]  ;;  %v150_v2 = vld [vmem:[%s2250_s14 + $0x18] sm:$0xff] }
  0x12   : > { %v2255_v3 = vcombine.high %v146_v0, %v148_v1  ;;  %v152_v4 = vld [vmem:[%s2250_s14 + $0x24] sm:$0xff]  ;;  %v162_v5 = vmul.bf16 1043676725, %v146_v0  ;;  %v163_v7 = vmul.bf16 1043676725, %v148_v1  ;;  %v154_v10 = vld [vmem:[%s2250_s14 + $0x30] sm:$0xff] }
  0x13   : > { %v2258_v6 = vcombine.high %v150_v2, %v152_v4  ;;  %v156_v11 = vld [vmem:[%s2250_s14 + $0x3c] sm:$0xff]  ;;  %v158_v14 = vld [vmem:[%s2250_s14 + $0x48] sm:$0xff]  ;;  %v160_v15 = vld [vmem:[%s2250_s14 + $0x54] sm:$0xff]  ;;  %v164_v19 = vmul.bf16 1043676725, %v150_v2 }
  0x14   : > { %2042 = vmatprep.subr.msk.bf16.mxu0 %vm226_vm0, %v2255_v3  ;;  %v240_v8 = vsel %vm226_vm0, %v2255_v3, 0  ;;  %v2264_v9 = vcombine.low %v162_v5, %v163_v7  ;;  %v2274_v13 = vcombine.high %v154_v10, %v156_v11  ;;  %v2282_v17 = vcombine.high %v158_v14, %v160_v15 }
  0x15   : > { %1915 = vmatpush3.bf16.xpose.msra.mxu0 %v240_v8  ;;  %v243_v12 = vsel %vm226_vm0, %v2258_v6, 0  ;;  %v165_v20 = vmul.bf16 1043676725, %v152_v4  ;;  %v166_v21 = vmul.bf16 1043676725, %v154_v10 }
  0x16   : > { %2043 = vmatprep.subr.msk.bf16.mxu0 %vm226_vm0, %v2258_v6  ;;  %1922 = vmatprep.mubr.msk.bf16.mxu0 %vm226_vm0, %v2264_v9  ;;  %v246_v16 = vsel %vm226_vm0, %v2274_v13, 0  ;;  %v249_v18 = vsel %vm226_vm0, %v2282_v17, 0  ;;  %v167_v22 = vmul.bf16 1043676725, %v156_v11  ;;  %v168_v25 = vmul.bf16 1043676725, %v158_v14 }
  0x17   : > { %v2288_v23 = vcombine.low %v164_v19, %v165_v20  ;;  %v169_v26 = vmul.bf16 1043676725, %v160_v15 }
  0x18   : > { %v2290_v24 = vcombine.low %v166_v21, %v167_v22 }
  0x19   : > { %v2296_v27 = vcombine.low %v168_v25, %v169_v26 }
  0x1d   : > { %1917 = vmatpush3.bf16.xpose.msra.mxu0 %v243_v12 }
  0x1e   : > { %2044 = vmatprep.subr.msk.bf16.mxu0 %vm226_vm0, %v2274_v13 }
  0x25   : > { %1919 = vmatpush3.bf16.xpose.msra.mxu0 %v246_v16 }
  0x26   : > { %2045 = vmatprep.subr.msk.bf16.mxu0 %vm226_vm0, %v2282_v17 }
  0x2d   : > { %1921 = vmatpush3.bf16.xpose.msra.mxu0 %v249_v18 }
  0x34   : > { %1923 = vmatmul.mubr.msk.bf16.vlgmr.msra.gmra.mrb[0].mxu0 %vm226_vm0, %v2288_v23 }
  0x35   : > { %1926 = vmatprep.mubr.msk.bf16.mxu0 %vm226_vm0, %v2290_v24 }
  0x3c   : > { %1927 = vmatmul.mubr.msk.bf16.gmra.mrb[4].mxu0 %vm226_vm0, %v2296_v27 }
 0x107   : > { %v1924_v33 = vpop.f32.mrb[0].mxu0 }
 0x108   : > { %v294_v35 = vadd.f32 %v1924_v33, %v1754_v30  ;;  %v285_v36 = vpop.f32.mrb[1].mxu0 }
 0x109   : > { %v286_v37 = vadd.f32 %v1750_v31, %v285_v36  ;;  %v1925_v38 = vpop.f32.mrb[2].mxu0 }
 0x10a   : > { %v297_v39 = vadd.f32 %v1925_v38, %v1755_v32  ;;  %v288_v40 = vpop.f32.mrb[3].mxu0  ;;  %v323_v41 = vsel %vm316_vm1, %v294_v35, -inf }
 0x10b   : > { %v289_v44 = vadd.f32 %v1751_v34, %v288_v40  ;;  %324 = vmax.xlane.f32.xlu1 %v323_v41  ;;  %v317_v45 = vsel %vm316_vm1, %v286_v37, -inf  ;;  %v2358_v40 = vld [vmem:[%s2250_s14 + $0x38] ss:$12 sps:$4 sm:$0xff]   ;;  %v2365_v41 = vld [vmem:[%s2250_s14 + $0x50] ss:$12 sps:$4 sm:$0xff]  }
 0x10c   : > { %318 = vmax.xlane.f32.xlu0 %v317_v45  ;;  %v326_v48 = vsel %vm316_vm1, %v297_v39, -inf }
 0x10d   : > { %v320_v50 = vsel %vm316_vm1, %v289_v44, -inf }
 0x10f   : > { %327 = vmax.xlane.f32.xlu1 %v326_v48  ;;  %v1928_v49 = vpop.f32.mrb[4].mxu0 }
 0x110   : > { %v301_v53 = vpop.f32.mrb[5].mxu0  ;;  %321 = vmax.xlane.f32.xlu0 %v320_v50  ;;  %v310_v54 = vadd.f32 %v1928_v49, %v1762_v46 }
 0x111   : > { %v302_v55 = vadd.f32 %v1758_v47, %v301_v53  ;;  %v1929_v56 = vpop.f32.mrb[6].mxu0 }
 0x112   : > { %v304_v57 = vpop.f32.mrb[7].mxu0  ;;  %v2316_v58 = vadd.f32 %v1929_v56, %v1763_v51  ;;  %v335_v62 = vsel %vm316_vm1, %v310_v54, -inf }
 0x113   : > { %v2318_v59 = vadd.f32 %v1759_v52, %v304_v57  ;;  %v329_v60 = vsel %vm316_vm1, %v302_v55, -inf }
 0x114   : > { %330 = vmax.xlane.f32.xlu0 %v329_v60  ;;  %v338_v63 = vsel %vm316_vm1, %v2316_v58, -inf }
 0x115   : > { %v332_v61 = vsel %vm316_vm1, %v2318_v59, -inf }
 0x116   : > { %333 = vmax.xlane.f32.xlu1 %v332_v61 }
 0x118   : > { %336 = vmax.xlane.f32.xlu0 %v335_v62 }
 0x11a   : > { %339 = vmax.xlane.f32.xlu1 %v338_v63 }
 0x198   : > { %v325_v0 = vpop.xlane.xlu1 %324 }
 0x199   : > { %v343_v1 = vsub.f32 %v294_v35, %v325_v0  ;;  %v319_v2 = vpop.xlane.xlu0 %318 }
 0x19a   : > { %v341_v4 = vsub.f32 %v286_v37, %v319_v2  ;;  %v2346_v37 = vld [vmem:[%s2250_s14 + $0x8] ss:$12 sps:$4 sm:$0xff]  }
 0x19b   : > { %v353_v5 = vmul.f32 1.442695, %v343_v1  ;;  %1930 = vmatprep.subr.bf16.mxu1 %v2346_v37 }
 0x19c   : > { %v349_v7 = vmul.f32 1.442695, %v341_v4  ;;  %v328_v8 = vpop.xlane.xlu1 %327  ;;  %1931 = vmatpush3.bf16.msra.mxu1 %v2346_v37 }
 0x19d   : > { %2078 = vpow2.f32 %v353_v5  ;;  %v344_v10 = vsub.f32 %v297_v39, %v328_v8  ;;  %v322_v11 = vpop.xlane.xlu0 %321  ;;  %v2353_v39 = vld [vmem:[%s2250_s14 + $0x20] ss:$12 sps:$4 sm:$0xff]  }
 0x19e   : > { %v342_v12 = vsub.f32 %v289_v44, %v322_v11  ;;  %2080 = vpow2.f32 %v349_v7  ;;  %1932 = vmatprep.subr.bf16.mxu1 %v2353_v39 }
 0x19f   : > { %v355_v14 = vmul.f32 1.442695, %v344_v10 }
 0x1a0   : > { %v351_v15 = vmul.f32 1.442695, %v342_v12  ;;  %1933 = vmatpush3.bf16.msra.mxu1 %v2353_v39 }
 0x1a1   : > { %2082 = vpow2.f32 %v355_v14  ;;  %v331_v16 = vpop.xlane.xlu0 %330  ;;  %1934 = vmatprep.subr.bf16.mxu1 %v2358_v40 }
 0x1a2   : > { %2084 = vpow2.f32 %v351_v15  ;;  %v345_v18 = vsub.f32 %v302_v55, %v331_v16 }
 0x1a3   : > { %v334_v42 = vpop.xlane.xlu1 %333 }
 0x1a4   : > { %v357_v22 = vmul.f32 1.442695, %v345_v18  ;;  %1935 = vmatpush3.bf16.msra.mxu1 %v2358_v40  ;;  %v346_v45 = vsub.f32 %v2318_v59, %v334_v42 }
 0x1a5   : > { %v337_v19 = vpop.xlane.xlu0 %336  ;;  %1936 = vmatprep.subr.bf16.mxu1 %v2365_v41 }
 0x1a6   : > { %v347_v20 = vsub.f32 %v310_v54, %v337_v19  ;;  %v359_v47 = vmul.f32 1.442695, %v346_v45 }
 0x1a7   : > { %v2326_v21 = vpop.eup %2078  ;;  %v340_v43 = vpop.xlane.xlu1 %339 }
 0x1a8   : > { %v361_v25 = vmul.f32 1.442695, %v347_v20  ;;  %v371_v26 = vsel %vm316_vm1, %v2326_v21, 0.0  ;;  %v2330_v28 = vpop.eup %2080  ;;  %1937 = vmatpush3.bf16.msra.mxu1 %v2365_v41  ;;  %v348_v44 = vsub.f32 %v2316_v58, %v340_v43 }
 0x1a9   : > { %372 = vadd.xlane.f32.xlu0 %v371_v26  ;;  %v365_v31 = vsel %vm316_vm1, %v2330_v28, 0.0 }
 0x1aa   : > { %2086 = vpow2.f32 %v361_v25  ;;  %v363_v46 = vmul.f32 1.442695, %v348_v44 }
 0x1ab   : > { %v2332_v29 = vpop.eup %2082  ;;  %2088 = vpow2.f32 %v357_v22 }
 0x1ac   : > { %v374_v30 = vsel %vm316_vm1, %v2332_v29, 0.0  ;;  %v2085_v32 = vpop.eup %2084  ;;  %2090 = vpow2.f32 %v363_v46 }
 0x1ad   : > { %375 = vadd.xlane.f32.xlu1 %v374_v30  ;;  %366 = vadd.xlane.f32.xlu0 %v365_v31  ;;  %v368_v33 = vsel %vm316_vm1, %v2085_v32, 0.0  ;;  %2092 = vpow2.f32 %v359_v47  ;;  %v1836_v47 = vld [vmem:[%s2780_s1 + $0x28] sm:$0xff]  }
 0x1b1   : > { %369 = vadd.xlane.f32.xlu1 %v368_v33 }
 0x1b4   : > { %v2339_v34 = vpop.eup %2086 }
 0x1b5   : > { %v383_v35 = vsel %vm316_vm1, %v2339_v34, 0.0  ;;  %v2343_v36 = vpop.eup %2088 }
 0x1b6   : > { %384 = vadd.xlane.f32.xlu0 %v383_v35  ;;  %v377_v38 = vsel %vm316_vm1, %v2343_v36, 0.0  ;;  %v2091_v48 = vpop.eup %2090 }
 0x1b7   : > { %v386_v49 = vsel %vm316_vm1, %v2091_v48, 0.0  ;;  %v2093_v50 = vpop.eup %2092 }
 0x1b8   : > { %v380_v51 = vsel %vm316_vm1, %v2093_v50, 0.0 }
 0x1ba   : > { %378 = vadd.xlane.f32.xlu0 %v377_v38 }
 0x1c2   : > { %545 = vrot.lane.b32.xlu1 %v2258_v6, %s2218_s23 }
 0x1c6   : > { %547 = vrot.lane.b32.xlu1 %v2274_v13, %s2218_s23 }
 0x1d0   : > { %543 = vrot.lane.b32.xlu0 %v2255_v3, %s2218_s23 }
 0x1d4   : > { %535 = vrot.lane.b32.xlu0 %v2264_v9, %s2218_s23 }
 0x1d8   : > { %539 = vrot.lane.b32.xlu0 %v2290_v24, %s2218_s23 }
 0x1ea   : > { %387 = vadd.xlane.f32.xlu1 %v386_v49  ;;  %v1835_v49 = vld [vmem:[%s2780_s1 + $0x20] sm:$0xff]  }
 0x1ee   : > { %381 = vadd.xlane.f32.xlu1 %v380_v51  ;;  %v1766_v51 = vunpack.c.l.bf16 %v1835_v49 }
 0x1ff   : > { %549 = vrot.lane.b32.xlu1 %v2282_v17, %s2218_s23 }
 0x203   : > { %537 = vrot.lane.b32.xlu1 %v2288_v23, %s2218_s23 }
 0x207   : > { %541 = vrot.lane.b32.xlu1 %v2296_v27, %s2218_s23 }
 0x236   : > { %v373_v52 = vpop.xlane.xlu0 %372 }
 0x23a   : > { %v376_v53 = vpop.xlane.xlu1 %375  ;;  %v367_v54 = vpop.xlane.xlu0 %366 }
 0x23b   : > { %2094 = vrcp.f32 %v376_v53  ;;  %v1767_v53 = vunpack.c.h.bf16 %v1835_v49 }
 0x23c   : > { %2096 = vrcp.f32 %v367_v54 }
 0x23d   : > { %2098 = vrcp.f32 %v373_v52 }
 0x23e   : > { %v370_v55 = vpop.xlane.xlu1 %369 }
 0x23f   : > { %2100 = vrcp.f32 %v370_v55 }
 0x242   : > { %v546_v8 = vpop.permute.xlu1 %545 }
 0x243   : > { %v385_v56 = vpop.xlane.xlu0 %384  ;;  %v567_v10 = vsel %vm226_vm0, %v546_v8, 0 }
 0x245   : > { %v2095_v57 = vpop.eup %2094 }
 0x246   : > { %v2097_v58 = vpop.eup %2096  ;;  %v400_v62 = vmul.f32 %v2095_v57, %v2332_v29  ;;  %v548_v11 = vpop.permute.xlu1 %547  ;;  %v1838_v57 = vld [vmem:[%s2780_s1 + $0x38] sm:$0xff]  }
 0x247   : > { %v379_v59 = vpop.xlane.xlu0 %378  ;;  %v2099_v60 = vpop.eup %2098  ;;  %v397_v63 = vmul.f32 %v2097_v58, %v2330_v28  ;;  %v570_v12 = vsel %vm226_vm0, %v548_v11, 0 }
 0x248   : > { %v399_v2 = vmul.f32 %v2099_v60, %v2326_v21 }
 0x249   : > { %v2101_v61 = vpop.eup %2100 }
 0x24a   : > { %v398_v0 = vmul.f32 %v2101_v61, %v2085_v32  ;;  %v406_v5 = vpack.c.bf16 %v400_v62, %v399_v2 }
 0x24b   : > { %v544_v1 = vpop.permute.xlu0 %543 }
 0x24c   : > { %v405_v4 = vpack.c.bf16 %v398_v0, %v397_v63  ;;  %2046 = vmatprep.subr.msk.bf16.mxu1 %vm226_vm0, %v544_v1  ;;  %v564_v7 = vsel %vm226_vm0, %v544_v1, 0  ;;  %v1778_v63 = vunpack.c.l.bf16 %v1838_v57  ;;  %v1837_v1 = vld [vmem:[%s2780_s1 + $0x30] sm:$0xff]  }
 0x24e   : > { %1938 = vmatprep.mubr.msk.bf16.mxu1 %vm316_vm1, %v405_v4 }
 0x24f   : > { %1939 = vmatmul.mubr.msk.bf16.vlgmr.msra.gmra.mrb[0].mxu1 %vm316_vm1, %v406_v5  ;;  %v536_v32 = vpop.permute.xlu0 %535 }
 0x250   : > { %1947 = vmatpush3.bf16.xpose.msra.mxu1 %v564_v7 }
 0x251   : > { %2047 = vmatprep.subr.msk.bf16.mxu1 %vm226_vm0, %v546_v8  ;;  %v1774_v8 = vunpack.c.l.bf16 %v1837_v1 }
 0x253   : > { %v540_v35 = vpop.permute.xlu0 %539 }
 0x258   : > { %1949 = vmatpush3.bf16.xpose.msra.mxu1 %v567_v10 }
 0x259   : > { %2048 = vmatprep.subr.msk.bf16.mxu1 %vm226_vm0, %v548_v11 }
 0x260   : > { %1951 = vmatpush3.bf16.xpose.msra.mxu1 %v570_v12 }
 0x277   : > { %v388_v14 = vpop.xlane.xlu1 %387 }
 0x278   : > { %2102 = vrcp.f32 %v388_v14 }
 0x279   : > { %2104 = vrcp.f32 %v379_v59  ;;  %v1771_v59 = vunpack.c.h.bf16 %v1836_v47 }
 0x27a   : > { %2106 = vrcp.f32 %v385_v56 }
 0x27b   : > { %v382_v15 = vpop.xlane.xlu1 %381 }
 0x27c   : > { %2108 = vrcp.f32 %v382_v15 }
 0x27f   : > { %v550_v16 = vpop.permute.xlu1 %549 }
 0x280   : > { %2049 = vmatprep.subr.msk.bf16.mxu1 %vm226_vm0, %v550_v16  ;;  %v573_v18 = vsel %vm226_vm0, %v550_v16, 0 }
 0x281   : > { %1953 = vmatpush3.bf16.xpose.msra.mxu1 %v573_v18 }
 0x282   : > { %v2103_v19 = vpop.eup %2102 }
 0x283   : > { %v2105_v20 = vpop.eup %2104  ;;  %v404_v25 = vmul.f32 %v2103_v19, %v2091_v48  ;;  %v538_v33 = vpop.permute.xlu1 %537  ;;  %v1779_v19 = vunpack.c.h.bf16 %v1838_v57 }
 0x284   : > { %v2107_v21 = vpop.eup %2106  ;;  %v401_v26 = vmul.f32 %v2105_v20, %v2343_v36 }
 0x285   : > { %v403_v29 = vmul.f32 %v2107_v21, %v2339_v34  ;;  %v1775_v21 = vunpack.c.h.bf16 %v1837_v1 }
 0x286   : > { %v2109_v22 = vpop.eup %2108 }
 0x287   : > { %v402_v28 = vmul.f32 %v2109_v22, %v2093_v50  ;;  %v408_v31 = vpack.c.bf16 %v404_v25, %v403_v29  ;;  %v542_v38 = vpop.permute.xlu1 %541  ;;  %v1770_v50 = vunpack.c.l.bf16 %v1836_v47 }
 0x289   : > { %v407_v30 = vpack.c.bf16 %v402_v28, %v401_v26 }
 0x28b   : > { %1942 = vmatprep.mubr.msk.bf16.mxu1 %vm316_vm1, %v407_v30 }
 0x28c   : > { %1943 = vmatmul.mubr.msk.bf16.gmra.mrb[4].mxu1 %vm316_vm1, %v408_v31 }
 0x28d   : > { %1954 = vmatprep.mubr.msk.bf16.mxu1 %vm226_vm0, %v536_v32 }
 0x294   : > { %1955 = vmatmul.mubr.msk.bf16.vlgmr.msra.gmra.mrb[8].mxu1 %vm226_vm0, %v538_v33 }
 0x295   : > { %1958 = vmatprep.mubr.msk.bf16.mxu1 %vm226_vm0, %v540_v35 }
 0x29c   : > { %1959 = vmatmul.mubr.msk.bf16.gmra.mrb[12].mxu1 %vm226_vm0, %v542_v38 }
 0x322   : > { %v1940_v36 = vpop.f32.mrb[0].mxu1 }
 0x323   : > { %512 = vst.msk [vmem:[#allocation2 + $0x10] sm:$0xff] %vm226_vm0, %v1940_v36  ;;  %v479_v34 = vpop.f32.mrb[1].mxu1 }
 0x324   : > { %510 = vst.msk [vmem:[#allocation2] sm:$0xff] %vm226_vm0, %v479_v34  ;;  %v1941_v42 = vpop.f32.mrb[2].mxu1 }
 0x325   : > { %513 = vst.msk [vmem:[#allocation2 + $0x18] sm:$0xff] %vm226_vm0, %v1941_v42  ;;  %v482_v43 = vpop.f32.mrb[3].mxu1 }
 0x326   : > { %511 = vst.msk [vmem:[#allocation2 + $0x8] sm:$0xff] %vm226_vm0, %v482_v43 }
 0x35f   : > { %v1944_v44 = vpop.f32.mrb[4].mxu1 }
 0x360   : > { %516 = vst.msk [vmem:[#allocation2 + $0x30] sm:$0xff] %vm226_vm0, %v1944_v44  ;;  %v495_v45 = vpop.f32.mrb[5].mxu1 }
 0x361   : > { %514 = vst.msk [vmem:[#allocation2 + $0x20] sm:$0xff] %vm226_vm0, %v495_v45  ;;  %v1945_v46 = vpop.f32.mrb[6].mxu1 }
 0x362   : > { %517 = vst.msk [vmem:[#allocation2 + $0x38] sm:$0xff] %vm226_vm0, %v1945_v46  ;;  %v498_v48 = vpop.f32.mrb[7].mxu1 }
 0x363   : > { %515 = vst.msk [vmem:[#allocation2 + $0x28] sm:$0xff] %vm226_vm0, %v498_v48 }
 0x367   : > { %v1956_v52 = vpop.f32.mrb[8].mxu1 }
 0x368   : > { %v618_v54 = vadd.f32 %v1956_v52, %v1770_v50  ;;  %v609_v55 = vpop.f32.mrb[9].mxu1 }
 0x369   : > { %v1957_v56 = vpop.f32.mrb[10].mxu1  ;;  %v610_v58 = vadd.f32 %v1766_v51, %v609_v55 }
 0x36a   : > { %v612_v60 = vpop.f32.mrb[11].mxu1  ;;  %v646_v61 = vsel %vm316_vm1, %v618_v54, -inf  ;;  %v621_v2 = vadd.f32 %v1957_v56, %v1771_v59 }
 0x36b   : > { %v613_v62 = vadd.f32 %v1767_v53, %v612_v60  ;;  %647 = vmax.xlane.f32.xlu0 %v646_v61  ;;  %v640_v4 = vsel %vm316_vm1, %v610_v58, -inf }
 0x36c   : > { %v649_v12 = vsel %vm316_vm1, %v621_v2, -inf }
 0x36d   : > { %v643_v0 = vsel %vm316_vm1, %v613_v62, -inf }
 0x36e   : > { %644 = vmax.xlane.f32.xlu1 %v643_v0 }
 0x36f   : > { %641 = vmax.xlane.f32.xlu0 %v640_v4  ;;  %v1960_v5 = vpop.f32.mrb[12].mxu1 }
 0x370   : > { %v634_v7 = vadd.f32 %v1960_v5, %v1778_v63  ;;  %v625_v10 = vpop.f32.mrb[13].mxu1 }
 0x371   : > { %v1961_v11 = vpop.f32.mrb[14].mxu1  ;;  %v626_v16 = vadd.f32 %v1774_v8, %v625_v10 }
 0x372   : > { %v628_v14 = vpop.f32.mrb[15].mxu1  ;;  %v658_v15 = vsel %vm316_vm1, %v634_v7, -inf  ;;  %v2440_v20 = vadd.f32 %v1961_v11, %v1779_v19 }
 0x373   : > { %650 = vmax.xlane.f32.xlu0 %v649_v12  ;;  %v652_v18 = vsel %vm316_vm1, %v626_v16, -inf  ;;  %v2442_v22 = vadd.f32 %v1775_v21, %v628_v14 }
 0x374   : > { %v661_v25 = vsel %vm316_vm1, %v2440_v20, -inf }
 0x375   : > { %v655_v26 = vsel %vm316_vm1, %v2442_v22, -inf }
 0x377   : > { %659 = vmax.xlane.f32.xlu0 %v658_v15 }
 0x37b   : > { %653 = vmax.xlane.f32.xlu0 %v652_v18 }
 0x37f   : > { %734 = vrot.lane.b32.xlu1 %v2353_v39, %s2218_s23 }
 0x383   : > { %736 = vrot.lane.b32.xlu1 %v2358_v40, %s2218_s23 }
 0x391   : > { %732 = vrot.lane.b32.xlu0 %v2346_v37, %s2218_s23 }
 0x3a7   : > { %662 = vmax.xlane.f32.xlu1 %v661_v25 }
 0x3ab   : > { %656 = vmax.xlane.f32.xlu1 %v655_v26 }
 0x3bc   : > { %738 = vrot.lane.b32.xlu1 %v2365_v41, %s2218_s23 }
 0x3f8   : > { %v648_v28 = vpop.xlane.xlu0 %647 }
 0x3f9   : > { %v666_v29 = vsub.f32 %v618_v54, %v648_v28 }
 0x3fb   : > { %v676_v30 = vmul.f32 1.442695, %v666_v29  ;;  %v645_v31 = vpop.xlane.xlu1 %644 }
 0x3fc   : > { %v642_v32 = vpop.xlane.xlu0 %641  ;;  %v665_v35 = vsub.f32 %v613_v62, %v645_v31 }
 0x3fd   : > { %2110 = vpow2.f32 %v676_v30  ;;  %v664_v33 = vsub.f32 %v610_v58, %v642_v32 }
 0x3fe   : > { %v674_v42 = vmul.f32 1.442695, %v665_v35 }
 0x3ff   : > { %v672_v38 = vmul.f32 1.442695, %v664_v33  ;;  %v735_v53 = vpop.permute.xlu1 %734 }
 0x400   : > { %v651_v36 = vpop.xlane.xlu0 %650 }
 0x401   : > { %2112 = vpow2.f32 %v672_v38  ;;  %v667_v34 = vsub.f32 %v621_v2, %v651_v36 }
 0x403   : > { %v678_v43 = vmul.f32 1.442695, %v667_v34  ;;  %v737_v59 = vpop.permute.xlu1 %736 }
 0x404   : > { %v660_v44 = vpop.xlane.xlu0 %659 }
 0x405   : > { %2114 = vpow2.f32 %v678_v43  ;;  %v670_v45 = vsub.f32 %v634_v7, %v660_v44 }
 0x406   : > { %2116 = vpow2.f32 %v674_v42 }
 0x407   : > { %v2450_v46 = vpop.eup %2110  ;;  %v684_v47 = vmul.f32 1.442695, %v670_v45 }
 0x408   : > { %v654_v48 = vpop.xlane.xlu0 %653  ;;  %v694_v49 = vsel %vm316_vm1, %v2450_v46, 0.0 }
 0x409   : > { %2118 = vpow2.f32 %v684_v47  ;;  %v668_v50 = vsub.f32 %v626_v16, %v654_v48  ;;  %695 = vadd.xlane.f32.xlu0 %v694_v49 }
 0x40b   : > { %v2454_v51 = vpop.eup %2112  ;;  %v680_v52 = vmul.f32 1.442695, %v668_v50 }
 0x40c   : > { %v733_v54 = vpop.permute.xlu0 %732  ;;  %v688_v55 = vsel %vm316_vm1, %v2454_v51, 0.0 }
 0x40d   : > { %2120 = vpow2.f32 %v680_v52  ;;  %689 = vadd.xlane.f32.xlu0 %v688_v55  ;;  %1962 = vmatprep.subr.bf16.mxu0 %v733_v54 }
 0x40e   : > { %1963 = vmatpush3.bf16.msra.mxu0 %v733_v54 }
 0x40f   : > { %v2115_v56 = vpop.eup %2114  ;;  %1964 = vmatprep.subr.bf16.mxu0 %v735_v53 }
 0x410   : > { %v697_v57 = vsel %vm316_vm1, %v2115_v56, 0.0  ;;  %v2117_v58 = vpop.eup %2116 }
 0x411   : > { %698 = vadd.xlane.f32.xlu1 %v697_v57  ;;  %v691_v61 = vsel %vm316_vm1, %v2117_v58, 0.0 }
 0x412   : > { %1965 = vmatpush3.bf16.msra.mxu0 %v735_v53 }
 0x413   : > { %v2459_v60 = vpop.eup %2118  ;;  %1966 = vmatprep.subr.bf16.mxu0 %v737_v59 }
 0x414   : > { %v706_v62 = vsel %vm316_vm1, %v2459_v60, 0.0 }
 0x415   : > { %692 = vadd.xlane.f32.xlu1 %v691_v61  ;;  %707 = vadd.xlane.f32.xlu0 %v706_v62 }
 0x416   : > { %1967 = vmatpush3.bf16.msra.mxu0 %v737_v59 }
 0x417   : > { %v2464_v63 = vpop.eup %2120 }
 0x418   : > { %v700_v0 = vsel %vm316_vm1, %v2464_v63, 0.0 }
 0x419   : > { %701 = vadd.xlane.f32.xlu0 %v700_v0 }
 0x426   : > { %889 = vrot.lane.b32.xlu1 %v2258_v6, %s2219_s4 }
 0x42a   : > { %891 = vrot.lane.b32.xlu1 %v2274_v13, %s2219_s4 }
 0x434   : > { %v663_v1 = vpop.xlane.xlu1 %662 }
 0x435   : > { %v671_v2 = vsub.f32 %v2440_v20, %v663_v1 }
 0x437   : > { %v686_v4 = vmul.f32 1.442695, %v671_v2 }
 0x438   : > { %v657_v5 = vpop.xlane.xlu1 %656 }
 0x439   : > { %2122 = vpow2.f32 %v686_v4  ;;  %v669_v7 = vsub.f32 %v2442_v22, %v657_v5 }
 0x43b   : > { %v682_v8 = vmul.f32 1.442695, %v669_v7 }
 0x43c   : > { %v739_v10 = vpop.permute.xlu1 %738 }
 0x43d   : > { %1968 = vmatprep.subr.bf16.mxu0 %v739_v10  ;;  %2124 = vpow2.f32 %v682_v8 }
 0x43e   : > { %1969 = vmatpush3.bf16.msra.mxu0 %v739_v10 }
 0x443   : > { %v2123_v11 = vpop.eup %2122 }
 0x444   : > { %v709_v12 = vsel %vm316_vm1, %v2123_v11, 0.0 }
 0x445   : > { %710 = vadd.xlane.f32.xlu0 %v709_v12  ;;  %v1839_v12 = vld [vmem:[%s2780_s1 + $0x40] sm:$0xff]  }
 0x447   : > { %v2125_v14 = vpop.eup %2124 }
 0x448   : > { %v703_v15 = vsel %vm316_vm1, %v2125_v14, 0.0 }
 0x44e   : > { %704 = vadd.xlane.f32.xlu1 %v703_v15  ;;  %v1782_v15 = vunpack.c.l.bf16 %v1839_v12 }
 0x45b   : > { %887 = vrot.lane.b32.xlu0 %v2255_v3, %s2219_s4 }
 0x45f   : > { %893 = vrot.lane.b32.xlu1 %v2282_v17, %s2219_s4  ;;  %879 = vrot.lane.b32.xlu0 %v2264_v9, %s2219_s4 }
 0x463   : > { %881 = vrot.lane.b32.xlu1 %v2288_v23, %s2219_s4  ;;  %883 = vrot.lane.b32.xlu0 %v2290_v24, %s2219_s4 }
 0x467   : > { %885 = vrot.lane.b32.xlu1 %v2296_v27, %s2219_s4 }
 0x496   : > { %v696_v16 = vpop.xlane.xlu0 %695 }
 0x49a   : > { %v690_v18 = vpop.xlane.xlu0 %689 }
 0x49e   : > { %v699_v19 = vpop.xlane.xlu1 %698 }
 0x49f   : > { %2126 = vrcp.f32 %v699_v19 }
 0x4a0   : > { %2128 = vrcp.f32 %v690_v18  ;;  %v1783_v18 = vunpack.c.h.bf16 %v1839_v12 }
 0x4a1   : > { %2130 = vrcp.f32 %v696_v16 }
 0x4a2   : > { %v693_v20 = vpop.xlane.xlu1 %692  ;;  %v708_v35 = vpop.xlane.xlu0 %707 }
 0x4a3   : > { %2132 = vrcp.f32 %v693_v20 }
 0x4a6   : > { %v702_v38 = vpop.xlane.xlu0 %701  ;;  %v890_v36 = vpop.permute.xlu1 %889 }
 0x4a9   : > { %v2127_v21 = vpop.eup %2126 }
 0x4aa   : > { %v2129_v22 = vpop.eup %2128  ;;  %v723_v28 = vmul.f32 %v2127_v21, %v2115_v56  ;;  %v892_v43 = vpop.permute.xlu1 %891 }
 0x4ab   : > { %v2131_v25 = vpop.eup %2130  ;;  %v720_v29 = vmul.f32 %v2129_v22, %v2454_v51  ;;  %v914_v53 = vsel %vm226_vm0, %v892_v43, 0  ;;  %v1842_v22 = vld [vmem:[%s2780_s1 + $0x58] sm:$0xff]  }
 0x4ac   : > { %v722_v31 = vmul.f32 %v2131_v25, %v2450_v46  ;;  %v911_v46 = vsel %vm226_vm0, %v890_v36, 0 }
 0x4ad   : > { %v2133_v26 = vpop.eup %2132 }
 0x4ae   : > { %v721_v30 = vmul.f32 %v2133_v26, %v2117_v58  ;;  %v729_v33 = vpack.c.bf16 %v723_v28, %v722_v31  ;;  %v1794_v31 = vunpack.c.l.bf16 %v1842_v22 }
 0x4b0   : > { %v728_v32 = vpack.c.bf16 %v721_v30, %v720_v29 }
 0x4b2   : > { %1970 = vmatprep.mubr.msk.bf16.mxu0 %vm316_vm1, %v728_v32 }
 0x4b3   : > { %1971 = vmatmul.mubr.msk.bf16.vlgmr.msra.gmra.mrb[8].mxu0 %vm316_vm1, %v729_v33  ;;  %v1841_v33 = vld [vmem:[%s2780_s1 + $0x50] sm:$0xff]  }
 0x4d2   : > { %v711_v34 = vpop.xlane.xlu0 %710 }
 0x4d3   : > { %2134 = vrcp.f32 %v711_v34 }
 0x4d4   : > { %2136 = vrcp.f32 %v702_v38 }
 0x4d5   : > { %2138 = vrcp.f32 %v708_v35 }
 0x4d6   : > { %v888_v42 = vpop.permute.xlu0 %887 }
 0x4d7   : > { %v908_v44 = vsel %vm226_vm0, %v888_v42, 0  ;;  %2050 = vmatprep.subr.msk.bf16.mxu0 %vm226_vm0, %v888_v42  ;;  %v1790_v42 = vunpack.c.l.bf16 %v1841_v33 }
 0x4d8   : > { %1979 = vmatpush3.bf16.xpose.msra.mxu0 %v908_v44 }
 0x4d9   : > { %2051 = vmatprep.subr.msk.bf16.mxu0 %vm226_vm0, %v890_v36 }
 0x4da   : > { %v880_v59 = vpop.permute.xlu0 %879 }
 0x4db   : > { %v705_v45 = vpop.xlane.xlu1 %704 }
 0x4dc   : > { %2140 = vrcp.f32 %v705_v45 }
 0x4dd   : > { %v2135_v47 = vpop.eup %2134 }
 0x4de   : > { %v2137_v48 = vpop.eup %2136  ;;  %v727_v51 = vmul.f32 %v2135_v47, %v2123_v11  ;;  %v1840_v11 = vld [vmem:[%s2780_s1 + $0x48] sm:$0xff]  }
 0x4df   : > { %v2139_v49 = vpop.eup %2138  ;;  %v894_v52 = vpop.permute.xlu1 %893  ;;  %v724_v54 = vmul.f32 %v2137_v48, %v2464_v63  ;;  %v1787_v26 = vunpack.c.h.bf16 %v1840_v11 }
 0x4e0   : > { %1981 = vmatpush3.bf16.xpose.msra.mxu0 %v911_v46  ;;  %v726_v56 = vmul.f32 %v2139_v49, %v2459_v60  ;;  %v917_v61 = vsel %vm226_vm0, %v894_v52, 0  ;;  %v884_v63 = vpop.permute.xlu0 %883 }
 0x4e1   : > { %2052 = vmatprep.subr.msk.bf16.mxu0 %vm226_vm0, %v892_v43 }
 0x4e2   : > { %v731_v58 = vpack.c.bf16 %v727_v51, %v726_v56 }
 0x4e3   : > { %v882_v62 = vpop.permute.xlu1 %881 }
 0x4e6   : > { %v2141_v50 = vpop.eup %2140 }
 0x4e7   : > { %v725_v55 = vmul.f32 %v2141_v50, %v2125_v14  ;;  %v886_v60 = vpop.permute.xlu1 %885  ;;  %v1786_v14 = vunpack.c.l.bf16 %v1840_v11  ;;  %v1795_v50 = vunpack.c.h.bf16 %v1842_v22 }
 0x4e8   : > { %1983 = vmatpush3.bf16.xpose.msra.mxu0 %v914_v53 }
 0x4e9   : > { %v730_v57 = vpack.c.bf16 %v725_v55, %v724_v54  ;;  %2053 = vmatprep.subr.msk.bf16.mxu0 %vm226_vm0, %v894_v52  ;;  %v1791_v52 = vunpack.c.h.bf16 %v1841_v33 }
 0x4eb   : > { %1974 = vmatprep.mubr.msk.bf16.mxu0 %vm316_vm1, %v730_v57 }
 0x4ec   : > { %1975 = vmatmul.mubr.msk.bf16.gmra.mrb[12].mxu0 %vm316_vm1, %v731_v58 }
 0x4ed   : > { %1986 = vmatprep.mubr.msk.bf16.mxu0 %vm226_vm0, %v880_v59 }
 0x4f0   : > { %1985 = vmatpush3.bf16.xpose.msra.mxu0 %v917_v61 }
 0x4f7   : > { %1987 = vmatmul.mubr.msk.bf16.vlgmr.msra.gmra.mrb[16].mxu0 %vm226_vm0, %v882_v62 }
 0x4f8   : > { %1990 = vmatprep.mubr.msk.bf16.mxu0 %vm226_vm0, %v884_v63 }
 0x4ff   : > { %1991 = vmatmul.mubr.msk.bf16.gmra.mrb[20].mxu0 %vm226_vm0, %v886_v60 }
 0x586   : > { %v2508_v0 = vpop.f32.mrb[8].mxu0 }
 0x587   : > { %v2510_v1 = vpop.f32.mrb[9].mxu0 }
 0x588   : > { %v2512_v2 = vpop.f32.mrb[10].mxu0 }
 0x589   : > { %v2514_v4 = vpop.f32.mrb[11].mxu0 }
 0x5bf   : > { %v2516_v5 = vpop.f32.mrb[12].mxu0 }
 0x5c0   : > { %v2518_v7 = vpop.f32.mrb[13].mxu0 }
 0x5c1   : > { %v2520_v8 = vpop.f32.mrb[14].mxu0 }
 0x5c2   : > { %v2522_v10 = vpop.f32.mrb[15].mxu0 }
 0x5ca   : > { %v1988_v16 = vpop.f32.mrb[16].mxu0 }
 0x5cb   : > { %v962_v19 = vadd.f32 %v1988_v16, %v1786_v14  ;;  %v953_v20 = vpop.f32.mrb[17].mxu0 }
 0x5cc   : > { %v1989_v21 = vpop.f32.mrb[18].mxu0  ;;  %v954_v25 = vadd.f32 %v1782_v15, %v953_v20 }
 0x5cd   : > { %v956_v28 = vpop.f32.mrb[19].mxu0  ;;  %v990_v29 = vsel %vm316_vm1, %v962_v19, -inf  ;;  %v965_v35 = vadd.f32 %v1989_v21, %v1787_v26 }
 0x5ce   : > { %v957_v30 = vadd.f32 %v1783_v18, %v956_v28  ;;  %991 = vmax.xlane.f32.xlu0 %v990_v29  ;;  %v984_v38 = vsel %vm316_vm1, %v954_v25, -inf }
 0x5cf   : > { %v993_v45 = vsel %vm316_vm1, %v965_v35, -inf }
 0x5d0   : > { %v987_v32 = vsel %vm316_vm1, %v957_v30, -inf }
 0x5d1   : > { %988 = vmax.xlane.f32.xlu1 %v987_v32 }
 0x5d2   : > { %985 = vmax.xlane.f32.xlu0 %v984_v38  ;;  %v1992_v36 = vpop.f32.mrb[20].mxu0 }
 0x5d3   : > { %v978_v34 = vadd.f32 %v1992_v36, %v1794_v31  ;;  %v969_v43 = vpop.f32.mrb[21].mxu0 }
 0x5d4   : > { %v1993_v44 = vpop.f32.mrb[22].mxu0  ;;  %v970_v48 = vadd.f32 %v1790_v42, %v969_v43 }
 0x5d5   : > { %v972_v46 = vpop.f32.mrb[23].mxu0  ;;  %v1002_v47 = vsel %vm316_vm1, %v978_v34, -inf  ;;  %v2548_v51 = vadd.f32 %v1993_v44, %v1795_v50 }
 0x5d6   : > { %994 = vmax.xlane.f32.xlu0 %v993_v45  ;;  %v996_v49 = vsel %vm316_vm1, %v970_v48, -inf  ;;  %v2550_v53 = vadd.f32 %v1791_v52, %v972_v46 }
 0x5d7   : > { %v1005_v54 = vsel %vm316_vm1, %v2548_v51, -inf }
 0x5d8   : > { %v999_v55 = vsel %vm316_vm1, %v2550_v53, -inf }
 0x5da   : > { %1003 = vmax.xlane.f32.xlu0 %v1002_v47 }
 0x5de   : > { %997 = vmax.xlane.f32.xlu0 %v996_v49 }
 0x5e2   : > { %1078 = vrot.lane.b32.xlu1 %v2353_v39, %s2219_s4 }
 0x5e6   : > { %1080 = vrot.lane.b32.xlu1 %v2358_v40, %s2219_s4 }
 0x5f4   : > { %1076 = vrot.lane.b32.xlu0 %v2346_v37, %s2219_s4 }
 0x60a   : > { %1006 = vmax.xlane.f32.xlu1 %v1005_v54 }
 0x60e   : > { %1000 = vmax.xlane.f32.xlu1 %v999_v55 }
 0x61f   : > { %1082 = vrot.lane.b32.xlu1 %v2365_v41, %s2219_s4 }
 0x65b   : > { %v992_v39 = vpop.xlane.xlu0 %991 }
 0x65c   : > { %v1010_v40 = vsub.f32 %v962_v19, %v992_v39 }
 0x65e   : > { %v1020_v37 = vmul.f32 1.442695, %v1010_v40  ;;  %v989_v56 = vpop.xlane.xlu1 %988 }
 0x65f   : > { %v986_v57 = vpop.xlane.xlu0 %985  ;;  %v1009_v59 = vsub.f32 %v957_v30, %v989_v56 }
 0x660   : > { %2142 = vpow2.f32 %v1020_v37  ;;  %v1008_v58 = vsub.f32 %v954_v25, %v986_v57 }
 0x661   : > { %v1018_v60 = vmul.f32 1.442695, %v1009_v59 }
 0x662   : > { %v1016_v61 = vmul.f32 1.442695, %v1008_v58  ;;  %v1079_v22 = vpop.permute.xlu1 %1078 }
 0x663   : > { %v995_v62 = vpop.xlane.xlu0 %994 }
 0x664   : > { %2144 = vpow2.f32 %v1016_v61  ;;  %v1011_v63 = vsub.f32 %v965_v35, %v995_v62 }
 0x666   : > { %v1022_v11 = vmul.f32 1.442695, %v1011_v63  ;;  %v1081_v31 = vpop.permute.xlu1 %1080 }
 0x667   : > { %v1004_v12 = vpop.xlane.xlu0 %1003 }
 0x668   : > { %2146 = vpow2.f32 %v1022_v11  ;;  %v1014_v14 = vsub.f32 %v978_v34, %v1004_v12 }
 0x669   : > { %2148 = vpow2.f32 %v1018_v60 }
 0x66a   : > { %v2558_v15 = vpop.eup %2142  ;;  %v1028_v41 = vmul.f32 1.442695, %v1014_v14 }
 0x66b   : > { %v998_v16 = vpop.xlane.xlu0 %997  ;;  %v1038_v18 = vsel %vm316_vm1, %v2558_v15, 0.0 }
 0x66c   : > { %2150 = vpow2.f32 %v1028_v41  ;;  %v1012_v19 = vsub.f32 %v970_v48, %v998_v16  ;;  %1039 = vadd.xlane.f32.xlu0 %v1038_v18 }
 0x66e   : > { %v2562_v20 = vpop.eup %2144  ;;  %v1024_v21 = vmul.f32 1.442695, %v1012_v19 }
 0x66f   : > { %v1077_v25 = vpop.permute.xlu0 %1076  ;;  %v1032_v26 = vsel %vm316_vm1, %v2562_v20, 0.0 }
 0x670   : > { %2152 = vpow2.f32 %v1024_v21  ;;  %1033 = vadd.xlane.f32.xlu0 %v1032_v26  ;;  %1994 = vmatprep.subr.bf16.mxu1 %v1077_v25 }
 0x671   : > { %1995 = vmatpush3.bf16.msra.mxu1 %v1077_v25 }
 0x672   : > { %v2147_v28 = vpop.eup %2146  ;;  %1996 = vmatprep.subr.bf16.mxu1 %v1079_v22 }
 0x673   : > { %v1041_v29 = vsel %vm316_vm1, %v2147_v28, 0.0  ;;  %v2149_v30 = vpop.eup %2148 }
 0x674   : > { %1042 = vadd.xlane.f32.xlu1 %v1041_v29  ;;  %v1035_v33 = vsel %vm316_vm1, %v2149_v30, 0.0 }
 0x675   : > { %1997 = vmatpush3.bf16.msra.mxu1 %v1079_v22 }
 0x676   : > { %v2567_v32 = vpop.eup %2150  ;;  %1998 = vmatprep.subr.bf16.mxu1 %v1081_v31 }
 0x677   : > { %v1050_v35 = vsel %vm316_vm1, %v2567_v32, 0.0 }
 0x678   : > { %1036 = vadd.xlane.f32.xlu1 %v1035_v33  ;;  %1051 = vadd.xlane.f32.xlu0 %v1050_v35 }
 0x679   : > { %1999 = vmatpush3.bf16.msra.mxu1 %v1081_v31 }
 0x67a   : > { %v2572_v38 = vpop.eup %2152 }
 0x67b   : > { %v1044_v36 = vsel %vm316_vm1, %v2572_v38, 0.0 }
 0x67c   : > { %1045 = vadd.xlane.f32.xlu0 %v1044_v36 }
 0x689   : > { %1233 = vrot.lane.b32.xlu1 %v2258_v6, %s2220_s16 }
 0x68d   : > { %1235 = vrot.lane.b32.xlu1 %v2274_v13, %s2220_s16 }
 0x697   : > { %v1007_v34 = vpop.xlane.xlu1 %1006 }
 0x698   : > { %v1015_v42 = vsub.f32 %v2548_v51, %v1007_v34 }
 0x69a   : > { %v1030_v43 = vmul.f32 1.442695, %v1015_v42 }
 0x69b   : > { %v1001_v44 = vpop.xlane.xlu1 %1000 }
 0x69c   : > { %2154 = vpow2.f32 %v1030_v43  ;;  %v1013_v45 = vsub.f32 %v2550_v53, %v1001_v44  ;;  %v1843_v44 = vld [vmem:[%s2780_s1 + $0x60] sm:$0xff]  }
 0x69e   : > { %v1026_v46 = vmul.f32 1.442695, %v1013_v45  ;;  %v1844_v45 = vld [vmem:[%s2780_s1 + $0x68] sm:$0xff]  }
 0x69f   : > { %v1083_v47 = vpop.permute.xlu1 %1082 }
 0x6a0   : > { %2000 = vmatprep.subr.bf16.mxu1 %v1083_v47  ;;  %2156 = vpow2.f32 %v1026_v46  ;;  %v1798_v46 = vunpack.c.l.bf16 %v1843_v44 }
 0x6a1   : > { %2001 = vmatpush3.bf16.msra.mxu1 %v1083_v47  ;;  %v1802_v47 = vunpack.c.l.bf16 %v1844_v45 }
 0x6a6   : > { %v2155_v48 = vpop.eup %2154 }
 0x6a7   : > { %v1053_v49 = vsel %vm316_vm1, %v2155_v48, 0.0 }
 0x6a8   : > { %1054 = vadd.xlane.f32.xlu0 %v1053_v49  ;;  %v1799_v49 = vunpack.c.h.bf16 %v1843_v44 }
 0x6aa   : > { %v2157_v6 = vpop.eup %2156 }
 0x6ab   : > { %v1047_v13 = vsel %vm316_vm1, %v2157_v6, 0.0 }
 0x6b1   : > { %1048 = vadd.xlane.f32.xlu1 %v1047_v13 }
 0x6be   : > { %1231 = vrot.lane.b32.xlu0 %v2255_v3, %s2220_s16 }
 0x6c2   : > { %1237 = vrot.lane.b32.xlu1 %v2282_v17, %s2220_s16  ;;  %1223 = vrot.lane.b32.xlu0 %v2264_v9, %s2220_s16 }
 0x6c6   : > { %1225 = vrot.lane.b32.xlu1 %v2288_v23, %s2220_s16  ;;  %1227 = vrot.lane.b32.xlu0 %v2290_v24, %s2220_s16 }
 0x6ca   : > { %1229 = vrot.lane.b32.xlu1 %v2296_v27, %s2220_s16 }
 0x6f9   : > { %v1040_v50 = vpop.xlane.xlu0 %1039 }
 0x6fd   : > { %v1034_v51 = vpop.xlane.xlu0 %1033 }
 0x701   : > { %v1043_v52 = vpop.xlane.xlu1 %1042 }
 0x702   : > { %2158 = vrcp.f32 %v1043_v52 }
 0x703   : > { %2160 = vrcp.f32 %v1034_v51 }
 0x704   : > { %2162 = vrcp.f32 %v1040_v50 }
 0x705   : > { %v1037_v3 = vpop.xlane.xlu1 %1036  ;;  %v1052_v37 = vpop.xlane.xlu0 %1051 }
 0x706   : > { %2164 = vrcp.f32 %v1037_v3  ;;  %v1803_v3 = vunpack.c.h.bf16 %v1844_v45 }
 0x709   : > { %v1046_v56 = vpop.xlane.xlu0 %1045  ;;  %v1234_v57 = vpop.permute.xlu1 %1233 }
 0x70a   : > { %v1255_v60 = vsel %vm226_vm0, %v1234_v57, 0 }
 0x70c   : > { %v2159_v17 = vpop.eup %2158 }
 0x70d   : > { %v2161_v53 = vpop.eup %2160  ;;  %v1067_v55 = vmul.f32 %v2159_v17, %v2147_v28  ;;  %v1236_v61 = vpop.permute.xlu1 %1235 }
 0x70e   : > { %v2163_v9 = vpop.eup %2162  ;;  %v1064_v23 = vmul.f32 %v2161_v53, %v2562_v20  ;;  %v1258_v18 = vsel %vm226_vm0, %v1236_v61, 0 }
 0x70f   : > { %v1066_v24 = vmul.f32 %v2163_v9, %v2558_v15  ;;  %v1846_v9 = vld [vmem:[%s2780_s1 + $0x78] sm:$0xff]  }
 0x710   : > { %v2165_v54 = vpop.eup %2164 }
 0x711   : > { %v1065_v39 = vmul.f32 %v2165_v54, %v2149_v30  ;;  %v1073_v27 = vpack.c.bf16 %v1067_v55, %v1066_v24  ;;  %v1845_v54 = vld [vmem:[%s2780_s1 + $0x70] sm:$0xff]  }
 0x713   : > { %v1072_v40 = vpack.c.bf16 %v1065_v39, %v1064_v23  ;;  %v1806_v23 = vunpack.c.l.bf16 %v1845_v54 }
 0x715   : > { %2002 = vmatprep.mubr.msk.bf16.mxu1 %vm316_vm1, %v1072_v40 }
 0x716   : > { %2003 = vmatmul.mubr.msk.bf16.vlgmr.msra.gmra.mrb[16].mxu1 %vm316_vm1, %v1073_v27  ;;  %v1811_v27 = vunpack.c.h.bf16 %v1846_v9 }
 0x735   : > { %v1055_v58 = vpop.xlane.xlu0 %1054 }
 0x736   : > { %2166 = vrcp.f32 %v1055_v58 }
 0x737   : > { %2168 = vrcp.f32 %v1046_v56 }
 0x738   : > { %2170 = vrcp.f32 %v1052_v37  ;;  %v1807_v37 = vunpack.c.h.bf16 %v1845_v54 }
 0x739   : > { %v1232_v59 = vpop.permute.xlu0 %1231 }
 0x73a   : > { %v1252_v62 = vsel %vm226_vm0, %v1232_v59, 0  ;;  %2054 = vmatprep.subr.msk.bf16.mxu1 %vm226_vm0, %v1232_v59 }
 0x73b   : > { %2011 = vmatpush3.bf16.xpose.msra.mxu1 %v1252_v62 }
 0x73c   : > { %2055 = vmatprep.subr.msk.bf16.mxu1 %vm226_vm0, %v1234_v57  ;;  %v1810_v57 = vunpack.c.l.bf16 %v1846_v9 }
 0x73d   : > { %v1224_v26 = vpop.permute.xlu0 %1223 }
 0x73e   : > { %v1049_v63 = vpop.xlane.xlu1 %1048 }
 0x73f   : > { %2172 = vrcp.f32 %v1049_v63 }
 0x740   : > { %v2167_v11 = vpop.eup %2166 }
 0x741   : > { %v2169_v12 = vpop.eup %2168  ;;  %v1071_v41 = vmul.f32 %v2167_v11, %v2155_v48  ;;  %v1228_v30 = vpop.permute.xlu0 %1227 }
 0x742   : > { %v2171_v14 = vpop.eup %2170  ;;  %v1238_v16 = vpop.permute.xlu1 %1237  ;;  %v1068_v19 = vmul.f32 %v2169_v12, %v2572_v38 }
 0x743   : > { %2013 = vmatpush3.bf16.xpose.msra.mxu1 %v1255_v60  ;;  %v1070_v21 = vmul.f32 %v2171_v14, %v2567_v32  ;;  %v1261_v28 = vsel %vm226_vm0, %v1238_v16, 0 }
 0x744   : > { %2056 = vmatprep.subr.msk.bf16.mxu1 %vm226_vm0, %v1236_v61 }
 0x745   : > { %v1075_v25 = vpack.c.bf16 %v1071_v41, %v1070_v21 }
 0x746   : > { %v1226_v29 = vpop.permute.xlu1 %1225 }
 0x749   : > { %v2173_v15 = vpop.eup %2172 }
 0x74a   : > { %v1069_v20 = vmul.f32 %v2173_v15, %v2157_v6  ;;  %v1230_v31 = vpop.permute.xlu1 %1229 }
 0x74b   : > { %2015 = vmatpush3.bf16.xpose.msra.mxu1 %v1258_v18 }
 0x74c   : > { %v1074_v22 = vpack.c.bf16 %v1069_v20, %v1068_v19  ;;  %2057 = vmatprep.subr.msk.bf16.mxu1 %vm226_vm0, %v1238_v16 }
 0x74e   : > { %2006 = vmatprep.mubr.msk.bf16.mxu1 %vm316_vm1, %v1074_v22 }
 0x74f   : > { %2007 = vmatmul.mubr.msk.bf16.gmra.mrb[20].mxu1 %vm316_vm1, %v1075_v25 }
 0x750   : > { %2018 = vmatprep.mubr.msk.bf16.mxu1 %vm226_vm0, %v1224_v26 }
 0x753   : > { %2017 = vmatpush3.bf16.xpose.msra.mxu1 %v1261_v28 }
 0x75a   : > { %2019 = vmatmul.mubr.msk.bf16.vlgmr.msra.gmra.mrb[24].mxu1 %vm226_vm0, %v1226_v29 }
 0x75b   : > { %2022 = vmatprep.mubr.msk.bf16.mxu1 %vm226_vm0, %v1228_v30 }
 0x762   : > { %2023 = vmatmul.mubr.msk.bf16.gmra.mrb[28].mxu1 %vm226_vm0, %v1230_v31 }
 0x7e9   : > { %v2616_v32 = vpop.f32.mrb[16].mxu1 }
 0x7ea   : > { %v2618_v33 = vpop.f32.mrb[17].mxu1 }
 0x7eb   : > { %v2620_v35 = vpop.f32.mrb[18].mxu1 }
 0x7ec   : > { %v2622_v38 = vpop.f32.mrb[19].mxu1 }
 0x822   : > { %v2624_v36 = vpop.f32.mrb[20].mxu1 }
 0x823   : > { %v2626_v34 = vpop.f32.mrb[21].mxu1 }
 0x824   : > { %v2628_v42 = vpop.f32.mrb[22].mxu1 }
 0x825   : > { %v2630_v43 = vpop.f32.mrb[23].mxu1 }
 0x82d   : > { %v2020_v48 = vpop.f32.mrb[24].mxu1 }
 0x82e   : > { %v1297_v6 = vpop.f32.mrb[25].mxu1  ;;  %v1306_v52 = vadd.f32 %v2020_v48, %v1802_v47 }
 0x82f   : > { %v1298_v13 = vadd.f32 %v1798_v46, %v1297_v6  ;;  %v2021_v50 = vpop.f32.mrb[26].mxu1 }
 0x830   : > { %v1300_v51 = vpop.f32.mrb[27].mxu1  ;;  %v1309_v39 = vadd.f32 %v2021_v50, %v1803_v3  ;;  %v1334_v40 = vsel %vm316_vm1, %v1306_v52, -inf }
 0x831   : > { %v1301_v17 = vadd.f32 %v1799_v49, %v1300_v51  ;;  %v1328_v53 = vsel %vm316_vm1, %v1298_v13, -inf }
 0x832   : > { %1329 = vmax.xlane.f32.xlu0 %v1328_v53  ;;  %v1337_v60 = vsel %vm316_vm1, %v1309_v39, -inf }
 0x833   : > { %v1331_v55 = vsel %vm316_vm1, %v1301_v17, -inf }
 0x834   : > { %1332 = vmax.xlane.f32.xlu1 %v1331_v55 }
 0x835   : > { %v2024_v24 = vpop.f32.mrb[28].mxu1 }
 0x836   : > { %1335 = vmax.xlane.f32.xlu0 %v1334_v40  ;;  %v1313_v56 = vpop.f32.mrb[29].mxu1  ;;  %v1322_v11 = vadd.f32 %v2024_v24, %v1810_v57  ;;  %v2207_v24 = vld [vmem:[%s2250_s14 + $0x38] ss:$12 sps:$4 sm:$0xff]  }
 0x837   : > { %v1314_v58 = vadd.f32 %v1806_v23, %v1313_v56  ;;  %v2025_v59 = vpop.f32.mrb[30].mxu1 }
 0x838   : > { %v1316_v61 = vpop.f32.mrb[31].mxu1  ;;  %v2647_v62 = vadd.f32 %v2025_v59, %v1811_v27  ;;  %v1346_v41 = vsel %vm316_vm1, %v1322_v11, -inf  ;;  %v2208_v27 = vld [vmem:[%s2250_s14 + $0x8] ss:$12 sps:$4 sm:$0xff]  }
 0x839   : > { %v2649_v63 = vadd.f32 %v1807_v37, %v1316_v61  ;;  %v1340_v14 = vsel %vm316_vm1, %v1314_v58, -inf }
 0x83a   : > { %1338 = vmax.xlane.f32.xlu0 %v1337_v60  ;;  %v1349_v15 = vsel %vm316_vm1, %v2647_v62, -inf }
 0x83b   : > { %v1343_v12 = vsel %vm316_vm1, %v2649_v63, -inf }
 0x83c   : > { %1344 = vmax.xlane.f32.xlu1 %v1343_v12 }
 0x83e   : > { %1341 = vmax.xlane.f32.xlu0 %v1340_v14 }
 0x840   : > { %1350 = vmax.xlane.f32.xlu1 %v1349_v15 }
 0x842   : > { %1347 = vmax.xlane.f32.xlu0 %v1346_v41 }
 0x8bf   : > { %v1330_v16 = vpop.xlane.xlu0 %1329 }
 0x8c0   : > { %v1352_v18 = vsub.f32 %v1298_v13, %v1330_v16 }
 0x8c1   : > { %v1333_v19 = vpop.xlane.xlu1 %1332 }
 0x8c2   : > { %v1360_v22 = vmul.f32 1.442695, %v1352_v18  ;;  %v1353_v25 = vsub.f32 %v1301_v17, %v1333_v19 }
 0x8c3   : > { %v1336_v20 = vpop.xlane.xlu0 %1335 }
 0x8c4   : > { %v1354_v21 = vsub.f32 %v1306_v52, %v1336_v20  ;;  %v1362_v30 = vmul.f32 1.442695, %v1353_v25 }
 0x8c6   : > { %v1364_v26 = vmul.f32 1.442695, %v1354_v21 }
 0x8c7   : > { %v1339_v28 = vpop.xlane.xlu0 %1338 }
 0x8c8   : > { %2174 = vpow2.f32 %v1364_v26  ;;  %v1355_v29 = vsub.f32 %v1309_v39, %v1339_v28  ;;  %v2206_v39 = vld [vmem:[%s2250_s14 + $0x20] ss:$12 sps:$4 sm:$0xff]  }
 0x8c9   : > { %2176 = vpow2.f32 %v1360_v22  ;;  %v1345_v40 = vpop.xlane.xlu1 %1344 }
 0x8ca   : > { %v1366_v31 = vmul.f32 1.442695, %v1355_v29  ;;  %v1357_v57 = vsub.f32 %v2649_v63, %v1345_v40 }
 0x8cb   : > { %v1342_v44 = vpop.xlane.xlu0 %1341 }
 0x8cc   : > { %2178 = vpow2.f32 %v1366_v31  ;;  %v1356_v45 = vsub.f32 %v1314_v58, %v1342_v44  ;;  %v1370_v59 = vmul.f32 1.442695, %v1357_v57 }
 0x8cd   : > { %2180 = vpow2.f32 %v1362_v30  ;;  %v1351_v37 = vpop.xlane.xlu1 %1350 }
 0x8ce   : > { %v1368_v49 = vmul.f32 1.442695, %v1356_v45  ;;  %v1359_v56 = vsub.f32 %v2647_v62, %v1351_v37 }
 0x8cf   : > { %v1348_v46 = vpop.xlane.xlu0 %1347 }
 0x8d0   : > { %v1358_v47 = vsub.f32 %v1322_v11, %v1348_v46  ;;  %v1374_v58 = vmul.f32 1.442695, %v1359_v56 }
 0x8d2   : > { %v2658_v48 = vpop.eup %2174  ;;  %v1372_v6 = vmul.f32 1.442695, %v1358_v47 }
 0x8d3   : > { %v1382_v13 = vsel %vm316_vm1, %v2658_v48, 0.0  ;;  %v2662_v50 = vpop.eup %2176 }
 0x8d4   : > { %2182 = vpow2.f32 %v1372_v6  ;;  %1383 = vadd.xlane.f32.xlu0 %v1382_v13  ;;  %v1376_v52 = vsel %vm316_vm1, %v2662_v50, 0.0 }
 0x8d5   : > { %2184 = vpow2.f32 %v1368_v49 }
 0x8d6   : > { %v2664_v51 = vpop.eup %2178  ;;  %2186 = vpow2.f32 %v1374_v58 }
 0x8d7   : > { %v1385_v3 = vsel %vm316_vm1, %v2664_v51, 0.0  ;;  %v2181_v17 = vpop.eup %2180  ;;  %2188 = vpow2.f32 %v1370_v59 }
 0x8d8   : > { %1377 = vadd.xlane.f32.xlu0 %v1376_v52  ;;  %1386 = vadd.xlane.f32.xlu1 %v1385_v3  ;;  %v1379_v53 = vsel %vm316_vm1, %v2181_v17, 0.0 }
 0x8dc   : > { %1380 = vadd.xlane.f32.xlu1 %v1379_v53 }
 0x8de   : > { %v2671_v9 = vpop.eup %2182 }
 0x8df   : > { %v1394_v54 = vsel %vm316_vm1, %v2671_v9, 0.0  ;;  %v2675_v55 = vpop.eup %2184 }
 0x8e0   : > { %1395 = vadd.xlane.f32.xlu0 %v1394_v54  ;;  %v1388_v23 = vsel %vm316_vm1, %v2675_v55, 0.0 }
 0x8e4   : > { %1389 = vadd.xlane.f32.xlu0 %v1388_v23 }
 0x8ed   : > { %1422 = vrot.lane.b32.xlu1 %v2206_v39, %s2220_s16 }
 0x8f1   : > { %1424 = vrot.lane.b32.xlu1 %v2207_v24, %s2220_s16 }
 0x8fa   : > { %1420 = vrot.lane.b32.xlu0 %v2208_v27, %s2220_s16 }
 0x8fe   : > { %829 = vrot.lane.b32.xlu0 %v2510_v1, %s2220_s16  ;;  %v2697_v1 = vpop.eup %2186 }
 0x8ff   : > { %v2703_v61 = vpop.eup %2188 }
 0x902   : > { %833 = vrot.lane.b32.xlu0 %v2508_v0, %s2220_s16  ;;  %v1397_v0 = vsel %vm316_vm1, %v2697_v1, 0.0 }
 0x906   : > { %837 = vrot.lane.b32.xlu0 %v2518_v7, %s2220_s16  ;;  %v2209_v7 = vld [vmem:[%s2250_s14 + $0x50] ss:$12 sps:$4 sm:$0xff]   ;;  %s1739_s14 = sshll.u32 %s2783_s10, 5 }
 0x90a   : > { %841 = vrot.lane.b32.xlu0 %v2516_v5, %s2220_s16  ;;  %v1391_v5 = vsel %vm316_vm1, %v2703_v61, 0.0 }
 0x90e   : > { %1173 = vrot.lane.b32.xlu0 %v2618_v33, %s2219_s4 }
 0x912   : > { %1177 = vrot.lane.b32.xlu0 %v2616_v32, %s2219_s4 }
 0x915   : > { %1398 = vadd.xlane.f32.xlu1 %v1397_v0 }
 0x916   : > { %1181 = vrot.lane.b32.xlu0 %v2626_v34, %s2219_s4 }
 0x919   : > { %1392 = vadd.xlane.f32.xlu1 %v1391_v5 }
 0x91a   : > { %1185 = vrot.lane.b32.xlu0 %v2624_v36, %s2219_s4 }
 0x92a   : > { %1426 = vrot.lane.b32.xlu1 %v2209_v7, %s2220_s16 }
 0x92e   : > { %831 = vrot.lane.b32.xlu1 %v2514_v4, %s2220_s16 }
 0x932   : > { %835 = vrot.lane.b32.xlu1 %v2512_v2, %s2220_s16 }
 0x936   : > { %839 = vrot.lane.b32.xlu1 %v2522_v10, %s2220_s16 }
 0x93a   : > { %843 = vrot.lane.b32.xlu1 %v2520_v8, %s2220_s16 }
 0x93e   : > { %1175 = vrot.lane.b32.xlu1 %v2622_v38, %s2219_s4 }
 0x942   : > { %1179 = vrot.lane.b32.xlu1 %v2620_v35, %s2219_s4 }
 0x946   : > { %1183 = vrot.lane.b32.xlu1 %v2630_v43, %s2219_s4 }
 0x94a   : > { %1187 = vrot.lane.b32.xlu1 %v2628_v42, %s2219_s4 }
 0x961   : > { %v1384_v4 = vpop.xlane.xlu0 %1383 }
 0x965   : > { %v1387_v2 = vpop.xlane.xlu1 %1386  ;;  %v1378_v32 = vpop.xlane.xlu0 %1377 }
 0x966   : > { %2190 = vrcp.f32 %v1378_v32 }
 0x969   : > { %v1381_v10 = vpop.xlane.xlu1 %1380 }
 0x96a   : > { %2192 = vrcp.f32 %v1381_v10 }
 0x96b   : > { %2194 = vrcp.f32 %v1387_v2 }
 0x96c   : > { %2196 = vrcp.f32 %v1384_v4 }
 0x96d   : > { %v1396_v33 = vpop.xlane.xlu0 %1395  ;;  %v1423_v38 = vpop.permute.xlu1 %1422 }
 0x970   : > { %v2191_v36 = vpop.eup %2190 }
 0x971   : > { %v1390_v8 = vpop.xlane.xlu0 %1389  ;;  %v1408_v35 = vmul.f32 %v2191_v36, %v2662_v50  ;;  %v1425_v60 = vpop.permute.xlu1 %1424 }
 0x974   : > { %v2193_v34 = vpop.eup %2192 }
 0x975   : > { %v1421_v62 = vpop.permute.xlu0 %1420  ;;  %v1409_v63 = vmul.f32 %v2193_v34, %v2181_v17  ;;  %v2195_v20 = vpop.eup %2194 }
 0x976   : > { %2026 = vmatprep.subr.bf16.mxu0 %v1421_v62  ;;  %v2197_v22 = vpop.eup %2196  ;;  %v1411_v25 = vmul.f32 %v2195_v20, %v2664_v51 }
 0x977   : > { %2027 = vmatpush3.bf16.msra.mxu0 %v1421_v62  ;;  %v1416_v43 = vpack.c.bf16 %v1409_v63, %v1408_v35  ;;  %v1410_v28 = vmul.f32 %v2197_v22, %v2658_v48 }
 0x978   : > { %2028 = vmatprep.subr.bf16.mxu0 %v1423_v38 }
 0x979   : > { %2034 = vmatprep.mubr.msk.bf16.mxu0 %vm316_vm1, %v1416_v43  ;;  %v830_v42 = vpop.permute.xlu0 %829  ;;  %v1417_v29 = vpack.c.bf16 %v1411_v25, %v1410_v28 }
 0x97a   : > { %854 = vst.msk [vmem:[#allocation2] sm:$0xff] %vm853_vm2, %v830_v42 }
 0x97b   : > { %2029 = vmatpush3.bf16.msra.mxu0 %v1423_v38 }
 0x97c   : > { %2030 = vmatprep.subr.bf16.mxu0 %v1425_v60 }
 0x97d   : > { %v834_v11 = vpop.permute.xlu0 %833 }
 0x97e   : > { %856 = vst.msk [vmem:[#allocation2 + $0x10] sm:$0xff] %vm853_vm2, %v834_v11 }
 0x97f   : > { %2031 = vmatpush3.bf16.msra.mxu0 %v1425_v60 }
 0x981   : > { %v838_v12 = vpop.permute.xlu0 %837 }
 0x982   : > { %858 = vst.msk [vmem:[#allocation2 + $0x20] sm:$0xff] %vm853_vm2, %v838_v12 }
 0x985   : > { %v842_v14 = vpop.permute.xlu0 %841 }
 0x986   : > { %860 = vst.msk [vmem:[#allocation2 + $0x30] sm:$0xff] %vm853_vm2, %v842_v14 }
 0x989   : > { %v1174_v15 = vpop.permute.xlu0 %1173 }
 0x98a   : > { %1198 = vst.msk [vmem:[#allocation2] sm:$0xff] %vm1197_vm3, %v1174_v15 }
 0x98d   : > { %v1178_v41 = vpop.permute.xlu0 %1177 }
 0x98e   : > { %1200 = vst.msk [vmem:[#allocation2 + $0x10] sm:$0xff] %vm1197_vm3, %v1178_v41 }
 0x991   : > { %v1182_v16 = vpop.permute.xlu0 %1181 }
 0x992   : > { %1202 = vst.msk [vmem:[#allocation2 + $0x20] sm:$0xff] %vm1197_vm3, %v1182_v16 }
 0x995   : > { %v1186_v18 = vpop.permute.xlu0 %1185 }
 0x996   : > { %1204 = vst.msk [vmem:[#allocation2 + $0x30] sm:$0xff] %vm1197_vm3, %v1186_v18 }
 0x9a2   : > { %v1399_v19 = vpop.xlane.xlu1 %1398 }
 0x9a3   : > { %2198 = vrcp.f32 %v1399_v19 }
 0x9a4   : > { %2200 = vrcp.f32 %v1390_v8 }
 0x9a5   : > { %2202 = vrcp.f32 %v1396_v33 }
 0x9a6   : > { %v1393_v21 = vpop.xlane.xlu1 %1392 }
 0x9a7   : > { %2204 = vrcp.f32 %v1393_v21 }
 0x9aa   : > { %v1427_v26 = vpop.permute.xlu1 %1426 }
 0x9ab   : > { %2032 = vmatprep.subr.bf16.mxu0 %v1427_v26 }
 0x9ac   : > { %2033 = vmatpush3.bf16.msra.mxu0 %v1427_v26 }
 0x9ad   : > { %v2199_v30 = vpop.eup %2198 }
 0x9ae   : > { %v832_v31 = vpop.permute.xlu1 %831  ;;  %v2201_v44 = vpop.eup %2200  ;;  %v1415_v47 = vmul.f32 %v2199_v30, %v2697_v1 }
 0x9af   : > { %855 = vst.msk [vmem:[#allocation2 + $0x8] sm:$0xff] %vm853_vm2, %v832_v31  ;;  %2035 = vmatmul.mubr.msk.bf16.vlgmr.msra.gmra.mrb[24].mxu0 %vm316_vm1, %v1417_v29  ;;  %v2203_v45 = vpop.eup %2202  ;;  %v1412_v6 = vmul.f32 %v2201_v44, %v2675_v55 }
 0x9b0   : > { %v1414_v48 = vmul.f32 %v2203_v45, %v2671_v9 }
 0x9b1   : > { %v2205_v46 = vpop.eup %2204 }
 0x9b2   : > { %v836_v49 = vpop.permute.xlu1 %835  ;;  %v1413_v13 = vmul.f32 %v2205_v46, %v2703_v61  ;;  %v1419_v51 = vpack.c.bf16 %v1415_v47, %v1414_v48 }
 0x9b3   : > { %857 = vst.msk [vmem:[#allocation2 + $0x18] sm:$0xff] %vm853_vm2, %v836_v49 }
 0x9b4   : > { %v1418_v50 = vpack.c.bf16 %v1413_v13, %v1412_v6 }
 0x9b6   : > { %v840_v52 = vpop.permute.xlu1 %839  ;;  %2038 = vmatprep.mubr.msk.bf16.mxu0 %vm316_vm1, %v1418_v50 }
 0x9b7   : > { %859 = vst.msk [vmem:[#allocation2 + $0x28] sm:$0xff] %vm853_vm2, %v840_v52  ;;  %2039 = vmatmul.mubr.msk.bf16.gmra.mrb[28].mxu0 %vm316_vm1, %v1419_v51 }
 0x9ba   : > { %v844_v3 = vpop.permute.xlu1 %843 }
 0x9bb   : > { %861 = vst.msk [vmem:[#allocation2 + $0x38] sm:$0xff] %vm853_vm2, %v844_v3 }
 0x9be   : > { %v1176_v17 = vpop.permute.xlu1 %1175 }
 0x9bf   : > { %1199 = vst.msk [vmem:[#allocation2 + $0x8] sm:$0xff] %vm1197_vm3, %v1176_v17 }
 0x9c2   : > { %v1180_v53 = vpop.permute.xlu1 %1179 }
 0x9c3   : > { %1201 = vst.msk [vmem:[#allocation2 + $0x18] sm:$0xff] %vm1197_vm3, %v1180_v53 }
 0x9c6   : > { %v1184_v54 = vpop.permute.xlu1 %1183 }
 0x9c7   : > { %1203 = vst.msk [vmem:[#allocation2 + $0x28] sm:$0xff] %vm1197_vm3, %v1184_v54 }
 0x9ca   : > { %v1188_v9 = vpop.permute.xlu1 %1187 }
 0x9cb   : > { %1205 = vst.msk [vmem:[#allocation2 + $0x38] sm:$0xff] %vm1197_vm3, %v1188_v9 }
 0xa82   : > { %v2036_v55 = vpop.f32.mrb[24].mxu0 }
 0xa83   : > { %1521 = vrot.lane.b32.xlu0 %v2036_v55, %s2218_s23  ;;  %v1478_v23 = vpop.f32.mrb[25].mxu0 }
 0xa84   : > { %v2037_v39 = vpop.f32.mrb[26].mxu0 }
 0xa85   : > { %1523 = vrot.lane.b32.xlu1 %v2037_v39, %s2218_s23  ;;  %v1481_v24 = vpop.f32.mrb[27].mxu0 }
 0xa87   : > { %1517 = vrot.lane.b32.xlu0 %v1478_v23, %s2218_s23 }
 0xa89   : > { %1519 = vrot.lane.b32.xlu1 %v1481_v24, %s2218_s23 }
 0xa8a   : > { %v2040_v40 = vpop.f32.mrb[28].mxu0 }
 0xa8b   : > { %v1494_v27 = vpop.f32.mrb[29].mxu0 }
 0xa8c   : > { %1525 = vrot.lane.b32.xlu0 %v1494_v27, %s2218_s23  ;;  %v2041_v37 = vpop.f32.mrb[30].mxu0 }
 0xa8d   : > { %v1497_v56 = vpop.f32.mrb[31].mxu0 }
 0xa8e   : > { %1527 = vrot.lane.b32.xlu1 %v1497_v56, %s2218_s23 }
 0xa90   : > { %1529 = vrot.lane.b32.xlu0 %v2040_v40, %s2218_s23 }
 0xa92   : > { %1531 = vrot.lane.b32.xlu1 %v2041_v37, %s2218_s23  ;;  %s143_s23 = scalar_lea.vmem %s2781_s2, %s1739_s14 }
 0xaf5   : > { %v1522_v57 = vpop.permute.xlu0 %1521 }
 0xaf6   : > { %1544 = vst.msk [vmem:[#allocation2 + $0x10] sm:$0xff] %vm1541_vm4, %v1522_v57 }
 0xaf7   : > { %v1524_v58 = vpop.permute.xlu1 %1523 }
 0xaf8   : > { %1545 = vst.msk [vmem:[#allocation2 + $0x18] sm:$0xff] %vm1541_vm4, %v1524_v58 }
 0xaf9   : > { %v1518_v59 = vpop.permute.xlu0 %1517 }
 0xafa   : > { %1542 = vst.msk [vmem:[#allocation2] sm:$0xff] %vm1541_vm4, %v1518_v59 }
 0xafb   : > { %v1520_v1 = vpop.permute.xlu1 %1519 }
 0xafc   : > { %1543 = vst.msk [vmem:[#allocation2 + $0x8] sm:$0xff] %vm1541_vm4, %v1520_v1 }
 0xafd   : > { %v1552_v61 = vld [vmem:[#allocation2 + $0x10] sm:$0xff] }
 0xafe   : > { %v1526_v0 = vpop.permute.xlu0 %1525 }
 0xaff   : > { %v1553_v5 = vld [vmem:[#allocation2 + $0x18] sm:$0xff]  ;;  %1546 = vst.msk [vmem:[#allocation2 + $0x20] sm:$0xff] %vm1541_vm4, %v1526_v0 }
 0xb00   : > { %v1820_v7 = vpack.c.bf16 %v1553_v5, %v1552_v61  ;;  %v1528_v4 = vpop.permute.xlu1 %1527 }
 0xb01   : > { %1547 = vst.msk [vmem:[#allocation2 + $0x28] sm:$0xff] %vm1541_vm4, %v1528_v4  ;;  %v1550_v32 = vld [vmem:[#allocation2] sm:$0xff] }
 0xb02   : > { %1847 = vst [vmem:[%s143_s23 + $0x8] sm:$0xff] %v1820_v7   ;;  %v1530_v2 = vpop.permute.xlu0 %1529 }
 0xb03   : > { %v1551_v10 = vld [vmem:[#allocation2 + $0x8] sm:$0xff]  ;;  %1548 = vst.msk [vmem:[#allocation2 + $0x30] sm:$0xff] %vm1541_vm4, %v1530_v2 }
 0xb04   : > { %v1815_v33 = vpack.c.bf16 %v1551_v10, %v1550_v32  ;;  %v1532_v8 = vpop.permute.xlu1 %1531 }
 0xb05   : > { %1549 = vst.msk [vmem:[#allocation2 + $0x38] sm:$0xff] %vm1541_vm4, %v1532_v8 }
 0xb06   : > { %1816 = vst [vmem:[%s143_s23] sm:$0xff] %v1815_v33   ;;  %v1554_v36 = vld [vmem:[#allocation2 + $0x20] sm:$0xff] }
 0xb08   : > { %v1555_v34 = vld [vmem:[#allocation2 + $0x28] sm:$0xff] }
 0xb09   : > { %v1825_v38 = vpack.c.bf16 %v1555_v34, %v1554_v36 }
 0xb0a   : > { %v1556_v62 = vld [vmem:[#allocation2 + $0x30] sm:$0xff] }
 0xb0b   : > { %1848 = vst [vmem:[%s143_s23 + $0x10] sm:$0xff] %v1825_v38  }
 0xb0c   : > { %v1557_v35 = vld [vmem:[#allocation2 + $0x38] sm:$0xff] }
 0xb0d   : > { %v1830_v63 = vpack.c.bf16 %v1557_v35, %v1556_v62 }
 0xb0f   : > { %1849 = vst [vmem:[%s143_s23 + $0x18] sm:$0xff] %v1830_v63  }
 0xb10 PF: > { %s12_s9 = sadd.s32 1, %s2216_s9  }
 0xb11   : > { %p9_p4 = scmp.ge.s32.totalorder %s12_s9, 4  }
 0xb13   :  { %11 = sbr.rel (!%p9_p4) target bundleno = 1 (0x1), region = 61 }

// kernel: _lambda_.40
= control target key start
LH: loop header
LB: loop body
LE: loop exit
PB: predicated region body
PF: predicated region fallthrough
CT: control target
= control target key end

     0   :  { %s1700_s18 = smov 0   ;;  %s1702_s19 = smov 0   ;;  %s2235_s0 = inlined_call_operand.vmem [shape: f32[2,64,128], index: 0, kind: input, shape index: {}]   ;;  %s2236_s1 = inlined_call_operand.vmem [shape: f32[2,1,128], index: 1, kind: input, shape index: {}]   ;;  %s2237_s2 = inlined_call_operand.vmem [shape: f32[2,1,128], index: 2, kind: input, shape index: {}]   ;;  %s2238_s3 = inlined_call_operand.vmem [shape: bf16[128,512], index: 3, kind: input, shape index: {}]   ;;  %s2239_s4 = inlined_call_operand.vmem [shape: f32[1,512], index: 4, kind: input, shape index: {}]   ;;  %s2240_s5 = inlined_call_operand.vmem [shape: bf16[2,64,512], index: 5, kind: output, shape index: {}]  }
   0x1   :  { %s1704_s20 = smov 0  }
   0x2 LB: > { %s34_s21 = sadd.s32 1, %s1663_s19  ;;  %p1418_p0 = scmp.ge.s32.totalorder %s1667_s20, 1  ;;  %s1667_s20 = sphi %s1704_s20, %s15_s20   ;;  %s1663_s19 = sphi %s1702_s19, %s2242_s19   ;;  %s1659_s18 = sphi %s1700_s18, %s2241_s18  }
   0x3   : > { %p36_p1 = scmp.ge.s32.totalorder %s34_s21, 2  ;;  %p254_p2 = scmp.lt.s32.totalorder %s1667_s20, 3 }
   0x5   : > { %s2244_s21 = smov (%p36_p1, %s34_s21), 0  ;;  %p255_p3 = pnand %p1418_p0, %p254_p2 }
   0x6   : > { %p311_p4 = scmp.lt.s32.totalorder (!%p255_p3), %s1659_s18, 1  ;;  %v1517_v8 = vld [vmem:[%s2238_s3 + $0x4] ss:$16 sps:$4 sm:$0xff] (!%p255_p3)   ;;  %v1519_v9 = vld [vmem:[%s2238_s3 + $0xc] ss:$16 sps:$4 sm:$0xff] (!%p255_p3)  }
   0x7   : > { %258 = sbr.rel (%p255_p3) target bundleno = 650 (0x28a), region = 40  ;;  %v1521_v10 = vld [vmem:[%s2238_s3] ss:$16 sps:$4 sm:$0xff] (!%p255_p3)   ;;  %v1522_v11 = vld [vmem:[%s2238_s3 + $0x8] ss:$16 sps:$4 sm:$0xff] (!%p255_p3)   ;;  %712 = vmatprep.subr.bf16.mxu0 (!%p255_p3), %v1517_v8  ;;  %785 = vmatprep.subr.bf16.mxu1 (!%p255_p3), %v1519_v9  ;;  %v1669_v8 = vmov (!%p255_p3), 0  }
   0x8   : > { %v1523_v12 = vld [vmem:[%s2238_s3 + $0x24] ss:$16 sps:$4 sm:$0xff] (!%p255_p3)   ;;  %v1525_v13 = vld [vmem:[%s2238_s3 + $0x2c] ss:$16 sps:$4 sm:$0xff] (!%p255_p3)   ;;  %713 = vmatpush1.bf16.msra.mxu0 (!%p255_p3), %v1521_v10  ;;  %786 = vmatpush1.bf16.msra.mxu1 (!%p255_p3), %v1522_v11  ;;  %v1527_v46 = vld [vmem:[%s2238_s3 + $0x20] ss:$16 sps:$4 sm:$0xff] (!%p255_p3)  }
   0x9   : > { %714 = vmatprep.subr.bf16.mxu0 (!%p255_p3), %v1523_v12  ;;  %787 = vmatprep.subr.bf16.mxu1 (!%p255_p3), %v1525_v13  ;;  %v1528_v47 = vld [vmem:[%s2238_s3 + $0x28] ss:$16 sps:$4 sm:$0xff] (!%p255_p3)   ;;  %v1529_v48 = vld [vmem:[%s2238_s3 + $0x44] ss:$16 sps:$4 sm:$0xff] (!%p255_p3)   ;;  %v1531_v49 = vld [vmem:[%s2238_s3 + $0x4c] ss:$16 sps:$4 sm:$0xff] (!%p255_p3)   ;;  %v458_v12 = vlaneseq (!%p255_p3) }
   0xa   : > { %v1533_v50 = vld [vmem:[%s2238_s3 + $0x40] ss:$16 sps:$4 sm:$0xff] (!%p255_p3)   ;;  %v1534_v51 = vld [vmem:[%s2238_s3 + $0x48] ss:$16 sps:$4 sm:$0xff] (!%p255_p3)   ;;  %v1535_v52 = vld [vmem:[%s2238_s3 + $0x64] ss:$16 sps:$4 sm:$0xff] (!%p255_p3)   ;;  %744 = vmatprep.mubr.bf16.mxu0 (!%p255_p3), %v1669_v8  ;;  %817 = vmatprep.mubr.bf16.mxu1 (!%p255_p3), %v1669_v8 }
   0xb   : > { %v1537_v53 = vld [vmem:[%s2238_s3 + $0x6c] ss:$16 sps:$4 sm:$0xff] (!%p255_p3)   ;;  %v1539_v54 = vld [vmem:[%s2238_s3 + $0x60] ss:$16 sps:$4 sm:$0xff] (!%p255_p3)   ;;  %v1540_v55 = vld [vmem:[%s2238_s3 + $0x68] ss:$16 sps:$4 sm:$0xff] (!%p255_p3)  }
   0xc   : > { %715 = vmatpush1.bf16.msra.mxu0 (!%p255_p3), %v1527_v46  ;;  %788 = vmatpush1.bf16.msra.mxu1 (!%p255_p3), %v1528_v47  ;;  %v1541_v56 = vld [vmem:[%s2238_s3 + $0x84] ss:$16 sps:$4 sm:$0xff] (!%p255_p3)   ;;  %v1543_v57 = vld [vmem:[%s2238_s3 + $0x8c] ss:$16 sps:$4 sm:$0xff] (!%p255_p3)   ;;  %v1545_v58 = vld [vmem:[%s2238_s3 + $0x80] ss:$16 sps:$4 sm:$0xff] (!%p255_p3)  }
   0xd   : > { %716 = vmatprep.subr.bf16.mxu0 (!%p255_p3), %v1529_v48  ;;  %789 = vmatprep.subr.bf16.mxu1 (!%p255_p3), %v1531_v49  ;;  %v1546_v59 = vld [vmem:[%s2238_s3 + $0x88] ss:$16 sps:$4 sm:$0xff] (!%p255_p3)   ;;  %v1547_v60 = vld [vmem:[%s2238_s3 + $0xa4] ss:$16 sps:$4 sm:$0xff] (!%p255_p3)   ;;  %v1549_v61 = vld [vmem:[%s2238_s3 + $0xac] ss:$16 sps:$4 sm:$0xff] (!%p255_p3)  }
   0xe   : > { %s2246_s18 = smov (!%p311_p4, %s1659_s18), 1  ;;  %v1551_v62 = vld [vmem:[%s2238_s3 + $0xa0] ss:$16 sps:$4 sm:$0xff]   ;;  %v1552_v63 = vld [vmem:[%s2238_s3 + $0xa8] ss:$16 sps:$4 sm:$0xff]  }
   0xf   : > { %s1474_s22 = sshll.u32 %s2246_s18, 6  ;;  %s325_s29 = scalar_lea.vmem %s2237_s2, %s2246_s18 }
  0x10   : > { %s318_s25 = scalar_lea.vmem %s2235_s0, %s1474_s22  ;;  %717 = vmatpush1.bf16.msra.mxu0 %v1533_v50  ;;  %790 = vmatpush1.bf16.msra.mxu1 %v1534_v51  ;;  %s322_s7 = scalar_lea.vmem %s2236_s1, %s2246_s18 }
  0x11   : > { %v358_v0 = vld [vmem:[%s318_s25] sm:$0xff]  ;;  %v360_v1 = vld [vmem:[%s318_s25 + $0x10] sm:$0xff]  ;;  %v359_v2 = vld [vmem:[%s318_s25 + $0x8] sm:$0xff]  ;;  %718 = vmatprep.subr.bf16.mxu0 %v1535_v52  ;;  %791 = vmatprep.subr.bf16.mxu1 %v1537_v53  ;;  %s1475_s10 = sshll.u32 %s2246_s18, 7 }
  0x12   : > { %366 = vadd.xlane.f32.xlu0 %v358_v0  ;;  %370 = vadd.xlane.f32.xlu1 %v360_v1  ;;  %v361_v3 = vld [vmem:[%s318_s25 + $0x18] sm:$0xff]  ;;  %v362_v4 = vld [vmem:[%s318_s25 + $0x20] sm:$0xff]  ;;  %v363_v5 = vld [vmem:[%s318_s25 + $0x28] sm:$0xff]  ;;  %s2037_s12 = scalar_lea.vmem %s2240_s5, %s1475_s10 }
  0x13   : > { %v364_v6 = vld [vmem:[%s318_s25 + $0x30] sm:$0xff]  ;;  %v365_v7 = vld [vmem:[%s318_s25 + $0x38] sm:$0xff]  ;;  %v1423_v52 = vld [vmem:[%s322_s7] ss:$0 sm:$0xff] }
  0x14   : > { %719 = vmatpush1.bf16.msra.mxu0 %v1539_v54  ;;  %792 = vmatpush1.bf16.msra.mxu1 %v1540_v55 }
  0x15   : > { %720 = vmatprep.subr.bf16.mxu0 %v1541_v56  ;;  %793 = vmatprep.subr.bf16.mxu1 %v1543_v57 }
  0x16   : > { %368 = vadd.xlane.f32.xlu0 %v359_v2  ;;  %372 = vadd.xlane.f32.xlu1 %v361_v3 }
  0x18   : > { %721 = vmatpush1.bf16.msra.mxu0 %v1545_v58  ;;  %794 = vmatpush1.bf16.msra.mxu1 %v1546_v59 }
  0x19   : > { %722 = vmatprep.subr.bf16.mxu0 %v1547_v60  ;;  %795 = vmatprep.subr.bf16.mxu1 %v1549_v61 }
  0x1a   : > { %374 = vadd.xlane.f32.xlu0 %v362_v4  ;;  %376 = vadd.xlane.f32.xlu1 %v363_v5 }
  0x1c   : > { %723 = vmatpush1.bf16.msra.mxu0 %v1551_v62  ;;  %796 = vmatpush1.bf16.msra.mxu1 %v1552_v63 }
  0x1e   : > { %378 = vadd.xlane.f32.xlu0 %v364_v6  ;;  %380 = vadd.xlane.f32.xlu1 %v365_v7 }
  0x9f   : > { %v367_v14 = vpop.xlane.xlu0 %366  ;;  %v371_v15 = vpop.xlane.xlu1 %370 }
  0xa0   : > { %v383_v16 = vmul.f32 0.0078125, %v367_v14  ;;  %v385_v17 = vmul.f32 0.0078125, %v371_v15 }
  0xa2   : > { %v1742_v18 = vsub.f32 %v358_v0, %v383_v16  ;;  %v1744_v19 = vsub.f32 %v360_v1, %v385_v17  ;;  %v1553_v0 = vld [vmem:[%s2238_s3 + $0xc4] ss:$16 sps:$4 sm:$0xff]   ;;  %v1555_v1 = vld [vmem:[%s2238_s3 + $0xcc] ss:$16 sps:$4 sm:$0xff]  }
  0xa3   : > { %v369_v20 = vpop.xlane.xlu0 %368  ;;  %v373_v21 = vpop.xlane.xlu1 %372  ;;  %724 = vmatprep.subr.bf16.mxu0 %v1553_v0  ;;  %797 = vmatprep.subr.bf16.mxu1 %v1555_v1 }
  0xa4   : > { %v384_v22 = vmul.f32 0.0078125, %v369_v20  ;;  %v399_v23 = vmul.f32 %v1742_v18, %v1742_v18  ;;  %v386_v24 = vmul.f32 0.0078125, %v373_v21  ;;  %v401_v27 = vmul.f32 %v1744_v19, %v1744_v19 }
  0xa5   : > { %v1858_v21 = vshrl.u32 %v458_v12, 7 }
  0xa6   : > { %v1748_v25 = vsub.f32 %v359_v2, %v384_v22  ;;  %407 = vadd.xlane.f32.xlu0 %v399_v23  ;;  %v1750_v26 = vsub.f32 %v361_v3, %v386_v24  ;;  %v1557_v2 = vld [vmem:[%s2238_s3 + $0xc0] ss:$16 sps:$4 sm:$0xff]   ;;  %v1558_v3 = vld [vmem:[%s2238_s3 + $0xc8] ss:$16 sps:$4 sm:$0xff]  }
  0xa7   : > { %v375_v28 = vpop.xlane.xlu0 %374  ;;  %v377_v29 = vpop.xlane.xlu1 %376  ;;  %725 = vmatpush1.bf16.msra.mxu0 %v1557_v2  ;;  %798 = vmatpush1.bf16.msra.mxu1 %v1558_v3  ;;  %v455_v24 = vld [vmem:[%s325_s29] sm:$0x1] }
  0xa8   : > { %v387_v30 = vmul.f32 0.0078125, %v375_v28  ;;  %v400_v31 = vmul.f32 %v1748_v25, %v1748_v25  ;;  %v388_v32 = vmul.f32 0.0078125, %v377_v29  ;;  %v402_v35 = vmul.f32 %v1750_v26, %v1750_v26 }
  0xaa   : > { %v1756_v33 = vsub.f32 %v362_v4, %v387_v30  ;;  %411 = vadd.xlane.f32.xlu0 %v401_v27  ;;  %409 = vadd.xlane.f32.xlu1 %v400_v31  ;;  %v1758_v34 = vsub.f32 %v363_v5, %v388_v32  ;;  %v1559_v4 = vld [vmem:[%s2238_s3 + $0xe4] ss:$16 sps:$4 sm:$0xff]   ;;  %v1561_v5 = vld [vmem:[%s2238_s3 + $0xec] ss:$16 sps:$4 sm:$0xff]   ;;  %v456_v30 = vadd.f32 1.0, %v455_v24  ;;  %v460_v31 = vsub.s32 0, %v1858_v21 }
  0xab   : > { %v379_v36 = vpop.xlane.xlu0 %378  ;;  %v381_v37 = vpop.xlane.xlu1 %380  ;;  %726 = vmatprep.subr.bf16.mxu0 %v1559_v4  ;;  %799 = vmatprep.subr.bf16.mxu1 %v1561_v5 }
  0xac   : > { %v389_v38 = vmul.f32 0.0078125, %v379_v36  ;;  %v403_v39 = vmul.f32 %v1756_v33, %v1756_v33  ;;  %v390_v40 = vmul.f32 0.0078125, %v381_v37  ;;  %v404_v43 = vmul.f32 %v1758_v34, %v1758_v34 }
  0xae   : > { %v1764_v41 = vsub.f32 %v364_v6, %v389_v38  ;;  %413 = vadd.xlane.f32.xlu1 %v402_v35  ;;  %415 = vadd.xlane.f32.xlu0 %v403_v39  ;;  %v1766_v42 = vsub.f32 %v365_v7, %v390_v40  ;;  %v1563_v6 = vld [vmem:[%s2238_s3 + $0xe0] ss:$16 sps:$4 sm:$0xff]   ;;  %v1564_v7 = vld [vmem:[%s2238_s3 + $0xe8] ss:$16 sps:$4 sm:$0xff]   ;;  %v461_v39 = vrot.slane %v456_v30, %v460_v31 }
  0xaf   : > { %727 = vmatpush1.bf16.msra.mxu0 %v1563_v6  ;;  %800 = vmatpush1.bf16.msra.mxu1 %v1564_v7 }
  0xb0   : > { %v405_v44 = vmul.f32 %v1764_v41, %v1764_v41  ;;  %v406_v45 = vmul.f32 %v1766_v42, %v1766_v42 }
  0xb2   : > { %417 = vadd.xlane.f32.xlu1 %v404_v43  ;;  %419 = vadd.xlane.f32.xlu0 %v405_v44 }
  0xb6   : > { %421 = vadd.xlane.f32.xlu1 %v406_v45 }
 0x133   : > { %v408_v9 = vpop.xlane.xlu0 %407 }
 0x134   : > { %v423_v10 = vmul.f32 0.0078125, %v408_v9 }
 0x136   : > { %v431_v11 = vadd.f32 1e-06, %v423_v10 }
 0x137   : > { %v410_v13 = vpop.xlane.xlu1 %409  ;;  %v412_v14 = vpop.xlane.xlu0 %411 }
 0x138   : > { %1565 = vrsqrt.f32 %v431_v11  ;;  %v424_v15 = vmul.f32 0.0078125, %v410_v13  ;;  %v425_v16 = vmul.f32 0.0078125, %v412_v14 }
 0x13a   : > { %v432_v17 = vadd.f32 1e-06, %v424_v15  ;;  %v433_v20 = vadd.f32 1e-06, %v425_v16  ;;  %v542_v15 = vsub.s32 2, %v1858_v21  ;;  %v546_v16 = vsub.s32 3, %v1858_v21 }
 0x13b   : > { %v414_v22 = vpop.xlane.xlu1 %413  ;;  %v416_v23 = vpop.xlane.xlu0 %415 }
 0x13c   : > { %1567 = vrsqrt.f32 %v432_v17  ;;  %v426_v27 = vmul.f32 0.0078125, %v414_v22  ;;  %v427_v29 = vmul.f32 0.0078125, %v416_v23 }
 0x13d   : > { %1569 = vrsqrt.f32 %v433_v20 }
 0x13e   : > { %v434_v28 = vadd.f32 1e-06, %v426_v27  ;;  %v435_v37 = vadd.f32 1e-06, %v427_v29 }
 0x13f   : > { %v418_v32 = vpop.xlane.xlu1 %417  ;;  %v420_v40 = vpop.xlane.xlu0 %419 }
 0x140   : > { %1571 = vrsqrt.f32 %v434_v28  ;;  %v428_v35 = vmul.f32 0.0078125, %v418_v32  ;;  %v429_v47 = vmul.f32 0.0078125, %v420_v40 }
 0x142   : > { %v1566_v36 = vpop.eup %1565  ;;  %v436_v38 = vadd.f32 1e-06, %v428_v35  ;;  %v437_v55 = vadd.f32 1e-06, %v429_v47 }
 0x143   : > { %v422_v43 = vpop.xlane.xlu1 %421  ;;  %v447_v44 = vmul.f32 %v1566_v36, %v1742_v18 }
 0x144   : > { %1573 = vrsqrt.f32 %v436_v38  ;;  %v430_v45 = vmul.f32 0.0078125, %v422_v43 }
 0x145   : > { %1575 = vrsqrt.f32 %v435_v37  ;;  %v463_v49 = vmul.f32 %v461_v39, %v447_v44 }
 0x146   : > { %v1568_v46 = vpop.eup %1567  ;;  %v438_v51 = vadd.f32 1e-06, %v430_v45 }
 0x147   : > { %v448_v48 = vmul.f32 %v1568_v46, %v1748_v25  ;;  %v1570_v50 = vpop.eup %1569  ;;  %v478_v56 = vadd.f32 %v1423_v52, %v463_v49 }
 0x148   : > { %v449_v57 = vmul.f32 %v1570_v50, %v1744_v19  ;;  %1577 = vrsqrt.f32 %v438_v51 }
 0x149   : > { %v464_v53 = vmul.f32 %v461_v39, %v448_v48  ;;  %1579 = vrsqrt.f32 %v437_v55 }
 0x14a   : > { %v1572_v54 = vpop.eup %1571  ;;  %v465_v25 = vmul.f32 %v461_v39, %v449_v57 }
 0x14b   : > { %v479_v18 = vadd.f32 %v1423_v52, %v464_v53  ;;  %v450_v58 = vmul.f32 %v1572_v54, %v1750_v26 }
 0x14c   : > { %v480_v1 = vadd.f32 %v1423_v52, %v465_v25 }
 0x14d   : > { %v486_v59 = vpack.c.bf16 %v479_v18, %v478_v56  ;;  %v466_v60 = vmul.f32 %v461_v39, %v450_v58 }
 0x14e   : > { %v1574_v61 = vpop.eup %1573 }
 0x14f   : > { %745 = vmatmul.mubr.bf16.vlgmr.msra.gmra.mrb[0].mxu0 %v486_v59  ;;  %818 = vmatmul.mubr.bf16.vlgmr.msra.gmra.mrb[0].mxu1 %v486_v59  ;;  %v1576_v62 = vpop.eup %1575  ;;  %v481_v63 = vadd.f32 %v1423_v52, %v466_v60  ;;  %v452_v0 = vmul.f32 %v1574_v61, %v1758_v34 }
 0x150   : > { %754 = vmatprep.mubr.bf16.mxu0 %v1669_v8  ;;  %827 = vmatprep.mubr.bf16.mxu1 %v1669_v8  ;;  %v451_v19 = vmul.f32 %v1576_v62, %v1756_v33 }
 0x151   : > { %v487_v26 = vpack.c.bf16 %v481_v63, %v480_v1  ;;  %v468_v2 = vmul.f32 %v461_v39, %v452_v0 }
 0x152   : > { %v1578_v3 = vpop.eup %1577  ;;  %v467_v4 = vmul.f32 %v461_v39, %v451_v19 }
 0x153   : > { %v1580_v5 = vpop.eup %1579  ;;  %v483_v6 = vadd.f32 %v1423_v52, %v468_v2  ;;  %v454_v7 = vmul.f32 %v1578_v3, %v1766_v42  ;;  %v538_v42 = vsub.s32 1, %v1858_v21 }
 0x154   : > { %v482_v9 = vadd.f32 %v1423_v52, %v467_v4  ;;  %v453_v34 = vmul.f32 %v1580_v5, %v1764_v41  ;;  %v530_v41 = vld [vmem:[%s2239_s4] sm:$0xf] }
 0x155   : > { %v470_v11 = vmul.f32 %v461_v39, %v454_v7  ;;  %v1889_v17 = vrot.slane %v530_v41, %v460_v31  ;;  %v1893_v20 = vrot.slane %v530_v41, %v538_v42  ;;  %v1895_v22 = vrot.slane %v530_v41, %v546_v16 }
 0x156   : > { %v488_v10 = vpack.c.bf16 %v483_v6, %v482_v9  ;;  %v469_v33 = vmul.f32 %v461_v39, %v453_v34 }
 0x157   : > { %755 = vmatmul.mubr.bf16.gmra.mrb[4].mxu0 %v487_v26  ;;  %828 = vmatmul.mubr.bf16.gmra.mrb[4].mxu1 %v487_v26  ;;  %v485_v12 = vadd.f32 %v1423_v52, %v470_v11 }
 0x158   : > { %764 = vmatprep.mubr.bf16.mxu0 %v1669_v8  ;;  %837 = vmatprep.mubr.bf16.mxu1 %v1669_v8  ;;  %v484_v13 = vadd.f32 %v1423_v52, %v469_v33 }
 0x15a   : > { %v489_v14 = vpack.c.bf16 %v485_v12, %v484_v13 }
 0x15f   : > { %765 = vmatmul.mubr.bf16.gmra.mrb[8].mxu0 %v488_v10  ;;  %838 = vmatmul.mubr.bf16.gmra.mrb[8].mxu1 %v488_v10 }
 0x160   : > { %774 = vmatprep.mubr.bf16.mxu0 %v1669_v8  ;;  %847 = vmatprep.mubr.bf16.mxu1 %v1669_v8  ;;  %v1891_v8 = vrot.slane %v530_v41, %v542_v15 }
 0x167   : > { %775 = vmatmul.mubr.bf16.gmra.mrb[12].mxu0 %v489_v14  ;;  %848 = vmatmul.mubr.bf16.gmra.mrb[12].mxu1 %v489_v14 }
 0x222   : > { %v746_v23 = vpop.f32.mrb[0].mxu0  ;;  %v819_v24 = vpop.f32.mrb[0].mxu1 }
 0x223   : > { %v747_v27 = vadd.f32 %v746_v23, %v1889_v17  ;;  %v820_v28 = vadd.f32 %v819_v24, %v1891_v8  ;;  %v748_v29 = vpop.f32.mrb[1].mxu0  ;;  %v821_v30 = vpop.f32.mrb[1].mxu1 }
 0x224   : > { %v1900_v32 = vadd.f32 %v748_v29, %v1893_v20  ;;  %v1903_v21 = vadd.f32 %v821_v30, %v1895_v22  ;;  %v750_v31 = vpop.f32.mrb[2].mxu0  ;;  %v823_v35 = vpop.f32.mrb[2].mxu1 }
 0x225   : > { %v890_v36 = vmul.f32 0.044715, %v747_v27  ;;  %v892_v37 = vmul.f32 0.044715, %v820_v28  ;;  %v1908_v44 = vadd.f32 %v750_v31, %v1889_v17  ;;  %v1911_v45 = vadd.f32 %v823_v35, %v1891_v8  ;;  %v752_v46 = vpop.f32.mrb[3].mxu0  ;;  %v825_v47 = vpop.f32.mrb[3].mxu1 }
 0x226   : > { %v891_v38 = vmul.f32 0.044715, %v1900_v32  ;;  %v893_v39 = vmul.f32 0.044715, %v1903_v21  ;;  %v1916_v50 = vadd.f32 %v752_v46, %v1893_v20  ;;  %v1924_v61 = vadd.f32 %v825_v47, %v1895_v22 }
 0x227   : > { %v922_v40 = vmul.f32 %v890_v36, %v747_v27  ;;  %v924_v43 = vmul.f32 %v892_v37, %v820_v28  ;;  %v894_v53 = vmul.f32 0.044715, %v1908_v44  ;;  %v896_v56 = vmul.f32 0.044715, %v1911_v45 }
 0x228   : > { %v923_v48 = vmul.f32 %v891_v38, %v1900_v32  ;;  %v925_v49 = vmul.f32 %v893_v39, %v1903_v21  ;;  %v895_v19 = vmul.f32 0.044715, %v1916_v50  ;;  %v1932_v3 = vmul.f32 0.5, %v747_v27 }
 0x229   : > { %v954_v51 = vmul.f32 %v922_v40, %v747_v27  ;;  %v956_v52 = vmul.f32 %v924_v43, %v820_v28  ;;  %v926_v60 = vmul.f32 %v894_v53, %v1908_v44  ;;  %v928_v1 = vmul.f32 %v896_v56, %v1911_v45 }
 0x22a   : > { %v955_v54 = vmul.f32 %v923_v48, %v1900_v32  ;;  %v957_v55 = vmul.f32 %v925_v49, %v1903_v21  ;;  %v756_v18 = vpop.f32.mrb[4].mxu0  ;;  %v829_v57 = vpop.f32.mrb[4].mxu1  ;;  %v927_v11 = vmul.f32 %v895_v19, %v1916_v50  ;;  %v897_v13 = vmul.f32 0.044715, %v1924_v61 }
 0x22b   : > { %v986_v58 = vadd.f32 %v954_v51, %v747_v27  ;;  %v988_v59 = vadd.f32 %v956_v52, %v820_v28  ;;  %v758_v25 = vpop.f32.mrb[5].mxu0  ;;  %v831_v62 = vpop.f32.mrb[5].mxu1  ;;  %v958_v6 = vmul.f32 %v926_v60, %v1908_v44  ;;  %v960_v10 = vmul.f32 %v928_v1, %v1911_v45 }
 0x22c   : > { %v987_v63 = vadd.f32 %v955_v54, %v1900_v32  ;;  %v989_v0 = vadd.f32 %v957_v55, %v1903_v21  ;;  %v760_v26 = vpop.f32.mrb[6].mxu0  ;;  %v1930_v2 = vpop.f32.mrb[6].mxu1  ;;  %v1944_v14 = vadd.f32 %v756_v18, %v1889_v17  ;;  %v959_v41 = vmul.f32 %v927_v11, %v1916_v50 }
 0x22d   : > { %v1018_v4 = vmul.f32 0.7978846, %v986_v58  ;;  %v1020_v5 = vmul.f32 0.7978846, %v988_v59  ;;  %v1935_v7 = vpop.f32.mrb[7].mxu0  ;;  %v1939_v33 = vpop.f32.mrb[7].mxu1  ;;  %v990_v12 = vadd.f32 %v958_v6, %v1908_v44  ;;  %v992_v15 = vadd.f32 %v960_v10, %v1911_v45 }
 0x22e   : > { %v1019_v9 = vmul.f32 0.7978846, %v987_v63  ;;  %v1021_v34 = vmul.f32 0.7978846, %v989_v0  ;;  %v1949_v42 = vadd.f32 %v829_v57, %v1891_v8  ;;  %v1951_v16 = vmul.f32 0.5, %v820_v28 }
 0x22f   : > { %1581 = vtanh.f32 %v1018_v4  ;;  %v1022_v23 = vmul.f32 0.7978846, %v990_v12  ;;  %v929_v24 = vmul.f32 %v897_v13, %v1924_v61  ;;  %v1024_v27 = vmul.f32 0.7978846, %v992_v15 }
 0x230   : > { %1583 = vtanh.f32 %v1020_v5  ;;  %v991_v29 = vadd.f32 %v959_v41, %v1916_v50  ;;  %v898_v30 = vmul.f32 0.044715, %v1944_v14  ;;  %v1961_v36 = vmul.f32 0.5, %v1900_v32 }
 0x231   : > { %1585 = vtanh.f32 %v1019_v9  ;;  %v961_v28 = vmul.f32 %v929_v24, %v1924_v61  ;;  %v900_v37 = vmul.f32 0.044715, %v1949_v42  ;;  %v1971_v46 = vadd.f32 %v758_v25, %v1893_v20 }
 0x232   : > { %1587 = vtanh.f32 %v1021_v34  ;;  %v1956_v31 = vpop.f32.mrb[8].mxu0  ;;  %v1958_v35 = vpop.f32.mrb[8].mxu1  ;;  %v1023_v40 = vmul.f32 0.7978846, %v991_v29  ;;  %v930_v43 = vmul.f32 %v898_v30, %v1944_v14  ;;  %v1980_v51 = vadd.f32 %v831_v62, %v1895_v22 }
 0x233   : > { %1589 = vtanh.f32 %v1022_v23  ;;  %v1965_v38 = vpop.f32.mrb[9].mxu0  ;;  %v1967_v39 = vpop.f32.mrb[9].mxu1  ;;  %v993_v48 = vadd.f32 %v961_v28, %v1924_v61  ;;  %v932_v49 = vmul.f32 %v900_v37, %v1949_v42  ;;  %v1983_v52 = vadd.f32 %v760_v26, %v1889_v17 }
 0x234   : > { %1591 = vtanh.f32 %v1024_v27  ;;  %v1973_v47 = vpop.f32.mrb[10].mxu0  ;;  %v1975_v32 = vpop.f32.mrb[10].mxu1  ;;  %v861_v55 = vmul.f32 0.5, %v1903_v21  ;;  %v962_v56 = vmul.f32 %v930_v43, %v1944_v14  ;;  %v899_v18 = vmul.f32 0.044715, %v1971_v46 }
 0x235   : > { %v1985_v53 = vpop.f32.mrb[11].mxu0  ;;  %v1987_v54 = vpop.f32.mrb[11].mxu1  ;;  %1593 = vtanh.f32 %v1023_v40  ;;  %v862_v57 = vmul.f32 0.5, %v1908_v44  ;;  %v1025_v58 = vmul.f32 0.7978846, %v993_v48  ;;  %v964_v59 = vmul.f32 %v932_v49, %v1949_v42 }
 0x236   : > { %v901_v60 = vmul.f32 0.044715, %v1980_v51  ;;  %v1996_v25 = vmul.f32 0.5, %v1911_v45  ;;  %v994_v62 = vadd.f32 %v962_v56, %v1944_v14  ;;  %v931_v63 = vmul.f32 %v899_v18, %v1971_v46 }
 0x237   : > { %v902_v21 = vmul.f32 0.044715, %v1983_v52  ;;  %v863_v1 = vmul.f32 0.5, %v1916_v50  ;;  %1595 = vtanh.f32 %v1025_v58  ;;  %v996_v44 = vadd.f32 %v964_v59, %v1949_v42 }
 0x238   : > { %v933_v19 = vmul.f32 %v901_v60, %v1980_v51  ;;  %v1026_v5 = vmul.f32 0.7978846, %v994_v62  ;;  %v963_v45 = vmul.f32 %v931_v63, %v1971_v46  ;;  %v2013_v13 = vadd.f32 %v1930_v2, %v1891_v8 }
 0x239   : > { %v1582_v0 = vpop.eup %1581  ;;  %v934_v6 = vmul.f32 %v902_v21, %v1983_v52  ;;  %v1028_v50 = vmul.f32 0.7978846, %v996_v44  ;;  %v865_v60 = vmul.f32 0.5, %v1924_v61  ;;  %v2046_v61 = vadd.f32 %v1935_v7, %v1893_v20 }
 0x23a   : > { %v1584_v26 = vpop.eup %1583  ;;  %v1082_v4 = vadd.f32 1.0, %v1582_v0  ;;  %v2006_v9 = vpop.f32.mrb[12].mxu0  ;;  %v965_v12 = vmul.f32 %v933_v19, %v1980_v51  ;;  %1597 = vtanh.f32 %v1026_v5  ;;  %v995_v29 = vadd.f32 %v963_v45, %v1971_v46 }
 0x23b   : > { %v2008_v34 = vpop.f32.mrb[12].mxu1  ;;  %v1586_v10 = vpop.eup %1585  ;;  %v1084_v11 = vadd.f32 1.0, %v1584_v26  ;;  %1599 = vtanh.f32 %v1028_v50  ;;  %v966_v59 = vmul.f32 %v934_v6, %v1983_v52  ;;  %v904_v63 = vmul.f32 0.044715, %v2013_v13 }
 0x23c   : > { %v2015_v15 = vpop.f32.mrb[13].mxu0  ;;  %v2017_v41 = vpop.f32.mrb[13].mxu1  ;;  %v1114_v24 = vmul.f32 %v1082_v4, %v1932_v3  ;;  %v1083_v27 = vadd.f32 1.0, %v1586_v10  ;;  %v997_v43 = vadd.f32 %v965_v12, %v1980_v51  ;;  %v1027_v58 = vmul.f32 0.7978846, %v995_v29 }
 0x23d   : > { %v1588_v23 = vpop.eup %1587  ;;  %v2022_v30 = vpop.f32.mrb[14].mxu0  ;;  %v1116_v2 = vmul.f32 %v1084_v11, %v1951_v16  ;;  %v998_v44 = vadd.f32 %v966_v59, %v1983_v52  ;;  %v2050_v45 = vadd.f32 %v1939_v33, %v1895_v22  ;;  %v866_v11 = vmul.f32 0.5, %v1944_v14 }
 0x23e   : > { %v2024_v28 = vpop.f32.mrb[14].mxu1  ;;  %v1590_v37 = vpop.eup %1589  ;;  %v1085_v40 = vadd.f32 1.0, %v1588_v23  ;;  %v1115_v56 = vmul.f32 %v1083_v27, %v1961_v36  ;;  %v1029_v62 = vmul.f32 0.7978846, %v997_v43  ;;  %1601 = vtanh.f32 %v1027_v58 }
 0x23f   : > { %v2028_v48 = vpop.f32.mrb[15].mxu0  ;;  %v2030_v49 = vpop.f32.mrb[15].mxu1  ;;  %v1086_v18 = vadd.f32 1.0, %v1590_v37  ;;  %v1030_v5 = vmul.f32 0.7978846, %v998_v44  ;;  %v2057_v50 = vadd.f32 %v1956_v31, %v1889_v17  ;;  %v867_v23 = vmul.f32 0.5, %v1971_v46 }
 0x240   : > { %v1592_v3 = vpop.eup %1591  ;;  %v1117_v16 = vmul.f32 %v1085_v40, %v861_v55  ;;  %v1476_v0 = vpack.c.bf16 %v1115_v56, %v1114_v24  ;;  %1603 = vtanh.f32 %v1029_v62  ;;  %v936_v55 = vmul.f32 %v904_v63, %v2013_v13 }
 0x241   : > { %v1594_v21 = vpop.eup %1593  ;;  %v1088_v36 = vadd.f32 1.0, %v1592_v3  ;;  %v1118_v26 = vmul.f32 %v1086_v18, %v862_v57  ;;  %v868_v57 = vmul.f32 0.5, %v1949_v42  ;;  %v903_v27 = vmul.f32 0.044715, %v2046_v61 }
 0x242   : > { %v1477_v19 = vpack.c.bf16 %v1117_v16, %v1116_v2  ;;  %v1087_v4 = vadd.f32 1.0, %v1594_v21  ;;  %1242 = vst [vmem:[%s2037_s12] sm:$0xff] %v1476_v0  ;;  %v1596_v6 = vpop.eup %1595  ;;  %v968_v33 = vmul.f32 %v936_v55, %v2013_v13  ;;  %v2066_v14 = vadd.f32 %v1958_v35, %v1891_v8 }
 0x243   : > { %v1120_v12 = vmul.f32 %v1088_v36, %v1996_v25  ;;  %v1089_v7 = vadd.f32 1.0, %v1596_v6  ;;  %1605 = vtanh.f32 %v1030_v5  ;;  %v906_v25 = vmul.f32 0.044715, %v2057_v50 }
 0x244   : > { %1243 = vst [vmem:[%s2037_s12 + $0x8] sm:$0xff] %v1477_v19  ;;  %v1119_v10 = vmul.f32 %v1087_v4, %v863_v1  ;;  %v905_v1 = vmul.f32 0.044715, %v2050_v45  ;;  %v1598_v42 = vpop.eup %1597  ;;  %v1000_v31 = vadd.f32 %v968_v33, %v2013_v13  ;;  %v935_v2 = vmul.f32 %v903_v27, %v2046_v61 }
 0x245   : > { %v1121_v29 = vmul.f32 %v1089_v7, %v865_v60  ;;  %v1600_v46 = vpop.eup %1599  ;;  %v1090_v37 = vadd.f32 1.0, %v1598_v42  ;;  %v2075_v43 = vadd.f32 %v1965_v38, %v1893_v20  ;;  %v938_v18 = vmul.f32 %v906_v25, %v2057_v50 }
 0x246   : > { %v1478_v24 = vpack.c.bf16 %v1119_v10, %v1118_v26  ;;  %v937_v40 = vmul.f32 %v905_v1, %v2050_v45  ;;  %v1092_v3 = vadd.f32 1.0, %v1600_v46  ;;  %v1032_v56 = vmul.f32 0.7978846, %v1000_v31 }
 0x247   : > { %v1479_v35 = vpack.c.bf16 %v1121_v29, %v1120_v12  ;;  %v869_v58 = vmul.f32 0.5, %v1980_v51  ;;  %v967_v59 = vmul.f32 %v935_v2, %v2046_v61  ;;  %v908_v60 = vmul.f32 0.044715, %v2066_v14 }
 0x248   : > { %1244 = vst [vmem:[%s2037_s12 + $0x10] sm:$0xff] %v1478_v24  ;;  %v969_v16 = vmul.f32 %v937_v40, %v2050_v45  ;;  %v1602_v62 = vpop.eup %1601  ;;  %v1122_v63 = vmul.f32 %v1090_v37, %v866_v11  ;;  %v1124_v21 = vmul.f32 %v1092_v3, %v868_v57  ;;  %1607 = vtanh.f32 %v1032_v56 }
 0x249   : > { %1245 = vst [vmem:[%s2037_s12 + $0x18] sm:$0xff] %v1479_v35  ;;  %v970_v38 = vmul.f32 %v938_v18, %v2057_v50  ;;  %v1091_v36 = vadd.f32 1.0, %v1602_v62  ;;  %v999_v44 = vadd.f32 %v967_v59, %v2046_v61  ;;  %v940_v51 = vmul.f32 %v908_v60, %v2066_v14 }
 0x24a   : > { %v1604_v0 = vpop.eup %1603  ;;  %v1001_v19 = vadd.f32 %v969_v16, %v2050_v45  ;;  %v907_v5 = vmul.f32 0.044715, %v2075_v43  ;;  %v2091_v55 = vadd.f32 %v1967_v39, %v1895_v22  ;;  %v870_v7 = vmul.f32 0.5, %v1983_v52 }
 0x24b   : > { %v1093_v26 = vadd.f32 1.0, %v1604_v0  ;;  %v1002_v4 = vadd.f32 %v970_v38, %v2057_v50  ;;  %v1123_v6 = vmul.f32 %v1091_v36, %v867_v23  ;;  %v1031_v10 = vmul.f32 0.7978846, %v999_v44 }
 0x24c   : > { %v1033_v11 = vmul.f32 0.7978846, %v1001_v19  ;;  %v972_v57 = vmul.f32 %v940_v51, %v2066_v14  ;;  %v939_v24 = vmul.f32 %v907_v5, %v2075_v43  ;;  %v872_v1 = vmul.f32 0.5, %v2013_v13 }
 0x24d   : > { %v1125_v12 = vmul.f32 %v1093_v26, %v869_v58  ;;  %v1034_v33 = vmul.f32 0.7978846, %v1002_v4  ;;  %v1480_v27 = vpack.c.bf16 %v1123_v6, %v1122_v63  ;;  %1609 = vtanh.f32 %v1031_v10  ;;  %v1606_v42 = vpop.eup %1605 }
 0x24e   : > { %v1004_v39 = vadd.f32 %v972_v57, %v2066_v14  ;;  %1611 = vtanh.f32 %v1033_v11  ;;  %v971_v29 = vmul.f32 %v939_v24, %v2075_v43  ;;  %v909_v31 = vmul.f32 0.044715, %v2091_v55 }
 0x24f   : > { %v1481_v23 = vpack.c.bf16 %v1125_v12, %v1124_v21  ;;  %1246 = vst [vmem:[%s2037_s12 + $0x20] sm:$0xff] %v1480_v27  ;;  %v871_v52 = vmul.f32 0.5, %v2046_v61  ;;  %1613 = vtanh.f32 %v1034_v33  ;;  %v2104_v46 = vadd.f32 %v1973_v47, %v1889_v17 }
 0x250   : > { %v1036_v25 = vmul.f32 0.7978846, %v1004_v39  ;;  %v1003_v13 = vadd.f32 %v971_v29, %v2075_v43  ;;  %v941_v37 = vmul.f32 %v909_v31, %v2091_v55  ;;  %v2111_v2 = vadd.f32 %v1975_v32, %v1891_v8 }
 0x251   : > { %1247 = vst [vmem:[%s2037_s12 + $0x28] sm:$0xff] %v1481_v23  ;;  %v2115_v40 = vadd.f32 %v1985_v53, %v1893_v20  ;;  %v1094_v61 = vadd.f32 1.0, %v1606_v42  ;;  %v910_v35 = vmul.f32 0.044715, %v2104_v46  ;;  %v2120_v47 = vadd.f32 %v1987_v54, %v1895_v22 }
 0x252   : > { %1615 = vtanh.f32 %v1036_v25  ;;  %v1608_v3 = vpop.eup %1607  ;;  %v873_v56 = vmul.f32 0.5, %v2050_v45  ;;  %v1035_v18 = vmul.f32 0.7978846, %v1003_v13  ;;  %v973_v58 = vmul.f32 %v941_v37, %v2091_v55 }
 0x253   : > { %v912_v32 = vmul.f32 0.044715, %v2111_v2  ;;  %v1096_v59 = vadd.f32 1.0, %v1608_v3  ;;  %v874_v53 = vmul.f32 0.5, %v2057_v50  ;;  %v942_v16 = vmul.f32 %v910_v35, %v2104_v46 }
 0x254   : > { %v911_v60 = vmul.f32 0.044715, %v2115_v40  ;;  %v2129_v62 = vmul.f32 0.5, %v2066_v14  ;;  %1617 = vtanh.f32 %v1035_v18  ;;  %v1005_v54 = vadd.f32 %v973_v58, %v2091_v55 }
 0x255   : > { %v944_v45 = vmul.f32 %v912_v32, %v2111_v2  ;;  %v1126_v63 = vmul.f32 %v1094_v61, %v870_v7  ;;  %v974_v21 = vmul.f32 %v942_v16, %v2104_v46  ;;  %v913_v0 = vmul.f32 0.044715, %v2120_v47 }
 0x256   : > { %v943_v38 = vmul.f32 %v911_v60, %v2115_v40  ;;  %v1128_v50 = vmul.f32 %v1096_v59, %v872_v1  ;;  %v1037_v36 = vmul.f32 0.7978846, %v1005_v54  ;;  %v2139_v14 = vadd.f32 %v2006_v9, %v1889_v17 }
 0x257   : > { %v976_v44 = vmul.f32 %v944_v45, %v2111_v2  ;;  %v1610_v19 = vpop.eup %1609  ;;  %v1006_v51 = vadd.f32 %v974_v21, %v2104_v46  ;;  %v945_v4 = vmul.f32 %v913_v0, %v2120_v47  ;;  %v2146_v5 = vadd.f32 %v2008_v34, %v1891_v8 }
 0x258   : > { %v975_v26 = vmul.f32 %v943_v38, %v2115_v40  ;;  %v1612_v6 = vpop.eup %1611  ;;  %v1095_v10 = vadd.f32 1.0, %v1610_v19  ;;  %1619 = vtanh.f32 %v1037_v36  ;;  %v2151_v9 = vadd.f32 %v2015_v15, %v1893_v20 }
 0x259   : > { %v1008_v11 = vadd.f32 %v976_v44, %v2111_v2  ;;  %v1614_v57 = vpop.eup %1613  ;;  %v1097_v12 = vadd.f32 1.0, %v1612_v6  ;;  %v1038_v7 = vmul.f32 0.7978846, %v1006_v51  ;;  %v977_v24 = vmul.f32 %v945_v4, %v2120_v47 }
 0x25a   : > { %v1007_v33 = vadd.f32 %v975_v26, %v2115_v40  ;;  %v1127_v27 = vmul.f32 %v1095_v10, %v871_v52  ;;  %v1098_v1 = vadd.f32 1.0, %v1614_v57  ;;  %v914_v39 = vmul.f32 0.044715, %v2139_v14 }
 0x25b   : > { %v1040_v34 = vmul.f32 0.7978846, %v1008_v11  ;;  %v1129_v23 = vmul.f32 %v1097_v12, %v873_v56  ;;  %1621 = vtanh.f32 %v1038_v7  ;;  %v1009_v15 = vadd.f32 %v977_v24, %v2120_v47 }
 0x25c   : > { %v1616_v42 = vpop.eup %1615  ;;  %v1039_v29 = vmul.f32 0.7978846, %v1007_v33  ;;  %v1482_v31 = vpack.c.bf16 %v1127_v27, %v1126_v63  ;;  %v875_v25 = vmul.f32 0.5, %v2075_v43  ;;  %v877_v13 = vmul.f32 0.5, %v2091_v55 }
 0x25d   : > { %1623 = vtanh.f32 %v1040_v34  ;;  %v1483_v37 = vpack.c.bf16 %v1129_v23, %v1128_v50  ;;  %v1041_v52 = vmul.f32 0.7978846, %v1009_v15  ;;  %v946_v61 = vmul.f32 %v914_v39, %v2139_v14 }
 0x25e   : > { %1625 = vtanh.f32 %v1039_v29  ;;  %v1618_v35 = vpop.eup %1617  ;;  %1248 = vst [vmem:[%s2037_s12 + $0x30] sm:$0xff] %v1482_v31  ;;  %v1130_v3 = vmul.f32 %v1098_v1, %v874_v53  ;;  %v1100_v56 = vadd.f32 1.0, %v1616_v42  ;;  %v878_v18 = vmul.f32 0.5, %v2104_v46 }
 0x25f   : > { %v916_v58 = vmul.f32 0.044715, %v2146_v5  ;;  %1249 = vst [vmem:[%s2037_s12 + $0x38] sm:$0xff] %v1483_v37  ;;  %v1099_v32 = vadd.f32 1.0, %v1618_v35  ;;  %1627 = vtanh.f32 %v1041_v52  ;;  %v978_v43 = vmul.f32 %v946_v61, %v2139_v14 }
 0x260   : > { %v915_v55 = vmul.f32 0.044715, %v2151_v9  ;;  %v2169_v16 = vadd.f32 %v2017_v41, %v1895_v22  ;;  %v2173_v53 = vadd.f32 %v2022_v30, %v1889_v17  ;;  %v2177_v46 = vadd.f32 %v2024_v28, %v1891_v8 }
 0x261   : > { %v948_v59 = vmul.f32 %v916_v58, %v2146_v5  ;;  %v1131_v60 = vmul.f32 %v1099_v32, %v875_v25  ;;  %v1010_v54 = vadd.f32 %v978_v43, %v2139_v14  ;;  %v2183_v63 = vadd.f32 %v2028_v48, %v1893_v20 }
 0x262   : > { %v947_v45 = vmul.f32 %v915_v55, %v2151_v9  ;;  %v1620_v41 = vpop.eup %1619  ;;  %v1132_v21 = vmul.f32 %v1100_v56, %v2129_v62  ;;  %v880_v17 = vmul.f32 0.5, %v2111_v2  ;;  %v917_v8 = vmul.f32 0.044715, %v2169_v16 }
 0x263   : > { %v980_v30 = vmul.f32 %v948_v59, %v2146_v5  ;;  %v1484_v28 = vpack.c.bf16 %v1131_v60, %v1130_v3  ;;  %v1101_v38 = vadd.f32 1.0, %v1620_v41  ;;  %v1042_v0 = vmul.f32 0.7978846, %v1010_v54 }
 0x264   : > { %v979_v50 = vmul.f32 %v947_v45, %v2151_v9  ;;  %v879_v36 = vmul.f32 0.5, %v2115_v40  ;;  %v949_v20 = vmul.f32 %v917_v8, %v2169_v16  ;;  %v918_v48 = vmul.f32 0.044715, %v2173_v53 }
 0x265   : > { %v1012_v44 = vadd.f32 %v980_v30, %v2146_v5  ;;  %v1622_v62 = vpop.eup %1621  ;;  %1250 = vst [vmem:[%s2037_s12 + $0x40] sm:$0xff] %v1484_v28  ;;  %v1133_v2 = vmul.f32 %v1101_v38, %v877_v13  ;;  %1629 = vtanh.f32 %v1042_v0  ;;  %v920_v51 = vmul.f32 0.044715, %v2177_v46 }
 0x266   : > { %v1011_v19 = vadd.f32 %v979_v50, %v2151_v9  ;;  %v1102_v4 = vadd.f32 1.0, %v1622_v62  ;;  %v981_v40 = vmul.f32 %v949_v20, %v2169_v16  ;;  %v950_v10 = vmul.f32 %v918_v48, %v2173_v53 }
 0x267   : > { %v1624_v26 = vpop.eup %1623  ;;  %v1044_v6 = vmul.f32 0.7978846, %v1012_v44  ;;  %v1485_v57 = vpack.c.bf16 %v1133_v2, %v1132_v21  ;;  %v952_v33 = vmul.f32 %v920_v51, %v2177_v46  ;;  %v881_v39 = vmul.f32 0.5, %v2120_v47 }
 0x268   : > { %v1626_v11 = vpop.eup %1625  ;;  %v1104_v12 = vadd.f32 1.0, %v1624_v26  ;;  %v1043_v7 = vmul.f32 0.7978846, %v1011_v19  ;;  %v1134_v24 = vmul.f32 %v1102_v4, %v878_v18  ;;  %v1013_v1 = vadd.f32 %v981_v40, %v2169_v16 }
 0x269   : > { %v1103_v27 = vadd.f32 1.0, %v1626_v11  ;;  %1631 = vtanh.f32 %v1044_v6  ;;  %v1628_v34 = vpop.eup %1627  ;;  %1251 = vst [vmem:[%s2037_s12 + $0x48] sm:$0xff] %v1485_v57  ;;  %v982_v42 = vmul.f32 %v950_v10, %v2173_v53  ;;  %v984_v23 = vmul.f32 %v952_v33, %v2177_v46 }
 0x26a   : > { %1633 = vtanh.f32 %v1043_v7  ;;  %v1136_v29 = vmul.f32 %v1104_v12, %v880_v17  ;;  %v1105_v31 = vadd.f32 1.0, %v1628_v34  ;;  %v1045_v25 = vmul.f32 0.7978846, %v1013_v1 }
 0x26b   : > { %v1135_v15 = vmul.f32 %v1103_v27, %v879_v36  ;;  %v1014_v13 = vadd.f32 %v982_v42, %v2173_v53  ;;  %v1016_v37 = vadd.f32 %v984_v23, %v2177_v46  ;;  %v919_v52 = vmul.f32 0.044715, %v2183_v63 }
 0x26c   : > { %v856_v47 = vadd.f32 %v2030_v49, %v1895_v22  ;;  %v1137_v35 = vmul.f32 %v1105_v31, %v881_v39  ;;  %1635 = vtanh.f32 %v1045_v25  ;;  %v882_v49 = vmul.f32 0.5, %v2139_v14 }
 0x26d   : > { %v1486_v61 = vpack.c.bf16 %v1135_v15, %v1134_v24  ;;  %v1046_v3 = vmul.f32 0.7978846, %v1014_v13  ;;  %v951_v56 = vmul.f32 %v919_v52, %v2183_v63  ;;  %v1048_v58 = vmul.f32 0.7978846, %v1016_v37 }
 0x26e   : > { %v1487_v18 = vpack.c.bf16 %v1137_v35, %v1136_v29  ;;  %v921_v32 = vmul.f32 0.044715, %v856_v47  ;;  %v883_v8 = vmul.f32 0.5, %v2151_v9  ;;  %v884_v0 = vmul.f32 0.5, %v2146_v5 }
 0x26f   : > { %1252 = vst [vmem:[%s2037_s12 + $0x50] sm:$0xff] %v1486_v61  ;;  %v1630_v43 = vpop.eup %1629  ;;  %1637 = vtanh.f32 %v1046_v3  ;;  %v983_v55 = vmul.f32 %v951_v56, %v2183_v63  ;;  %v885_v14 = vmul.f32 0.5, %v2169_v16  ;;  %v886_v5 = vmul.f32 0.5, %v2173_v53 }
 0x270   : > { %1253 = vst [vmem:[%s2037_s12 + $0x58] sm:$0xff] %v1487_v18  ;;  %v1106_v59 = vadd.f32 1.0, %v1630_v43  ;;  %v953_v60 = vmul.f32 %v921_v32, %v856_v47  ;;  %1639 = vtanh.f32 %v1048_v58  ;;  %v887_v10 = vmul.f32 0.5, %v2183_v63 }
 0x271   : > { %v1015_v54 = vadd.f32 %v983_v55, %v2183_v63  ;;  %v888_v11 = vmul.f32 0.5, %v2177_v46  ;;  %v889_v33 = vmul.f32 0.5, %v856_v47 }
 0x272   : > { %v985_v45 = vmul.f32 %v953_v60, %v856_v47  ;;  %v1138_v30 = vmul.f32 %v1106_v59, %v882_v49 }
 0x273   : > { %v1632_v22 = vpop.eup %1631  ;;  %v1047_v17 = vmul.f32 0.7978846, %v1015_v54 }
 0x274   : > { %v1634_v41 = vpop.eup %1633  ;;  %v1108_v21 = vadd.f32 1.0, %v1632_v22  ;;  %v1017_v38 = vadd.f32 %v985_v45, %v856_v47 }
 0x275   : > { %v1107_v28 = vadd.f32 1.0, %v1634_v41  ;;  %1641 = vtanh.f32 %v1047_v17 }
 0x276   : > { %v1636_v50 = vpop.eup %1635  ;;  %v1049_v44 = vmul.f32 0.7978846, %v1017_v38  ;;  %v1140_v20 = vmul.f32 %v1108_v21, %v884_v0 }
 0x277   : > { %v1139_v36 = vmul.f32 %v1107_v28, %v883_v8  ;;  %v1109_v48 = vadd.f32 1.0, %v1636_v50 }
 0x278   : > { %1643 = vtanh.f32 %v1049_v44 }
 0x279   : > { %v1488_v62 = vpack.c.bf16 %v1139_v36, %v1138_v30  ;;  %v1638_v2 = vpop.eup %1637  ;;  %v1141_v19 = vmul.f32 %v1109_v48, %v885_v14 }
 0x27a   : > { %v1640_v9 = vpop.eup %1639  ;;  %v1110_v26 = vadd.f32 1.0, %v1638_v2 }
 0x27b   : > { %1254 = vst [vmem:[%s2037_s12 + $0x60] sm:$0xff] %v1488_v62  ;;  %v1489_v51 = vpack.c.bf16 %v1141_v19, %v1140_v20  ;;  %v1112_v6 = vadd.f32 1.0, %v1640_v9 }
 0x27c   : > { %v1142_v40 = vmul.f32 %v1110_v26, %v886_v5 }
 0x27d   : > { %1255 = vst [vmem:[%s2037_s12 + $0x68] sm:$0xff] %v1489_v51  ;;  %v1144_v7 = vmul.f32 %v1112_v6, %v888_v11 }
 0x27f   : > { %v1642_v4 = vpop.eup %1641 }
 0x280   : > { %v1111_v16 = vadd.f32 1.0, %v1642_v4 }
 0x282   : > { %v1644_v57 = vpop.eup %1643  ;;  %v1143_v12 = vmul.f32 %v1111_v16, %v887_v10 }
 0x283   : > { %v1113_v24 = vadd.f32 1.0, %v1644_v57 }
 0x284   : > { %v1490_v27 = vpack.c.bf16 %v1143_v12, %v1142_v40 }
 0x285   : > { %v1145_v1 = vmul.f32 %v1113_v24, %v889_v33 }
 0x286   : > { %1256 = vst [vmem:[%s2037_s12 + $0x70] sm:$0xff] %v1490_v27 }
 0x287   : > { %v1491_v34 = vpack.c.bf16 %v1145_v1, %v1144_v7 }
 0x289   : > { %1257 = vst [vmem:[%s2037_s12 + $0x78] sm:$0xff] %v1491_v34 }
 0x28a PF: > { %s15_s20 = sadd.s32 1, %s1667_s20   ;;  %s2241_s18 = smov %s1663_s19 }
 0x28b   : > { %p12_p5 = scmp.ge.s32.totalorder %s15_s20, 4   ;;  %s2242_s19 = smov %s2244_s21 }
 0x28d   :  { %14 = sbr.rel (!%p12_p5) target bundleno = 2 (0x2), region = 86 }

// kernel: _lambda_.41
= control target key start
LH: loop header
LB: loop body
LE: loop exit
PB: predicated region body
PF: predicated region fallthrough
CT: control target
= control target key end

     0   :  { %s1359_s18 = smov 0   ;;  %s1361_s19 = smov 0   ;;  %s1564_s0 = inlined_call_operand.vmem [shape: bf16[2,64,512], index: 0, kind: input, shape index: {}]   ;;  %s1565_s1 = inlined_call_operand.vmem [shape: bf16[512,128], index: 1, kind: input, shape index: {}]   ;;  %s1566_s2 = inlined_call_operand.vmem [shape: f32[1,128], index: 2, kind: input, shape index: {}]   ;;  %s1567_s3 = inlined_call_operand.vmem [shape: f32[2,1,128], index: 3, kind: input, shape index: {}]   ;;  %s1568_s4 = inlined_call_operand.vmem [shape: f32[2,64,128], index: 4, kind: input, shape index: {}]   ;;  %s1569_s5 = inlined_call_operand.vmem [shape: f32[2,64,128], index: 5, kind: output, shape index: {}]  }
   0x1   :  { %s1363_s20 = smov 0  }
   0x2 LB: > { %s34_s21 = sadd.s32 1, %s1323_s19  ;;  %p1083_p0 = scmp.ge.s32.totalorder %s1327_s20, 1  ;;  %s1327_s20 = sphi %s1363_s20, %s15_s20   ;;  %s1323_s19 = sphi %s1361_s19, %s1571_s19   ;;  %s1319_s18 = sphi %s1359_s18, %s1570_s18  }
   0x3   : > { %p36_p1 = scmp.ge.s32.totalorder %s34_s21, 2  ;;  %p270_p2 = scmp.lt.s32.totalorder %s1327_s20, 3 }
   0x5   : > { %s1573_s21 = smov (%p36_p1, %s34_s21), 0  ;;  %p271_p3 = pnand %p1083_p0, %p270_p2 }
   0x6   : > { %v1249_v0 = vld [vmem:[%s1565_s1 + $0x40] sm:$0xff] (!%p271_p3)   ;;  %v1253_v4 = vld [vmem:[%s1565_s1 + $0x48] sm:$0xff] (!%p271_p3)   ;;  %v1257_v8 = vld [vmem:[%s1565_s1 + $0x50] sm:$0xff] (!%p271_p3)   ;;  %p336_p4 = scmp.lt.s32.totalorder (!%p271_p3), %s1319_s18, 1 }
   0x7   : > { %274 = sbr.rel (%p271_p3) target bundleno = 290 (0x122), region = 40  ;;  %v1250_v1 = vld [vmem:[%s1565_s1 + $0xc0] sm:$0xff] (!%p271_p3)   ;;  %1145 = vmatprep.subr.bf16.mxu0 (!%p271_p3), %v1249_v0  ;;  %v1254_v5 = vld [vmem:[%s1565_s1 + $0xc8] sm:$0xff] (!%p271_p3)   ;;  %v1258_v9 = vld [vmem:[%s1565_s1 + $0xd0] sm:$0xff] (!%p271_p3)  }
   0x8   : > { %v1251_v2 = vld [vmem:[%s1565_s1] sm:$0xff] (!%p271_p3)   ;;  %1185 = vmatprep.subr.bf16.mxu1 (!%p271_p3), %v1250_v1  ;;  %v1255_v6 = vld [vmem:[%s1565_s1 + $0x8] sm:$0xff] (!%p271_p3)   ;;  %v1259_v10 = vld [vmem:[%s1565_s1 + $0x10] sm:$0xff] (!%p271_p3)  }
   0x9   : > { %v1252_v3 = vld [vmem:[%s1565_s1 + $0x80] sm:$0xff] (!%p271_p3)   ;;  %1146 = vmatpush3.bf16.msra.mxu0 (!%p271_p3), %v1251_v2  ;;  %v1256_v7 = vld [vmem:[%s1565_s1 + $0x88] sm:$0xff] (!%p271_p3)   ;;  %v1260_v11 = vld [vmem:[%s1565_s1 + $0x90] sm:$0xff] (!%p271_p3)  }
   0xa   : > { %1186 = vmatpush3.bf16.msra.mxu1 (!%p271_p3), %v1252_v3  ;;  %1147 = vmatprep.subr.bf16.mxu0 (!%p271_p3), %v1253_v4  ;;  %v1261_v12 = vld [vmem:[%s1565_s1 + $0x58] sm:$0xff] (!%p271_p3)   ;;  %v1265_v16 = vld [vmem:[%s1565_s1 + $0x60] sm:$0xff] (!%p271_p3)   ;;  %v1269_v20 = vld [vmem:[%s1565_s1 + $0x68] sm:$0xff] (!%p271_p3)  }
   0xb   : > { %1187 = vmatprep.subr.bf16.mxu1 (!%p271_p3), %v1254_v5  ;;  %v1262_v13 = vld [vmem:[%s1565_s1 + $0xd8] sm:$0xff] (!%p271_p3)   ;;  %v1266_v17 = vld [vmem:[%s1565_s1 + $0xe0] sm:$0xff] (!%p271_p3)   ;;  %v1270_v21 = vld [vmem:[%s1565_s1 + $0xe8] sm:$0xff] (!%p271_p3)  }
   0xc   : > { %v1263_v14 = vld [vmem:[%s1565_s1 + $0x18] sm:$0xff] (!%p271_p3)   ;;  %v1267_v18 = vld [vmem:[%s1565_s1 + $0x20] sm:$0xff] (!%p271_p3)   ;;  %v1271_v22 = vld [vmem:[%s1565_s1 + $0x28] sm:$0xff] (!%p271_p3)  }
   0xd   : > { %1148 = vmatpush3.bf16.msra.mxu0 (!%p271_p3), %v1255_v6  ;;  %v1264_v15 = vld [vmem:[%s1565_s1 + $0x98] sm:$0xff] (!%p271_p3)   ;;  %v1268_v19 = vld [vmem:[%s1565_s1 + $0xa0] sm:$0xff] (!%p271_p3)   ;;  %v1272_v23 = vld [vmem:[%s1565_s1 + $0xa8] sm:$0xff] (!%p271_p3)  }
   0xe   : > { %1188 = vmatpush3.bf16.msra.mxu1 %v1256_v7  ;;  %1149 = vmatprep.subr.bf16.mxu0 %v1257_v8  ;;  %s1575_s18 = smov (!%p336_p4, %s1319_s18), 1  ;;  %v1273_v24 = vld [vmem:[%s1565_s1 + $0x70] sm:$0xff]   ;;  %v1277_v28 = vld [vmem:[%s1565_s1 + $0x78] sm:$0xff]   ;;  %v1504_v50 = vld [vmem:[%s1566_s2] ss:$0 sm:$0xff] }
   0xf   : > { %1189 = vmatprep.subr.bf16.mxu1 %v1258_v9  ;;  %v1274_v25 = vld [vmem:[%s1565_s1 + $0xf0] sm:$0xff]   ;;  %s1142_s9 = sshll.u32 %s1575_s18, 7  ;;  %v1278_v29 = vld [vmem:[%s1565_s1 + $0xf8] sm:$0xff]   ;;  %s1143_s29 = sshll.u32 %s1575_s18, 6 }
  0x10   : > { %v1275_v26 = vld [vmem:[%s1565_s1 + $0x30] sm:$0xff]   ;;  %s1477_s22 = scalar_lea.vmem %s1564_s0, %s1142_s9  ;;  %v1279_v30 = vld [vmem:[%s1565_s1 + $0x38] sm:$0xff]   ;;  %s358_s7 = scalar_lea.vmem %s1567_s3, %s1575_s18 }
  0x11   : > { %1150 = vmatpush3.bf16.msra.mxu0 %v1259_v10  ;;  %v1276_v27 = vld [vmem:[%s1565_s1 + $0xb0] sm:$0xff]   ;;  %v1280_v31 = vld [vmem:[%s1565_s1 + $0xb8] sm:$0xff]   ;;  %s1515_s10 = scalar_lea.vmem %s1568_s4, %s1143_s29  ;;  %v1517_v61 = vld [vmem:[%s358_s7] ss:$0 sm:$0xff]  ;;  %s1525_s12 = scalar_lea.vmem %s1569_s5, %s1143_s29 }
  0x12   : > { %1190 = vmatpush3.bf16.msra.mxu1 %v1260_v11  ;;  %1151 = vmatprep.subr.bf16.mxu0 %v1261_v12  ;;  %v1281_v32 = vld [vmem:[%s1477_s22] ss:$16 sps:$4 sm:$0xff]   ;;  %v1283_v33 = vld [vmem:[%s1477_s22 + $0x4] ss:$16 sps:$4 sm:$0xff]   ;;  %v1284_v34 = vld [vmem:[%s1477_s22 + $0x8] ss:$16 sps:$4 sm:$0xff]  }
  0x13   : > { %1191 = vmatprep.subr.bf16.mxu1 %v1262_v13  ;;  %v1286_v35 = vld [vmem:[%s1477_s22 + $0xc] ss:$16 sps:$4 sm:$0xff]   ;;  %786 = vmatprep.mubr.bf16.mxu0 %v1283_v33  ;;  %v1287_v36 = vld [vmem:[%s1477_s22 + $0x24] ss:$16 sps:$4 sm:$0xff]   ;;  %v1291_v38 = vld [vmem:[%s1477_s22 + $0x20] ss:$16 sps:$4 sm:$0xff]  }
  0x14   : > { %851 = vmatprep.mubr.bf16.mxu1 %v1286_v35  ;;  %v1289_v37 = vld [vmem:[%s1477_s22 + $0x2c] ss:$16 sps:$4 sm:$0xff]   ;;  %v1292_v39 = vld [vmem:[%s1477_s22 + $0x28] ss:$16 sps:$4 sm:$0xff]   ;;  %v1293_v40 = vld [vmem:[%s1477_s22 + $0x44] ss:$16 sps:$4 sm:$0xff]  }
  0x15   : > { %1152 = vmatpush3.bf16.msra.mxu0 %v1263_v14  ;;  %v1295_v41 = vld [vmem:[%s1477_s22 + $0x4c] ss:$16 sps:$4 sm:$0xff]   ;;  %v1297_v42 = vld [vmem:[%s1477_s22 + $0x40] ss:$16 sps:$4 sm:$0xff]   ;;  %v1298_v43 = vld [vmem:[%s1477_s22 + $0x48] ss:$16 sps:$4 sm:$0xff]  }
  0x16   : > { %1192 = vmatpush3.bf16.msra.mxu1 %v1264_v15  ;;  %1153 = vmatprep.subr.bf16.mxu0 %v1265_v16  ;;  %v1299_v44 = vld [vmem:[%s1477_s22 + $0x64] ss:$16 sps:$4 sm:$0xff]   ;;  %v1301_v45 = vld [vmem:[%s1477_s22 + $0x6c] ss:$16 sps:$4 sm:$0xff]   ;;  %v1303_v46 = vld [vmem:[%s1477_s22 + $0x60] ss:$16 sps:$4 sm:$0xff]  }
  0x17   : > { %1193 = vmatprep.subr.bf16.mxu1 %v1266_v17  ;;  %v1304_v47 = vld [vmem:[%s1477_s22 + $0x68] ss:$16 sps:$4 sm:$0xff]   ;;  %v466_v1 = vld [vmem:[%s1515_s10] sm:$0xff] }
  0x18   : > { %v467_v5 = vld [vmem:[%s1515_s10 + $0x8] sm:$0xff] }
  0x19   : > { %1154 = vmatpush3.bf16.msra.mxu0 %v1267_v18 }
  0x1a   : > { %1194 = vmatpush3.bf16.msra.mxu1 %v1268_v19  ;;  %1155 = vmatprep.subr.bf16.mxu0 %v1269_v20 }
  0x1b   : > { %1195 = vmatprep.subr.bf16.mxu1 %v1270_v21 }
  0x1d   : > { %1156 = vmatpush3.bf16.msra.mxu0 %v1271_v22 }
  0x1e   : > { %1196 = vmatpush3.bf16.msra.mxu1 %v1272_v23  ;;  %1157 = vmatprep.subr.bf16.mxu0 %v1273_v24  ;;  %v468_v23 = vld [vmem:[%s1515_s10 + $0x10] sm:$0xff] }
  0x1f   : > { %1197 = vmatprep.subr.bf16.mxu1 %v1274_v25 }
  0x21   : > { %1158 = vmatpush3.bf16.msra.mxu0 %v1275_v26 }
  0x22   : > { %1198 = vmatpush3.bf16.msra.mxu1 %v1276_v27  ;;  %1159 = vmatprep.subr.bf16.mxu0 %v1277_v28  ;;  %v469_v27 = vld [vmem:[%s1515_s10 + $0x18] sm:$0xff] }
  0x23   : > { %1199 = vmatprep.subr.bf16.mxu1 %v1278_v29 }
  0x25   : > { %1160 = vmatpush3.bf16.msra.mxu0 %v1279_v30 }
  0x26   : > { %1200 = vmatpush3.bf16.msra.mxu1 %v1280_v31 }
  0x28   : > { %787 = vmatmul.mubr.bf16.vlgmr.msra.gmra.mrb[0].mxu0 %v1281_v32 }
  0x29   : > { %852 = vmatmul.mubr.bf16.vlgmr.msra.gmra.mrb[0].mxu1 %v1284_v34  ;;  %794 = vmatprep.mubr.bf16.mxu0 %v1287_v36 }
  0x2a   : > { %859 = vmatprep.mubr.bf16.mxu1 %v1289_v37 }
  0x30   : > { %795 = vmatmul.mubr.bf16.gmra.mrb[4].mxu0 %v1291_v38 }
  0x31   : > { %860 = vmatmul.mubr.bf16.gmra.mrb[4].mxu1 %v1292_v39  ;;  %802 = vmatprep.mubr.bf16.mxu0 %v1293_v40 }
  0x32   : > { %867 = vmatprep.mubr.bf16.mxu1 %v1295_v41 }
  0x38   : > { %803 = vmatmul.mubr.bf16.gmra.mrb[8].mxu0 %v1297_v42 }
  0x39   : > { %868 = vmatmul.mubr.bf16.gmra.mrb[8].mxu1 %v1298_v43  ;;  %810 = vmatprep.mubr.bf16.mxu0 %v1299_v44 }
  0x3a   : > { %875 = vmatprep.mubr.bf16.mxu1 %v1301_v45  ;;  %v470_v45 = vld [vmem:[%s1515_s10 + $0x20] sm:$0xff] }
  0x40   : > { %811 = vmatmul.mubr.bf16.gmra.mrb[12].mxu0 %v1303_v46 }
  0x41   : > { %876 = vmatmul.mubr.bf16.gmra.mrb[12].mxu1 %v1304_v47 }
  0xfb   : > { %v1161_v48 = vpop.f32.mrb[0].mxu0 }
  0xfc   : > { %v1201_v49 = vpop.f32.mrb[0].mxu1  ;;  %v1162_v51 = vpop.f32.mrb[1].mxu0 }
  0xfd   : > { %v1163_v52 = vadd.f32 %v1162_v51, %v1161_v48  ;;  %v1202_v53 = vpop.f32.mrb[1].mxu1  ;;  %v1164_v54 = vpop.f32.mrb[2].mxu0 }
  0xfe   : > { %v1203_v55 = vadd.f32 %v1202_v53, %v1201_v49  ;;  %v1204_v56 = vpop.f32.mrb[2].mxu1  ;;  %v1165_v57 = vpop.f32.mrb[3].mxu0  ;;  %v471_v49 = vld [vmem:[%s1515_s10 + $0x28] sm:$0xff] }
  0xff   : > { %v789_v58 = vadd.f32 %v1163_v52, %v1504_v50  ;;  %v1166_v59 = vadd.f32 %v1165_v57, %v1164_v54  ;;  %v1205_v60 = vpop.f32.mrb[3].mxu1 }
 0x100   : > { %v1206_v62 = vadd.f32 %v1205_v60, %v1204_v56 }
 0x101   : > { %v854_v63 = vadd.f32 %v1203_v55, %v789_v58  ;;  %v792_v0 = vadd.f32 %v1166_v59, %v1504_v50 }
 0x103   : > { %v890_v2 = vmul.f32 %v1517_v61, %v854_v63  ;;  %v857_v3 = vadd.f32 %v1206_v62, %v792_v0  ;;  %v1167_v4 = vpop.f32.mrb[4].mxu0 }
 0x104   : > { %v1207_v6 = vpop.f32.mrb[4].mxu1  ;;  %v1168_v7 = vpop.f32.mrb[5].mxu0 }
 0x105   : > { %v898_v8 = vadd.f32 %v890_v2, %v466_v1  ;;  %v891_v9 = vmul.f32 %v1517_v61, %v857_v3  ;;  %v1169_v10 = vadd.f32 %v1168_v7, %v1167_v4  ;;  %v1208_v11 = vpop.f32.mrb[5].mxu1  ;;  %v1170_v12 = vpop.f32.mrb[6].mxu0 }
 0x106   : > { %v1209_v13 = vadd.f32 %v1208_v11, %v1207_v6  ;;  %v1210_v14 = vpop.f32.mrb[6].mxu1  ;;  %v1171_v15 = vpop.f32.mrb[7].mxu0 }
 0x107   : > { %906 = vst [vmem:[%s1525_s12] sm:$0xff] %v898_v8  ;;  %v899_v16 = vadd.f32 %v891_v9, %v467_v5  ;;  %v797_v17 = vadd.f32 %v1169_v10, %v1504_v50  ;;  %v1172_v18 = vadd.f32 %v1171_v15, %v1170_v12  ;;  %v1211_v19 = vpop.f32.mrb[7].mxu1  ;;  %v472_v5 = vld [vmem:[%s1515_s10 + $0x30] sm:$0xff]  ;;  %v473_v8 = vld [vmem:[%s1515_s10 + $0x38] sm:$0xff] }
 0x108   : > { %v1212_v20 = vadd.f32 %v1211_v19, %v1210_v14 }
 0x109   : > { %907 = vst [vmem:[%s1525_s12 + $0x8] sm:$0xff] %v899_v16  ;;  %v862_v21 = vadd.f32 %v1209_v13, %v797_v17  ;;  %v800_v22 = vadd.f32 %v1172_v18, %v1504_v50 }
 0x10b   : > { %v892_v24 = vmul.f32 %v1517_v61, %v862_v21  ;;  %v865_v25 = vadd.f32 %v1212_v20, %v800_v22  ;;  %v1173_v26 = vpop.f32.mrb[8].mxu0 }
 0x10c   : > { %v1213_v28 = vpop.f32.mrb[8].mxu1  ;;  %v1174_v29 = vpop.f32.mrb[9].mxu0 }
 0x10d   : > { %v900_v30 = vadd.f32 %v892_v24, %v468_v23  ;;  %v893_v31 = vmul.f32 %v1517_v61, %v865_v25  ;;  %v1175_v32 = vadd.f32 %v1174_v29, %v1173_v26  ;;  %v1214_v33 = vpop.f32.mrb[9].mxu1  ;;  %v1176_v34 = vpop.f32.mrb[10].mxu0 }
 0x10e   : > { %v1215_v35 = vadd.f32 %v1214_v33, %v1213_v28  ;;  %v1216_v36 = vpop.f32.mrb[10].mxu1  ;;  %v1177_v37 = vpop.f32.mrb[11].mxu0 }
 0x10f   : > { %908 = vst [vmem:[%s1525_s12 + $0x10] sm:$0xff] %v900_v30  ;;  %v901_v38 = vadd.f32 %v893_v31, %v469_v27  ;;  %v805_v39 = vadd.f32 %v1175_v32, %v1504_v50  ;;  %v1178_v40 = vadd.f32 %v1177_v37, %v1176_v34  ;;  %v1217_v41 = vpop.f32.mrb[11].mxu1 }
 0x110   : > { %v1218_v42 = vadd.f32 %v1217_v41, %v1216_v36 }
 0x111   : > { %909 = vst [vmem:[%s1525_s12 + $0x18] sm:$0xff] %v901_v38  ;;  %v870_v43 = vadd.f32 %v1215_v35, %v805_v39  ;;  %v808_v44 = vadd.f32 %v1178_v40, %v1504_v50 }
 0x113   : > { %v894_v46 = vmul.f32 %v1517_v61, %v870_v43  ;;  %v873_v47 = vadd.f32 %v1218_v42, %v808_v44  ;;  %v1179_v48 = vpop.f32.mrb[12].mxu0 }
 0x114   : > { %v1219_v51 = vpop.f32.mrb[12].mxu1  ;;  %v1180_v52 = vpop.f32.mrb[13].mxu0 }
 0x115   : > { %v902_v53 = vadd.f32 %v894_v46, %v470_v45  ;;  %v895_v54 = vmul.f32 %v1517_v61, %v873_v47  ;;  %v1181_v55 = vadd.f32 %v1180_v52, %v1179_v48  ;;  %v1220_v56 = vpop.f32.mrb[13].mxu1  ;;  %v1182_v57 = vpop.f32.mrb[14].mxu0 }
 0x116   : > { %v1221_v58 = vadd.f32 %v1220_v56, %v1219_v51  ;;  %v1222_v59 = vpop.f32.mrb[14].mxu1  ;;  %v1183_v60 = vpop.f32.mrb[15].mxu0 }
 0x117   : > { %910 = vst [vmem:[%s1525_s12 + $0x20] sm:$0xff] %v902_v53  ;;  %v903_v62 = vadd.f32 %v895_v54, %v471_v49  ;;  %v813_v63 = vadd.f32 %v1181_v55, %v1504_v50  ;;  %v1184_v0 = vadd.f32 %v1183_v60, %v1182_v57  ;;  %v1223_v1 = vpop.f32.mrb[15].mxu1 }
 0x118   : > { %v1224_v2 = vadd.f32 %v1223_v1, %v1222_v59 }
 0x119   : > { %911 = vst [vmem:[%s1525_s12 + $0x28] sm:$0xff] %v903_v62  ;;  %v878_v3 = vadd.f32 %v1221_v58, %v813_v63  ;;  %v816_v4 = vadd.f32 %v1184_v0, %v1504_v50 }
 0x11b   : > { %v896_v6 = vmul.f32 %v1517_v61, %v878_v3  ;;  %v881_v7 = vadd.f32 %v1224_v2, %v816_v4 }
 0x11d   : > { %v904_v9 = vadd.f32 %v896_v6, %v472_v5  ;;  %v897_v10 = vmul.f32 %v1517_v61, %v881_v7 }
 0x11f   : > { %912 = vst [vmem:[%s1525_s12 + $0x30] sm:$0xff] %v904_v9  ;;  %v905_v11 = vadd.f32 %v897_v10, %v473_v8 }
 0x121   : > { %913 = vst [vmem:[%s1525_s12 + $0x38] sm:$0xff] %v905_v11 }
 0x122 PF: > { %s15_s20 = sadd.s32 1, %s1327_s20   ;;  %s1570_s18 = smov %s1323_s19 }
 0x123   : > { %p12_p5 = scmp.ge.s32.totalorder %s15_s20, 4   ;;  %s1571_s19 = smov %s1573_s21 }
 0x125   :  { %14 = sbr.rel (!%p12_p5) target bundleno = 2 (0x2), region = 82 }

// kernel: _lambda_.47
= control target key start
LH: loop header
LB: loop body
LE: loop exit
PB: predicated region body
PF: predicated region fallthrough
CT: control target
= control target key end

     0   :  { %s1039_s18 = smov 0   ;;  %s1041_s19 = smov 0   ;;  %s1161_s0 = inlined_call_operand.vmem [shape: f32[2,64,128], index: 0, kind: input, shape index: {}, may-alias: {0,1}]   ;;  %s1162_s1 = inlined_call_operand.vmem [shape: f32[2,64,128], index: 1, kind: input, shape index: {}, may-alias: {0,1}]   ;;  %s1163_s2 = inlined_call_operand.vmem [shape: bf16[128,128], index: 2, kind: input, shape index: {}]   ;;  %s1164_s3 = inlined_call_operand.vmem [shape: bf16[128,128], index: 3, kind: input, shape index: {}]   ;;  %s1165_s4 = inlined_call_operand.vmem [shape: f32[1,128], index: 4, kind: input, shape index: {}]   ;;  %s1166_s5 = inlined_call_operand.vmem [shape: f32[2,64,128], index: 5, kind: output, shape index: {}]  }
   0x1   :  { %s1043_s20 = smov 0  }
   0x2 LB: > { %s34_s21 = sadd.s32 1, %s1003_s19  ;;  %p836_p0 = scmp.ge.s32.totalorder %s1007_s20, 1  ;;  %s1007_s20 = sphi %s1043_s20, %s15_s20   ;;  %s1003_s19 = sphi %s1041_s19, %s1168_s19   ;;  %s999_s18 = sphi %s1039_s18, %s1167_s18  }
   0x3   : > { %p36_p1 = scmp.ge.s32.totalorder %s34_s21, 2  ;;  %p260_p2 = scmp.lt.s32.totalorder %s1007_s20, 3 }
   0x5   : > { %s1170_s21 = smov (%p36_p1, %s34_s21), 0  ;;  %p261_p3 = pnand %p836_p0, %p260_p2 }
   0x6   : > { %v969_v0 = vld [vmem:[%s1164_s3] sm:$0xff] (!%p261_p3)   ;;  %v971_v2 = vld [vmem:[%s1164_s3 + $0x8] sm:$0xff] (!%p261_p3)   ;;  %p320_p4 = scmp.lt.s32.totalorder (!%p261_p3), %s999_s18, 1  ;;  %v973_v4 = vld [vmem:[%s1164_s3 + $0x10] sm:$0xff] (!%p261_p3)  }
   0x7   : > { %264 = sbr.rel (%p261_p3) target bundleno = 268 (0x10c), region = 40  ;;  %v970_v1 = vld [vmem:[%s1163_s2] sm:$0xff] (!%p261_p3)   ;;  %889 = vmatprep.subr.bf16.mxu1 (!%p261_p3), %v969_v0  ;;  %v972_v3 = vld [vmem:[%s1163_s2 + $0x8] sm:$0xff] (!%p261_p3)   ;;  %v974_v5 = vld [vmem:[%s1163_s2 + $0x10] sm:$0xff] (!%p261_p3)  }
   0x8   : > { %913 = vmatprep.subr.bf16.mxu0 (!%p261_p3), %v970_v1  ;;  %890 = vmatpush3.bf16.msra.mxu1 (!%p261_p3), %v969_v0  ;;  %v975_v6 = vld [vmem:[%s1164_s3 + $0x18] sm:$0xff] (!%p261_p3)   ;;  %v977_v8 = vld [vmem:[%s1164_s3 + $0x20] sm:$0xff] (!%p261_p3)   ;;  %v979_v10 = vld [vmem:[%s1164_s3 + $0x28] sm:$0xff] (!%p261_p3)  }
   0x9   : > { %914 = vmatpush3.bf16.msra.mxu0 (!%p261_p3), %v970_v1  ;;  %891 = vmatprep.subr.bf16.mxu1 (!%p261_p3), %v971_v2  ;;  %v976_v7 = vld [vmem:[%s1163_s2 + $0x18] sm:$0xff] (!%p261_p3)   ;;  %v978_v9 = vld [vmem:[%s1163_s2 + $0x20] sm:$0xff] (!%p261_p3)   ;;  %v980_v14 = vld [vmem:[%s1163_s2 + $0x28] sm:$0xff] (!%p261_p3)  }
   0xa   : > { %915 = vmatprep.subr.bf16.mxu0 (!%p261_p3), %v972_v3  ;;  %v981_v18 = vld [vmem:[%s1164_s3 + $0x30] sm:$0xff] (!%p261_p3)   ;;  %v983_v20 = vld [vmem:[%s1164_s3 + $0x38] sm:$0xff] (!%p261_p3)   ;;  %v859_v42 = vld [vmem:[%s1165_s4] ss:$0 sm:$0xff] (!%p261_p3) }
   0xb   : > { %v982_v19 = vld [vmem:[%s1163_s2 + $0x30] sm:$0xff] (!%p261_p3)   ;;  %v984_v21 = vld [vmem:[%s1163_s2 + $0x38] sm:$0xff] (!%p261_p3)  }
   0xc   : > { %892 = vmatpush3.bf16.msra.mxu1 (!%p261_p3), %v971_v2 }
   0xd   : > { %916 = vmatpush3.bf16.msra.mxu0 (!%p261_p3), %v972_v3  ;;  %893 = vmatprep.subr.bf16.mxu1 (!%p261_p3), %v973_v4 }
   0xe   : > { %s1172_s18 = smov (!%p320_p4, %s999_s18), 1  ;;  %917 = vmatprep.subr.bf16.mxu0 %v974_v5 }
   0xf   : > { %s1081_s13 = sshll.u32 %s1172_s18, 6 }
  0x10   : > { %894 = vmatpush3.bf16.msra.mxu1 %v973_v4  ;;  %s1093_s24 = scalar_lea.vmem %s1162_s1, %s1081_s13  ;;  %s1099_s26 = scalar_lea.vmem %s1161_s0, %s1081_s13 }
  0x11   : > { %918 = vmatpush3.bf16.msra.mxu0 %v974_v5  ;;  %895 = vmatprep.subr.bf16.mxu1 %v975_v6  ;;  %v392_v11 = vld [vmem:[%s1093_s24] sm:$0xff]  ;;  %v393_v12 = vld [vmem:[%s1093_s24 + $0x8] sm:$0xff]  ;;  %v394_v22 = vld [vmem:[%s1093_s24 + $0x10] sm:$0xff]  ;;  %s1142_s23 = scalar_lea.vmem %s1166_s5, %s1081_s13 }
  0x12   : > { %919 = vmatprep.subr.bf16.mxu0 %v976_v7  ;;  %v364_v13 = vld [vmem:[%s1099_s26] sm:$0xff]  ;;  %v400_v15 = vpack.c.bf16 %v393_v12, %v392_v11  ;;  %v365_v16 = vld [vmem:[%s1099_s26 + $0x8] sm:$0xff]  ;;  %v395_v23 = vld [vmem:[%s1093_s24 + $0x18] sm:$0xff] }
  0x13   : > { %v372_v17 = vpack.c.bf16 %v365_v16, %v364_v13  ;;  %v366_v24 = vld [vmem:[%s1099_s26 + $0x10] sm:$0xff]  ;;  %v367_v25 = vld [vmem:[%s1099_s26 + $0x18] sm:$0xff]  ;;  %v396_v26 = vld [vmem:[%s1093_s24 + $0x20] sm:$0xff]  ;;  %v401_v30 = vpack.c.bf16 %v395_v23, %v394_v22 }
  0x14   : > { %896 = vmatpush3.bf16.msra.mxu1 %v975_v6  ;;  %905 = vmatprep.mubr.bf16.mxu1 %v400_v15  ;;  %v397_v27 = vld [vmem:[%s1093_s24 + $0x28] sm:$0xff]  ;;  %v368_v28 = vld [vmem:[%s1099_s26 + $0x20] sm:$0xff]  ;;  %v373_v31 = vpack.c.bf16 %v367_v25, %v366_v24  ;;  %v398_v34 = vld [vmem:[%s1093_s24 + $0x30] sm:$0xff] }
  0x15   : > { %920 = vmatpush3.bf16.msra.mxu0 %v976_v7  ;;  %897 = vmatprep.subr.bf16.mxu1 %v977_v8  ;;  %v369_v29 = vld [vmem:[%s1099_s26 + $0x28] sm:$0xff]  ;;  %v402_v32 = vpack.c.bf16 %v397_v27, %v396_v26  ;;  %v399_v35 = vld [vmem:[%s1093_s24 + $0x38] sm:$0xff]  ;;  %v370_v36 = vld [vmem:[%s1099_s26 + $0x30] sm:$0xff] }
  0x16   : > { %921 = vmatprep.subr.bf16.mxu0 %v978_v9  ;;  %929 = vmatprep.mubr.bf16.mxu0 %v372_v17  ;;  %v374_v33 = vpack.c.bf16 %v369_v29, %v368_v28  ;;  %v371_v37 = vld [vmem:[%s1099_s26 + $0x38] sm:$0xff]  ;;  %v403_v38 = vpack.c.bf16 %v399_v35, %v398_v34 }
  0x17   : > { %v375_v39 = vpack.c.bf16 %v371_v37, %v370_v36 }
  0x18   : > { %898 = vmatpush3.bf16.msra.mxu1 %v977_v8 }
  0x19   : > { %922 = vmatpush3.bf16.msra.mxu0 %v978_v9  ;;  %899 = vmatprep.subr.bf16.mxu1 %v979_v10 }
  0x1a   : > { %923 = vmatprep.subr.bf16.mxu0 %v980_v14 }
  0x1c   : > { %900 = vmatpush3.bf16.msra.mxu1 %v979_v10 }
  0x1d   : > { %924 = vmatpush3.bf16.msra.mxu0 %v980_v14  ;;  %901 = vmatprep.subr.bf16.mxu1 %v981_v18 }
  0x1e   : > { %925 = vmatprep.subr.bf16.mxu0 %v982_v19 }
  0x20   : > { %902 = vmatpush3.bf16.msra.mxu1 %v981_v18 }
  0x21   : > { %926 = vmatpush3.bf16.msra.mxu0 %v982_v19  ;;  %903 = vmatprep.subr.bf16.mxu1 %v983_v20 }
  0x22   : > { %927 = vmatprep.subr.bf16.mxu0 %v984_v21 }
  0x24   : > { %904 = vmatpush3.bf16.msra.mxu1 %v983_v20 }
  0x25   : > { %928 = vmatpush3.bf16.msra.mxu0 %v984_v21 }
  0x27   : > { %906 = vmatmul.mubr.bf16.vlgmr.msra.gmra.mrb[0].mxu1 %v401_v30 }
  0x28   : > { %930 = vmatmul.mubr.bf16.vlgmr.msra.gmra.mrb[0].mxu0 %v373_v31  ;;  %909 = vmatprep.mubr.bf16.mxu1 %v402_v32 }
  0x29   : > { %933 = vmatprep.mubr.bf16.mxu0 %v374_v33 }
  0x2f   : > { %910 = vmatmul.mubr.bf16.gmra.mrb[4].mxu1 %v403_v38 }
  0x30   : > { %934 = vmatmul.mubr.bf16.gmra.mrb[4].mxu0 %v375_v39 }
  0xfa   : > { %v907_v40 = vpop.f32.mrb[0].mxu1 }
  0xfb   : > { %v931_v41 = vpop.f32.mrb[0].mxu0  ;;  %v502_v43 = vpop.f32.mrb[1].mxu1 }
  0xfc   : > { %v624_v44 = vadd.f32 %v931_v41, %v907_v40  ;;  %v615_v45 = vpop.f32.mrb[1].mxu0  ;;  %v908_v46 = vpop.f32.mrb[2].mxu1 }
  0xfd   : > { %v616_v47 = vadd.f32 %v615_v45, %v502_v43  ;;  %v932_v48 = vpop.f32.mrb[2].mxu0  ;;  %v505_v49 = vpop.f32.mrb[3].mxu1 }
  0xfe   : > { %v655_v50 = vadd.f32 %v859_v42, %v624_v44  ;;  %v627_v51 = vadd.f32 %v932_v48, %v908_v46  ;;  %v618_v52 = vpop.f32.mrb[3].mxu0 }
  0xff   : > { %v653_v53 = vadd.f32 %v859_v42, %v616_v47  ;;  %v619_v54 = vadd.f32 %v618_v52, %v505_v49 }
 0x100   : > { %663 = vst [vmem:[%s1142_s23 + $0x10] sm:$0xff] %v655_v50  ;;  %v656_v55 = vadd.f32 %v859_v42, %v627_v51 }
 0x101   : > { %661 = vst [vmem:[%s1142_s23] sm:$0xff] %v653_v53  ;;  %v654_v56 = vadd.f32 %v859_v42, %v619_v54 }
 0x102   : > { %664 = vst [vmem:[%s1142_s23 + $0x18] sm:$0xff] %v656_v55  ;;  %v911_v57 = vpop.f32.mrb[4].mxu1 }
 0x103   : > { %662 = vst [vmem:[%s1142_s23 + $0x8] sm:$0xff] %v654_v56  ;;  %v935_v58 = vpop.f32.mrb[4].mxu0  ;;  %v518_v59 = vpop.f32.mrb[5].mxu1 }
 0x104   : > { %v640_v60 = vadd.f32 %v935_v58, %v911_v57  ;;  %v631_v61 = vpop.f32.mrb[5].mxu0  ;;  %v912_v62 = vpop.f32.mrb[6].mxu1 }
 0x105   : > { %v632_v63 = vadd.f32 %v631_v61, %v518_v59  ;;  %v936_v0 = vpop.f32.mrb[6].mxu0  ;;  %v521_v1 = vpop.f32.mrb[7].mxu1 }
 0x106   : > { %v659_v2 = vadd.f32 %v859_v42, %v640_v60  ;;  %v643_v3 = vadd.f32 %v936_v0, %v912_v62  ;;  %v634_v4 = vpop.f32.mrb[7].mxu0 }
 0x107   : > { %v657_v5 = vadd.f32 %v859_v42, %v632_v63  ;;  %v635_v6 = vadd.f32 %v634_v4, %v521_v1 }
 0x108   : > { %667 = vst [vmem:[%s1142_s23 + $0x30] sm:$0xff] %v659_v2  ;;  %v660_v7 = vadd.f32 %v859_v42, %v643_v3 }
 0x109   : > { %665 = vst [vmem:[%s1142_s23 + $0x20] sm:$0xff] %v657_v5  ;;  %v658_v8 = vadd.f32 %v859_v42, %v635_v6 }
 0x10a   : > { %668 = vst [vmem:[%s1142_s23 + $0x38] sm:$0xff] %v660_v7 }
 0x10b   : > { %666 = vst [vmem:[%s1142_s23 + $0x28] sm:$0xff] %v658_v8 }
 0x10c PF: > { %s15_s20 = sadd.s32 1, %s1007_s20   ;;  %s1167_s18 = smov %s1003_s19 }
 0x10d   : > { %p12_p5 = scmp.ge.s32.totalorder %s15_s20, 4   ;;  %s1168_s19 = smov %s1170_s21 }
 0x10f   :  { %14 = sbr.rel (!%p12_p5) target bundleno = 2 (0x2), region = 82 }

// kernel: _lambda_.71
= control target key start
LH: loop header
LB: loop body
LE: loop exit
PB: predicated region body
PF: predicated region fallthrough
CT: control target
= control target key end

     0   :  { %s951_s18 = smov 0   ;;  %s953_s19 = smov 0   ;;  %s1066_s0 = inlined_call_operand.vmem [shape: f32[2,64,128], index: 0, kind: input, shape index: {}]   ;;  %s1067_s1 = inlined_call_operand.vmem [shape: f32[2,1,128], index: 1, kind: input, shape index: {}]   ;;  %s1068_s2 = inlined_call_operand.vmem [shape: f32[2,1,128], index: 2, kind: input, shape index: {}]   ;;  %s1069_s3 = inlined_call_operand.vmem [shape: bf16[128,128], index: 3, kind: input, shape index: {}]   ;;  %s1070_s4 = inlined_call_operand.vmem [shape: f32[1,128], index: 4, kind: input, shape index: {}]   ;;  %s1071_s5 = inlined_call_operand.vmem [shape: f32[2,64,128], index: 5, kind: output, shape index: {}]  }
   0x1   :  { %s955_s20 = smov 0  }
   0x2 LB: > { %s34_s21 = sadd.s32 1, %s915_s19  ;;  %p778_p0 = scmp.ge.s32.totalorder %s919_s20, 1  ;;  %s919_s20 = sphi %s955_s20, %s15_s20   ;;  %s915_s19 = sphi %s953_s19, %s1073_s19   ;;  %s911_s18 = sphi %s951_s18, %s1072_s18  }
   0x3   : > { %p36_p1 = scmp.ge.s32.totalorder %s34_s21, 2  ;;  %p250_p2 = scmp.lt.s32.totalorder %s919_s20, 3 }
   0x5   : > { %s1075_s21 = smov (%p36_p1, %s34_s21), 0  ;;  %p251_p3 = pnand %p778_p0, %p250_p2 }
   0x6   : > { %p303_p4 = scmp.lt.s32.totalorder (!%p251_p3), %s911_s18, 1  ;;  %v873_v40 = vld [vmem:[%s1069_s3] sm:$0xff] (!%p251_p3)   ;;  %v874_v41 = vld [vmem:[%s1069_s3 + $0x8] sm:$0xff] (!%p251_p3)   ;;  %v875_v42 = vld [vmem:[%s1069_s3 + $0x10] sm:$0xff] (!%p251_p3)   ;;  %v443_v51 = vlaneseq (!%p251_p3) }
   0x7   : > { %254 = sbr.rel (%p251_p3) target bundleno = 565 (0x235), region = 40  ;;  %809 = vmatprep.subr.bf16.mxu0 (!%p251_p3), %v873_v40  ;;  %833 = vmatprep.subr.bf16.mxu1 (!%p251_p3), %v873_v40  ;;  %v876_v43 = vld [vmem:[%s1069_s3 + $0x18] sm:$0xff] (!%p251_p3)   ;;  %v877_v44 = vld [vmem:[%s1069_s3 + $0x20] sm:$0xff] (!%p251_p3)   ;;  %v878_v45 = vld [vmem:[%s1069_s3 + $0x28] sm:$0xff] (!%p251_p3)  }
   0x8   : > { %810 = vmatpush3.bf16.msra.mxu0 (!%p251_p3), %v873_v40  ;;  %841 = vmatpush3.bf16.msra.mxu1 (!%p251_p3), %v873_v40  ;;  %v879_v46 = vld [vmem:[%s1069_s3 + $0x30] sm:$0xff] (!%p251_p3)   ;;  %v880_v47 = vld [vmem:[%s1069_s3 + $0x38] sm:$0xff] (!%p251_p3)   ;;  %v444_v58 = vshrl.u32 (!%p251_p3), %v443_v51, 7 }
   0x9   : > { %811 = vmatprep.subr.bf16.mxu0 (!%p251_p3), %v874_v41  ;;  %834 = vmatprep.subr.bf16.mxu1 (!%p251_p3), %v874_v41 }
   0xc   : > { %812 = vmatpush3.bf16.msra.mxu0 (!%p251_p3), %v874_v41  ;;  %842 = vmatpush3.bf16.msra.mxu1 (!%p251_p3), %v874_v41 }
   0xd   : > { %813 = vmatprep.subr.bf16.mxu0 (!%p251_p3), %v875_v42  ;;  %835 = vmatprep.subr.bf16.mxu1 (!%p251_p3), %v875_v42 }
   0xe   : > { %s1077_s18 = smov (!%p303_p4, %s911_s18), 1 }
   0xf   : > { %s795_s22 = sshll.u32 %s1077_s18, 6  ;;  %s317_s24 = scalar_lea.vmem %s1068_s2, %s1077_s18 }
  0x10   : > { %s310_s25 = scalar_lea.vmem %s1066_s0, %s795_s22  ;;  %814 = vmatpush3.bf16.msra.mxu0 %v875_v42  ;;  %843 = vmatpush3.bf16.msra.mxu1 %v875_v42  ;;  %v440_v61 = vld [vmem:[%s317_s24] sm:$0x1]  ;;  %s314_s27 = scalar_lea.vmem %s1067_s1, %s1077_s18 }
  0x11   : > { %v343_v0 = vld [vmem:[%s310_s25] sm:$0xff]  ;;  %v344_v2 = vld [vmem:[%s310_s25 + $0x8] sm:$0xff]  ;;  %v345_v4 = vld [vmem:[%s310_s25 + $0x10] sm:$0xff]  ;;  %815 = vmatprep.subr.bf16.mxu0 %v876_v43  ;;  %836 = vmatprep.subr.bf16.mxu1 %v876_v43  ;;  %s336_s7 = scalar_lea.vmem %s1071_s5, %s795_s22 }
  0x12   : > { %v347_v1 = vld [vmem:[%s310_s25 + $0x20] sm:$0xff]  ;;  %351 = vadd.xlane.f32.xlu0 %v343_v0  ;;  %v348_v3 = vld [vmem:[%s310_s25 + $0x28] sm:$0xff]  ;;  %v346_v5 = vld [vmem:[%s310_s25 + $0x18] sm:$0xff] }
  0x13   : > { %359 = vadd.xlane.f32.xlu1 %v347_v1  ;;  %v349_v6 = vld [vmem:[%s310_s25 + $0x30] sm:$0xff]  ;;  %v350_v7 = vld [vmem:[%s310_s25 + $0x38] sm:$0xff] }
  0x14   : > { %816 = vmatpush3.bf16.msra.mxu0 %v876_v43  ;;  %844 = vmatpush3.bf16.msra.mxu1 %v876_v43 }
  0x15   : > { %817 = vmatprep.subr.bf16.mxu0 %v877_v44  ;;  %837 = vmatprep.subr.bf16.mxu1 %v877_v44 }
  0x16   : > { %353 = vadd.xlane.f32.xlu0 %v344_v2 }
  0x17   : > { %361 = vadd.xlane.f32.xlu1 %v348_v3 }
  0x18   : > { %818 = vmatpush3.bf16.msra.mxu0 %v877_v44  ;;  %845 = vmatpush3.bf16.msra.mxu1 %v877_v44 }
  0x19   : > { %819 = vmatprep.subr.bf16.mxu0 %v878_v45  ;;  %838 = vmatprep.subr.bf16.mxu1 %v878_v45 }
  0x1a   : > { %355 = vadd.xlane.f32.xlu0 %v345_v4 }
  0x1b   : > { %357 = vadd.xlane.f32.xlu1 %v346_v5 }
  0x1c   : > { %820 = vmatpush3.bf16.msra.mxu0 %v878_v45  ;;  %846 = vmatpush3.bf16.msra.mxu1 %v878_v45 }
  0x1d   : > { %821 = vmatprep.subr.bf16.mxu0 %v879_v46  ;;  %839 = vmatprep.subr.bf16.mxu1 %v879_v46 }
  0x1e   : > { %363 = vadd.xlane.f32.xlu0 %v349_v6 }
  0x1f   : > { %365 = vadd.xlane.f32.xlu1 %v350_v7 }
  0x20   : > { %822 = vmatpush3.bf16.msra.mxu0 %v879_v46  ;;  %847 = vmatpush3.bf16.msra.mxu1 %v879_v46 }
  0x21   : > { %823 = vmatprep.subr.bf16.mxu0 %v880_v47  ;;  %840 = vmatprep.subr.bf16.mxu1 %v880_v47 }
  0x24   : > { %824 = vmatpush3.bf16.msra.mxu0 %v880_v47  ;;  %848 = vmatpush3.bf16.msra.mxu1 %v880_v47 }
  0x9f   : > { %v352_v8 = vpop.xlane.xlu0 %351 }
  0xa0   : > { %v360_v9 = vpop.xlane.xlu1 %359  ;;  %v368_v10 = vmul.f32 0.0078125, %v352_v8 }
  0xa1   : > { %v372_v11 = vmul.f32 0.0078125, %v360_v9 }
  0xa2   : > { %v977_v12 = vsub.f32 %v343_v0, %v368_v10 }
  0xa3   : > { %v979_v13 = vsub.f32 %v347_v1, %v372_v11  ;;  %v354_v14 = vpop.xlane.xlu0 %353 }
  0xa4   : > { %v362_v15 = vpop.xlane.xlu1 %361  ;;  %v369_v16 = vmul.f32 0.0078125, %v354_v14  ;;  %v384_v17 = vmul.f32 %v977_v12, %v977_v12 }
  0xa5   : > { %v373_v18 = vmul.f32 0.0078125, %v362_v15  ;;  %v388_v21 = vmul.f32 %v979_v13, %v979_v13 }
  0xa6   : > { %v983_v19 = vsub.f32 %v344_v2, %v369_v16  ;;  %392 = vadd.xlane.f32.xlu0 %v384_v17  ;;  %v441_v2 = vadd.f32 1.0, %v440_v61 }
  0xa7   : > { %v985_v20 = vsub.f32 %v348_v3, %v373_v18  ;;  %v356_v22 = vpop.xlane.xlu0 %355  ;;  %v445_v3 = vsub.s32 0, %v444_v58 }
  0xa8   : > { %v358_v23 = vpop.xlane.xlu1 %357  ;;  %v370_v24 = vmul.f32 0.0078125, %v356_v22  ;;  %v385_v25 = vmul.f32 %v983_v19, %v983_v19 }
  0xa9   : > { %v371_v26 = vmul.f32 0.0078125, %v358_v23  ;;  %v389_v29 = vmul.f32 %v985_v20, %v985_v20  ;;  %v446_v11 = vrot.slane %v441_v2, %v445_v3 }
  0xaa   : > { %v991_v27 = vsub.f32 %v345_v4, %v370_v24  ;;  %400 = vadd.xlane.f32.xlu0 %v388_v21  ;;  %394 = vadd.xlane.f32.xlu1 %v385_v25  ;;  %v783_v24 = vld [vmem:[%s314_s27] ss:$0 sm:$0xff] }
  0xab   : > { %v993_v28 = vsub.f32 %v346_v5, %v371_v26  ;;  %v364_v30 = vpop.xlane.xlu0 %363 }
  0xac   : > { %v366_v31 = vpop.xlane.xlu1 %365  ;;  %v374_v32 = vmul.f32 0.0078125, %v364_v30  ;;  %v386_v33 = vmul.f32 %v991_v27, %v991_v27 }
  0xad   : > { %v375_v34 = vmul.f32 0.0078125, %v366_v31  ;;  %v387_v37 = vmul.f32 %v993_v28, %v993_v28 }
  0xae   : > { %v999_v35 = vsub.f32 %v349_v6, %v374_v32  ;;  %402 = vadd.xlane.f32.xlu1 %v389_v29  ;;  %396 = vadd.xlane.f32.xlu0 %v386_v33 }
  0xaf   : > { %v1001_v36 = vsub.f32 %v350_v7, %v375_v34 }
  0xb0   : > { %v390_v38 = vmul.f32 %v999_v35, %v999_v35 }
  0xb1   : > { %v391_v39 = vmul.f32 %v1001_v36, %v1001_v36 }
  0xb2   : > { %398 = vadd.xlane.f32.xlu1 %v387_v37  ;;  %404 = vadd.xlane.f32.xlu0 %v390_v38 }
  0xb6   : > { %406 = vadd.xlane.f32.xlu1 %v391_v39 }
 0x133   : > { %v393_v48 = vpop.xlane.xlu0 %392 }
 0x134   : > { %v408_v49 = vmul.f32 0.0078125, %v393_v48 }
 0x136   : > { %v416_v50 = vadd.f32 1e-06, %v408_v49 }
 0x137   : > { %v395_v52 = vpop.xlane.xlu1 %394  ;;  %v401_v53 = vpop.xlane.xlu0 %400 }
 0x138   : > { %881 = vrsqrt.f32 %v416_v50  ;;  %v409_v54 = vmul.f32 0.0078125, %v395_v52  ;;  %v412_v55 = vmul.f32 0.0078125, %v401_v53 }
 0x13a   : > { %v417_v56 = vadd.f32 1e-06, %v409_v54  ;;  %v420_v57 = vadd.f32 1e-06, %v412_v55 }
 0x13b   : > { %v403_v59 = vpop.xlane.xlu1 %402  ;;  %v397_v60 = vpop.xlane.xlu0 %396 }
 0x13c   : > { %883 = vrsqrt.f32 %v417_v56  ;;  %v413_v62 = vmul.f32 0.0078125, %v403_v59  ;;  %v410_v63 = vmul.f32 0.0078125, %v397_v60 }
 0x13d   : > { %885 = vrsqrt.f32 %v420_v57 }
 0x13e   : > { %v421_v0 = vadd.f32 1e-06, %v413_v62  ;;  %v418_v1 = vadd.f32 1e-06, %v410_v63 }
 0x13f   : > { %v399_v4 = vpop.xlane.xlu1 %398  ;;  %v405_v5 = vpop.xlane.xlu0 %404 }
 0x140   : > { %887 = vrsqrt.f32 %v421_v0  ;;  %v411_v6 = vmul.f32 0.0078125, %v399_v4  ;;  %v414_v7 = vmul.f32 0.0078125, %v405_v5 }
 0x141   : > { %889 = vrsqrt.f32 %v418_v1 }
 0x142   : > { %v882_v8 = vpop.eup %881  ;;  %v419_v9 = vadd.f32 1e-06, %v411_v6  ;;  %v422_v10 = vadd.f32 1e-06, %v414_v7 }
 0x143   : > { %v407_v14 = vpop.xlane.xlu1 %406  ;;  %v432_v15 = vmul.f32 %v882_v8, %v977_v12 }
 0x144   : > { %891 = vrsqrt.f32 %v419_v9  ;;  %v415_v16 = vmul.f32 0.0078125, %v407_v14 }
 0x145   : > { %893 = vrsqrt.f32 %v422_v10  ;;  %v448_v23 = vmul.f32 %v446_v11, %v432_v15 }
 0x146   : > { %v884_v17 = vpop.eup %883  ;;  %v423_v18 = vadd.f32 1e-06, %v415_v16 }
 0x147   : > { %v886_v21 = vpop.eup %885  ;;  %v433_v22 = vmul.f32 %v884_v17, %v983_v19  ;;  %v463_v30 = vadd.f32 %v783_v24, %v448_v23 }
 0x148   : > { %895 = vrsqrt.f32 %v423_v18  ;;  %v436_v25 = vmul.f32 %v886_v21, %v979_v13 }
 0x149   : > { %v449_v26 = vmul.f32 %v446_v11, %v433_v22 }
 0x14a   : > { %v888_v29 = vpop.eup %887  ;;  %v452_v33 = vmul.f32 %v446_v11, %v436_v25 }
 0x14b   : > { %v890_v12 = vpop.eup %889  ;;  %v464_v31 = vadd.f32 %v783_v24, %v449_v26  ;;  %v437_v32 = vmul.f32 %v888_v29, %v985_v20 }
 0x14c   : > { %v434_v34 = vmul.f32 %v890_v12, %v991_v27  ;;  %v467_v19 = vadd.f32 %v783_v24, %v452_v33 }
 0x14d   : > { %v471_v37 = vpack.c.bf16 %v464_v31, %v463_v30  ;;  %v453_v38 = vmul.f32 %v446_v11, %v437_v32 }
 0x14e   : > { %v892_v39 = vpop.eup %891  ;;  %v450_v13 = vmul.f32 %v446_v11, %v434_v34 }
 0x14f   : > { %v894_v40 = vpop.eup %893  ;;  %825 = vmatprep.mubr.bf16.mxu0 %v471_v37  ;;  %v468_v41 = vadd.f32 %v783_v24, %v453_v38  ;;  %v435_v42 = vmul.f32 %v892_v39, %v993_v28  ;;  %v784_v28 = vld [vmem:[%s1070_s4] ss:$0 sm:$0xff] }
 0x150   : > { %v438_v43 = vmul.f32 %v894_v40, %v999_v35  ;;  %v465_v20 = vadd.f32 %v783_v24, %v450_v13 }
 0x151   : > { %v473_v44 = vpack.c.bf16 %v468_v41, %v467_v19  ;;  %v451_v45 = vmul.f32 %v446_v11, %v435_v42 }
 0x152   : > { %v896_v46 = vpop.eup %895  ;;  %v454_v48 = vmul.f32 %v446_v11, %v438_v43 }
 0x153   : > { %829 = vmatprep.mubr.bf16.mxu1 %v473_v44  ;;  %v466_v47 = vadd.f32 %v783_v24, %v451_v45  ;;  %v439_v27 = vmul.f32 %v896_v46, %v1001_v36 }
 0x154   : > { %v469_v51 = vadd.f32 %v783_v24, %v454_v48 }
 0x155   : > { %v472_v49 = vpack.c.bf16 %v466_v47, %v465_v20  ;;  %v455_v50 = vmul.f32 %v446_v11, %v439_v27 }
 0x157   : > { %826 = vmatmul.mubr.bf16.vlgmr.msra.gmra.mrb[0].mxu0 %v472_v49  ;;  %v470_v52 = vadd.f32 %v783_v24, %v455_v50 }
 0x159   : > { %v474_v53 = vpack.c.bf16 %v470_v52, %v469_v51 }
 0x15b   : > { %830 = vmatmul.mubr.bf16.vlgmr.msra.gmra.mrb[0].mxu1 %v474_v53 }
 0x22a   : > { %v827_v35 = vpop.f32.mrb[0].mxu0 }
 0x22b   : > { %v597_v54 = vadd.f32 %v827_v35, %v784_v28  ;;  %v588_v36 = vpop.f32.mrb[1].mxu0 }
 0x22c   : > { %v589_v55 = vadd.f32 %v784_v28, %v588_v36  ;;  %v828_v56 = vpop.f32.mrb[2].mxu0 }
 0x22d   : > { %621 = vst [vmem:[%s336_s7 + $0x10] sm:$0xff] %v597_v54  ;;  %v600_v57 = vadd.f32 %v828_v56, %v784_v28  ;;  %v591_v58 = vpop.f32.mrb[3].mxu0 }
 0x22e   : > { %619 = vst [vmem:[%s336_s7] sm:$0xff] %v589_v55  ;;  %v592_v59 = vadd.f32 %v784_v28, %v591_v58  ;;  %v831_v60 = vpop.f32.mrb[0].mxu1 }
 0x22f   : > { %622 = vst [vmem:[%s336_s7 + $0x18] sm:$0xff] %v600_v57  ;;  %v613_v61 = vadd.f32 %v831_v60, %v784_v28  ;;  %v604_v62 = vpop.f32.mrb[1].mxu1 }
 0x230   : > { %620 = vst [vmem:[%s336_s7 + $0x8] sm:$0xff] %v592_v59  ;;  %v605_v63 = vadd.f32 %v784_v28, %v604_v62  ;;  %v832_v0 = vpop.f32.mrb[2].mxu1 }
 0x231   : > { %625 = vst [vmem:[%s336_s7 + $0x30] sm:$0xff] %v613_v61  ;;  %v616_v1 = vadd.f32 %v832_v0, %v784_v28  ;;  %v607_v2 = vpop.f32.mrb[3].mxu1 }
 0x232   : > { %623 = vst [vmem:[%s336_s7 + $0x20] sm:$0xff] %v605_v63  ;;  %v608_v3 = vadd.f32 %v784_v28, %v607_v2 }
 0x233   : > { %626 = vst [vmem:[%s336_s7 + $0x38] sm:$0xff] %v616_v1 }
 0x234   : > { %624 = vst [vmem:[%s336_s7 + $0x28] sm:$0xff] %v608_v3 }
 0x235 PF: > { %s15_s20 = sadd.s32 1, %s919_s20   ;;  %s1072_s18 = smov %s915_s19 }
 0x236   : > { %p12_p5 = scmp.ge.s32.totalorder %s15_s20, 4   ;;  %s1073_s19 = smov %s1075_s21 }
 0x238   :  { %14 = sbr.rel (!%p12_p5) target bundleno = 2 (0x2), region = 86 }

</bundles_post_ra>
